<compile_context>
chip_gen: v5e
topology: v5e:2x2
jax: 0.10.0
libtpu: 0.0.40
codegen_flags: <defaults>
</compile_context>

<pallas_src>
import math
import numpy as np
import jax
import jax.numpy as jnp
from jax import lax
from jax.experimental import pallas as pl
from jax.experimental.pallas import tpu as pltpu

NEG_INF = -1e9      # value the PyTorch module uses for masked positions
CROSS_NEG = -1e10   # cross-sample blocks of the per-step block-diagonal mask


# ----------------------------------------------------------------------------
# Pallas kernel (Bb batch samples per grid step)
# ----------------------------------------------------------------------------
def _make_decoder_kernel(nhead, eps, mxu_dtype):
    H = nhead

    def kernel(med_ref, mem_ref, dis_ref, prc_ref,
               smask_ref, dmask_ref, pmask_ref,
               sa_w_in_ref, sa_b_in_ref, sa_w_out_ref, sa_b_out_ref,
               xq_w_ref, xq_b_ref,
               d_kv_w_ref, d_kv_b_ref, p_kv_w_ref, p_kv_b_ref,
               co_w_ref, co_b_ref,
               ff_w1_ref, ff_b1_ref, ff_w2_ref, ff_b2_ref,
               ln_g_ref, ln_b_ref,
               out_ref):
        D = med_ref.shape[1]
        dh = D // H

        def mm(x, w_ref, b_ref):
            # bf16 (or f32) MXU operands, f32 accumulation, f32 bias add.
            return (jnp.dot(x.astype(mxu_dtype), w_ref[...],
                            preferred_element_type=jnp.float32) + b_ref[...])

        def layer_norm(x, row):
            g = ln_g_ref[row:row + 1, :]
            b = ln_b_ref[row:row + 1, :]
            mu = jnp.mean(x, axis=-1, keepdims=True)
            var = jnp.mean(jnp.square(x - mu), axis=-1, keepdims=True)
            return (x - mu) * lax.rsqrt(var + eps) * g + b

        def split_heads(rows):
            # (R, D) -> (H, R, dh): heads on a leading axis — only static lane
            # slices + a leading-axis stack, no lane<->sublane relayout.
            return jnp.stack(
                [rows[:, h * dh:(h + 1) * dh] for h in range(H)], axis=0)

        def mha(q_rows, k_rows, v_rows, mask):
            # q_rows:(N,D)  k_rows/v_rows:(M,D)  mask:(H,N,M) additive f32 mask
            # whose cross-sample blocks are already set to CROSS_NEG (so one
            # softmax over the whole row == per-sample softmax).
            qh = split_heads(q_rows)
            kh = split_heads(k_rows)
            vh = split_heads(v_rows)
            s = jnp.einsum('hnd,hmd->hnm',
                           qh.astype(mxu_dtype), kh.astype(mxu_dtype),
                           preferred_element_type=jnp.float32)
            s = s + mask
            mx = jnp.max(s, axis=-1, keepdims=True)
            e = jnp.exp(s - mx)
            p = e * pl.reciprocal(jnp.sum(e, axis=-1, keepdims=True),
                                  approx=True)
            ctx = jnp.einsum('hnm,hmd->hnd',
                             p.astype(mxu_dtype), vh.astype(mxu_dtype),
                             preferred_element_type=jnp.float32)
            # merge heads back onto the lane axis
            return jnp.concatenate([ctx[h] for h in range(H)], axis=-1)

        x = med_ref[...] + mem_ref[...]                       # (Bb*T, D)

        # --- self-attention (scale + causal mask already folded on the host) --
        qkv = mm(x, sa_w_in_ref, sa_b_in_ref)                 # (Bb*T, 3D)
        sa = mha(qkv[:, 0:D], qkv[:, D:2 * D], qkv[:, 2 * D:3 * D],
                 smask_ref[0])
        x = layer_norm(x + mm(sa, sa_w_out_ref, sa_b_out_ref), 0)
        # TODO(synk): dropout / dropout1-3 are identity in eval mode; not applied.

        # --- two cross-attentions (fused q / fused K,V / fused out projections)
        q2 = mm(x, xq_w_ref, xq_b_ref)                        # (Bb*T, 2D)
        kv_d = mm(dis_ref[...], d_kv_w_ref, d_kv_b_ref)       # (Bb*Sd, 2D)
        kv_p = mm(prc_ref[...], p_kv_w_ref, p_kv_b_ref)       # (Bb*Sp, 2D)
        ctx_d = mha(q2[:, 0:D], kv_d[:, 0:D], kv_d[:, D:2 * D], dmask_ref[0])
        ctx_p = mha(q2[:, D:2 * D], kv_p[:, 0:D], kv_p[:, D:2 * D], pmask_ref[0])
        ctx = jnp.concatenate([ctx_d, ctx_p], axis=-1)        # (Bb*T, 2D)
        x = layer_norm(x + mm(ctx, co_w_ref, co_b_ref), 1)

        # --- feed-forward -----------------------------------------------------
        h1 = jnp.maximum(mm(x, ff_w1_ref, ff_b1_ref), 0.0)
        x = layer_norm(x + mm(h1, ff_w2_ref, ff_b2_ref), 2)

        out_ref[...] = x.astype(out_ref.dtype)

    return kernel


# ----------------------------------------------------------------------------
# Host-side helpers
# ----------------------------------------------------------------------------
def _pick_block_batch(B, max_bb=8):
    """Largest divisor of B <= max_bb that still leaves >=2 grid steps
    (so v7x's second TensorCore gets work)."""
    min_steps = 2 if B >= 2 else 1
    best = 1
    for bb in range(1, min(B, max_bb) + 1):
        if B % bb == 0 and B // bb >= min_steps:
            best = bb
    return best


def _block_diag_masks(mask, B, H, T, S, Bb):
    """(B*H, T, S) additive mask -> (B//Bb, H, Bb*T, Bb*S) with cross-sample
    blocks set to CROSS_NEG (block-diagonal over the Bb samples of a step)."""
    n = B // Bb
    m = mask.reshape(n, Bb, H, T, S)
    m = jnp.transpose(m, (0, 2, 1, 3, 4))                    # (n, H, Bb, T, S)
    keep = jnp.eye(Bb, dtype=jnp.bool_)
    big = jnp.where(keep[None, None, :, None, :, None],
                    m[:, :, :, :, None, :],
                    jnp.float32(CROSS_NEG))                  # (n,H,Bb,T,Bb,S)
    return big.reshape(n, H, Bb * T, Bb * S)


# ----------------------------------------------------------------------------
# Wrapper: weight fusion / transposition, mask prep, pallas_call
# ----------------------------------------------------------------------------
def med_decoder_pallas(med, mem, dis, prc, self_mask, d_mask, p_mask,
                       params, nhead, eps=1e-5, mxu_dtype=jnp.bfloat16,
                       block_batch=None):
    B, T, D = med.shape
    Sd, Sp = dis.shape[1], prc.shape[1]
    H = nhead
    dh = D // H
    scale = 1.0 / math.sqrt(dh)

    f32 = lambda a: jnp.asarray(a, jnp.float32)
    wdt = lambda a: jnp.asarray(a, mxu_dtype)   # MXU-operand dtype for weights

    Bb = block_batch if block_batch is not None else _pick_block_batch(B)
    assert B % Bb == 0
    nsteps = B // Bb
    N, Md, Mp = Bb * T, Bb * Sd, Bb * Sp

    # ---- weights: pre-transposed, fused, 1/sqrt(dh) folded into Q projections
    sa_in_w = f32(params['sa_in_w'])
    sa_in_b = f32(params['sa_in_b'])
    sa_in_w = sa_in_w.at[:D].multiply(scale)     # PyTorch rows 0:D are W_q
    sa_in_b = sa_in_b.at[:D].multiply(scale)
    sa_w_in = wdt(sa_in_w.T)                                   # (D, 3D)
    sa_b_in = sa_in_b[None]                                    # (1, 3D) f32
    sa_w_out = wdt(f32(params['sa_out_w']).T)                  # (D, D)
    sa_b_out = f32(params['sa_out_b'])[None]

    d_in_w, d_in_b = f32(params['d_in_w']), f32(params['d_in_b'])
    p_in_w, p_in_b = f32(params['p_in_w']), f32(params['p_in_b'])
    xq_w = wdt(jnp.concatenate([d_in_w[:D].T, p_in_w[:D].T], axis=1) * scale)
    xq_b = (jnp.concatenate([d_in_b[:D], p_in_b[:D]]) * scale)[None]
    d_kv_w = wdt(jnp.concatenate([d_in_w[D:2 * D].T, d_in_w[2 * D:].T], axis=1))
    d_kv_b = jnp.concatenate([d_in_b[D:2 * D], d_in_b[2 * D:]])[None]
    p_kv_w = wdt(jnp.concatenate([p_in_w[D:2 * D].T, p_in_w[2 * D:].T], axis=1))
    p_kv_b = jnp.concatenate([p_in_b[D:2 * D], p_in_b[2 * D:]])[None]
    co_w = wdt(jnp.concatenate([f32(params['d_out_w']).T,
                                f32(params['p_out_w']).T], axis=0))  # (2D, D)
    co_b = (f32(params['d_out_b']) + f32(params['p_out_b']))[None]

    ff_w1 = wdt(f32(params['w1']).T)
    ff_b1 = f32(params['b1'])[None]
    ff_w2 = wdt(f32(params['w2']).T)
    ff_b2 = f32(params['b2'])[None]
    ln_g = jnp.stack([f32(params['g1']), f32(params['g2']), f32(params['g3'])])
    ln_b = jnp.stack([f32(params['bn1']), f32(params['bn2']), f32(params['bn3'])])

    weights = (sa_w_in, sa_b_in, sa_w_out, sa_b_out,
               xq_w, xq_b, d_kv_w, d_kv_b, p_kv_w, p_kv_b,
               co_w, co_b, ff_w1, ff_b1, ff_w2, ff_b2, ln_g, ln_b)

    # ---- masks: fold causal into the self mask, then build one block-diagonal
    # additive mask per grid step (no in-kernel iota / per-score scaling).
    idx = jnp.arange(T)
    subseq = jnp.where(idx[None, :] <= idx[:, None], 0.0,
                       NEG_INF).astype(jnp.float32)
    sm = _block_diag_masks(f32(self_mask) + subseq[None], B, H, T, T, Bb)
    dm = _block_diag_masks(f32(d_mask), B, H, T, Sd, Bb)
    pm = _block_diag_masks(f32(p_mask), B, H, T, Sp, Bb)

    # ---- flatten (batch, seq) -> rows on the host so the kernel's matmuls see
    # (Bb*seq, D) slabs and its I/O needs no in-kernel relayout.
    med2 = f32(med).reshape(B * T, D)
    mem2 = f32(mem).reshape(B * T, D)
    dis2 = f32(dis).reshape(B * Sd, D)
    prc2 = f32(prc).reshape(B * Sp, D)

    def rows_spec(rows):
        return pl.BlockSpec((rows, D), lambda i: (i, 0))

    def mask_spec(m):
        shp = m.shape
        return pl.BlockSpec((1,) + shp[1:], lambda i: (i, 0, 0, 0))

    def resident_spec(arr):
        nd = arr.ndim
        return pl.BlockSpec(arr.shape, lambda i, _n=nd: (0,) * _n)

    in_specs = ([rows_spec(N), rows_spec(N), rows_spec(Md), rows_spec(Mp),
                 mask_spec(sm), mask_spec(dm), mask_spec(pm)]
                + [resident_spec(w) for w in weights])

    grid_spec = pltpu.PrefetchScalarGridSpec(
        num_scalar_prefetch=0,
        grid=(nsteps,),
        in_specs=in_specs,
        out_specs=pl.BlockSpec((N, D), lambda i: (i, 0)),
    )

    out = pl.pallas_call(
        _make_decoder_kernel(nhead, eps, mxu_dtype),
        out_shape=jax.ShapeDtypeStruct((B * T, D), jnp.float32),
        grid_spec=grid_spec,
        compiler_params=pltpu.CompilerParams(
            dimension_semantics=("parallel",)),
    )(med2, mem2, dis2, prc2, sm, dm, pm, *weights)
    return out.reshape(B, T, D)


# ----------------------------------------------------------------------------
# Pure-JAX reference mirroring the PyTorch forward (eval mode; dropout = id)
# ----------------------------------------------------------------------------
def decoder_ref(med, mem, dis, prc, self_mask, d_mask, p_mask,
                params, nhead, eps=1e-5):
    B, T, D = med.shape
    H = nhead

    def ln(x, g, b):
        mu = jnp.mean(x, axis=-1, keepdims=True)
        var = jnp.mean(jnp.square(x - mu), axis=-1, keepdims=True)
        return (x - mu) * lax.rsqrt(var + eps) * g + b

    def mha(q_in, kv_in, in_w, in_b, out_w, out_b, mask):
        dh = D // H
        wq, wk, wv = in_w[:D], in_w[D:2 * D], in_w[2 * D:]
        bq, bk, bv = in_b[:D], in_b[D:2 * D], in_b[2 * D:]
        q = q_in @ wq.T + bq
        k = kv_in @ wk.T + bk
        v = kv_in @ wv.T + bv
        L, S = q.shape[0], k.shape[0]
        qh = q.reshape(L, H, dh).transpose(1, 0, 2)
        kh = k.reshape(S, H, dh).transpose(1, 0, 2)
        vh = v.reshape(S, H, dh).transpose(1, 0, 2)
        sc = jnp.einsum('htd,hsd->hts', qh, kh) / math.sqrt(dh) + mask
        a = jax.nn.softmax(sc, axis=-1)
        ctx = jnp.einsum('hts,hsd->htd', a, vh).transpose(1, 0, 2).reshape(L, D)
        return ctx @ out_w.T + out_b

    idx = jnp.arange(T)
    subseq = jnp.where(idx[None, :] <= idx[:, None], 0.0, NEG_INF)

    outs = []
    for b in range(B):
        x = med[b] + mem[b]
        sm = self_mask[b * H:(b + 1) * H] + subseq[None]
        sa = mha(x, x, params['sa_in_w'], params['sa_in_b'],
                 params['sa_out_w'], params['sa_out_b'], sm)
        x = ln(x + sa, params['g1'], params['bn1'])
        m2d = mha(x, dis[b], params['d_in_w'], params['d_in_b'],
                  params['d_out_w'], params['d_out_b'],
                  d_mask[b * H:(b + 1) * H])
        m2p = mha(x, prc[b], params['p_in_w'], params['p_in_b'],
                  params['p_out_w'], params['p_out_b'],
                  p_mask[b * H:(b + 1) * H])
        x = ln(x + m2d + m2p, params['g2'], params['bn2'])
        ff = (jnp.maximum(x @ params['w1'].T + params['b1'], 0.0)
              @ params['w2'].T + params['b2'])
        x = ln(x + ff, params['g3'], params['bn3'])
        outs.append(x)
    return jnp.stack(outs)


# ----------------------------------------------------------------------------
# Parameter construction
# ----------------------------------------------------------------------------
def init_params(key, D, F):
    ks = jax.random.split(key, 22)
    n = lambda k, shape, s=0.1: jax.random.normal(k, shape, jnp.float32) * s
    return {
        'sa_in_w': n(ks[0], (3 * D, D)), 'sa_in_b': n(ks[1], (3 * D,)),
        'sa_out_w': n(ks[2], (D, D)),    'sa_out_b': n(ks[3], (D,)),
        'd_in_w': n(ks[4], (3 * D, D)),  'd_in_b': n(ks[5], (3 * D,)),
        'd_out_w': n(ks[6], (D, D)),     'd_out_b': n(ks[7], (D,)),
        'p_in_w': n(ks[8], (3 * D, D)),  'p_in_b': n(ks[9], (3 * D,)),
        'p_out_w': n(ks[10], (D, D)),    'p_out_b': n(ks[11], (D,)),
        'w1': n(ks[12], (F, D)),         'b1': n(ks[13], (F,)),
        'w2': n(ks[14], (D, F)),         'b2': n(ks[15], (D,)),
        'g1': 1.0 + n(ks[16], (D,)),     'bn1': n(ks[17], (D,)),
        'g2': 1.0 + n(ks[18], (D,)),     'bn2': n(ks[19], (D,)),
        'g3': 1.0 + n(ks[20], (D,)),     'bn3': n(ks[21], (D,)),
    }


if __name__ == "__main__":
    D, H, F = 64, 4, 128            # d_model, nhead, dim_feedforward
    B, T, Sd, Sp = 4, 8, 16, 16     # batch, med-seq len, disease / proc mem lens

    key = jax.random.PRNGKey(0)
    k_in, k_par, k_m = jax.random.split(key, 3)
    k1, k2, k3, k4 = jax.random.split(k_in, 4)
    med = jax.random.normal(k1, (B, T, D), jnp.float32)
    mem = jax.random.normal(k2, (B, T, D), jnp.float32)
    dis = jax.random.normal(k3, (B, Sd, D), jnp.float32)
    prc = jax.random.normal(k4, (B, Sp, D), jnp.float32)

    km1, km2, km3 = jax.random.split(k_m, 3)

    def make_mask(k, shape):
        m = jnp.where(jax.random.bernoulli(k, 0.15, shape),
                      NEG_INF, 0.0).astype(jnp.float32)
        return m.at[..., 0].set(0.0)   # keep >=1 unmasked key per query row

    self_mask = make_mask(km1, (B * H, T, T))
    d_mask = make_mask(km2, (B * H, T, Sd))
    p_mask = make_mask(km3, (B * H, T, Sp))

    params = init_params(k_par, D, F)

    ref = decoder_ref(med, mem, dis, prc, self_mask, d_mask, p_mask,
                      params, nhead=H)

    # Exact-math verification path (f32 MXU operands, as on v5e).
    out_f32 = med_decoder_pallas(med, mem, dis, prc,
                                 self_mask, d_mask, p_mask, params, nhead=H,
                                 mxu_dtype=jnp.float32)
    out_f32 = jax.block_until_ready(out_f32)
    np.testing.assert_allclose(np.asarray(out_f32), np.asarray(ref),
                               rtol=1e-2, atol=1e-2)

    # Performance default for v6e/v7x: bf16 MXU operands, f32 accumulation and
    # f32 element-wise math (LayerNorm / softmax / biases).
    out_bf16 = med_decoder_pallas(med, mem, dis, prc,
                                  self_mask, d_mask, p_mask, params, nhead=H,
                                  mxu_dtype=jnp.bfloat16)
    out_bf16 = jax.block_until_ready(out_bf16)
    np.testing.assert_allclose(np.asarray(out_bf16), np.asarray(ref),
                               rtol=1e-1, atol=1e-1)

    print("KERNEL_OK")
</pallas_src>

<mosaic_0001>
module attributes {stable_mosaic.version = 11 : i64} {
  func.func @kernel(%arg0: i32, %arg1: memref<16x64xf32, #tpu.memory_space<vmem>>, %arg2: memref<16x64xf32, #tpu.memory_space<vmem>>, %arg3: memref<32x64xf32, #tpu.memory_space<vmem>>, %arg4: memref<32x64xf32, #tpu.memory_space<vmem>>, %arg5: memref<1x4x16x16xf32, #tpu.memory_space<vmem>>, %arg6: memref<1x4x16x32xf32, #tpu.memory_space<vmem>>, %arg7: memref<1x4x16x32xf32, #tpu.memory_space<vmem>>, %arg8: memref<64x192xf32, #tpu.memory_space<vmem>>, %arg9: memref<1x192xf32, #tpu.memory_space<vmem>>, %arg10: memref<64x64xf32, #tpu.memory_space<vmem>>, %arg11: memref<1x64xf32, #tpu.memory_space<vmem>>, %arg12: memref<64x128xf32, #tpu.memory_space<vmem>>, %arg13: memref<1x128xf32, #tpu.memory_space<vmem>>, %arg14: memref<64x128xf32, #tpu.memory_space<vmem>>, %arg15: memref<1x128xf32, #tpu.memory_space<vmem>>, %arg16: memref<64x128xf32, #tpu.memory_space<vmem>>, %arg17: memref<1x128xf32, #tpu.memory_space<vmem>>, %arg18: memref<128x64xf32, #tpu.memory_space<vmem>>, %arg19: memref<1x64xf32, #tpu.memory_space<vmem>>, %arg20: memref<64x128xf32, #tpu.memory_space<vmem>>, %arg21: memref<1x128xf32, #tpu.memory_space<vmem>>, %arg22: memref<128x64xf32, #tpu.memory_space<vmem>>, %arg23: memref<1x64xf32, #tpu.memory_space<vmem>>, %arg24: memref<3x64xf32, #tpu.memory_space<vmem>>, %arg25: memref<3x64xf32, #tpu.memory_space<vmem>>, %arg26: memref<16x64xf32, #tpu.memory_space<vmem>>) attributes {dimension_semantics = [#tpu.dimension_semantics<parallel>], iteration_bounds = array<i64: 2>, scalar_prefetch = 0 : i64, scratch_operands = 0 : i64, tpu.core_type = #tpu.core_type<tc>, window_params = [{transform_indices = @transform_0, window_bounds = array<i64: 16, 64>}, {transform_indices = @transform_1, window_bounds = array<i64: 16, 64>}, {transform_indices = @transform_2, window_bounds = array<i64: 32, 64>}, {transform_indices = @transform_3, window_bounds = array<i64: 32, 64>}, {transform_indices = @transform_4, window_bounds = array<i64: 1, 4, 16, 16>}, {transform_indices = @transform_5, window_bounds = array<i64: 1, 4, 16, 32>}, {transform_indices = @transform_6, window_bounds = array<i64: 1, 4, 16, 32>}, {pipeline_mode = #tpu.pipeline_mode<synchronous>, transform_indices = @transform_7, window_bounds = array<i64: 64, 192>}, {pipeline_mode = #tpu.pipeline_mode<synchronous>, transform_indices = @transform_8, window_bounds = array<i64: 1, 192>}, {pipeline_mode = #tpu.pipeline_mode<synchronous>, transform_indices = @transform_9, window_bounds = array<i64: 64, 64>}, {pipeline_mode = #tpu.pipeline_mode<synchronous>, transform_indices = @transform_10, window_bounds = array<i64: 1, 64>}, {pipeline_mode = #tpu.pipeline_mode<synchronous>, transform_indices = @transform_11, window_bounds = array<i64: 64, 128>}, {pipeline_mode = #tpu.pipeline_mode<synchronous>, transform_indices = @transform_12, window_bounds = array<i64: 1, 128>}, {pipeline_mode = #tpu.pipeline_mode<synchronous>, transform_indices = @transform_13, window_bounds = array<i64: 64, 128>}, {pipeline_mode = #tpu.pipeline_mode<synchronous>, transform_indices = @transform_14, window_bounds = array<i64: 1, 128>}, {pipeline_mode = #tpu.pipeline_mode<synchronous>, transform_indices = @transform_15, window_bounds = array<i64: 64, 128>}, {pipeline_mode = #tpu.pipeline_mode<synchronous>, transform_indices = @transform_16, window_bounds = array<i64: 1, 128>}, {pipeline_mode = #tpu.pipeline_mode<synchronous>, transform_indices = @transform_17, window_bounds = array<i64: 128, 64>}, {pipeline_mode = #tpu.pipeline_mode<synchronous>, transform_indices = @transform_18, window_bounds = array<i64: 1, 64>}, {pipeline_mode = #tpu.pipeline_mode<synchronous>, transform_indices = @transform_19, window_bounds = array<i64: 64, 128>}, {pipeline_mode = #tpu.pipeline_mode<synchronous>, transform_indices = @transform_20, window_bounds = array<i64: 1, 128>}, {pipeline_mode = #tpu.pipeline_mode<synchronous>, transform_indices = @transform_21, window_bounds = array<i64: 128, 64>}, {pipeline_mode = #tpu.pipeline_mode<synchronous>, transform_indices = @transform_22, window_bounds = array<i64: 1, 64>}, {pipeline_mode = #tpu.pipeline_mode<synchronous>, transform_indices = @transform_23, window_bounds = array<i64: 3, 64>}, {pipeline_mode = #tpu.pipeline_mode<synchronous>, transform_indices = @transform_24, window_bounds = array<i64: 3, 64>}, {transform_indices = @transform_25, window_bounds = array<i64: 16, 64>}]} {
    %c0 = arith.constant 0 : index
    %c0_0 = arith.constant 0 : index
    %0 = vector.load %arg1[%c0, %c0_0] : memref<16x64xf32, #tpu.memory_space<vmem>>, vector<16x64xf32>
    %c0_1 = arith.constant 0 : index
    %c0_2 = arith.constant 0 : index
    %1 = vector.load %arg2[%c0_1, %c0_2] : memref<16x64xf32, #tpu.memory_space<vmem>>, vector<16x64xf32>
    %2 = arith.addf %0, %1 : vector<16x64xf32>
    %c0_3 = arith.constant 0 : index
    %c0_4 = arith.constant 0 : index
    %3 = vector.load %arg8[%c0_3, %c0_4] : memref<64x192xf32, #tpu.memory_space<vmem>>, vector<64x192xf32>
    %cst = arith.constant dense<0.000000e+00> : vector<16x192xf32>
    %4 = tpu.matmul %2, %3, %cst {dimension_numbers = #tpu.dot_dimension_numbers<[1], [0], [0], [1], [0, 0, 1, 1], [], []>} : vector<16x64xf32>, vector<64x192xf32>, vector<16x192xf32> -> vector<16x192xf32>
    %c0_5 = arith.constant 0 : index
    %c0_6 = arith.constant 0 : index
    %5 = vector.load %arg9[%c0_5, %c0_6] : memref<1x192xf32, #tpu.memory_space<vmem>>, vector<1x192xf32>
    %6 = vector.broadcast %5 : vector<1x192xf32> to vector<16x192xf32>
    %7 = arith.addf %4, %6 : vector<16x192xf32>
    %8 = vector.extract_strided_slice %7 {offsets = [0, 0], sizes = [16, 64], strides = [1, 1]} : vector<16x192xf32> to vector<16x64xf32>
    %9 = vector.extract_strided_slice %7 {offsets = [0, 64], sizes = [16, 64], strides = [1, 1]} : vector<16x192xf32> to vector<16x64xf32>
    %10 = vector.extract_strided_slice %7 {offsets = [0, 128], sizes = [16, 64], strides = [1, 1]} : vector<16x192xf32> to vector<16x64xf32>
    %c0_7 = arith.constant 0 : index
    %c0_8 = arith.constant 0 : index
    %c0_9 = arith.constant 0 : index
    %c0_10 = arith.constant 0 : index
    %11 = vector.load %arg5[%c0_7, %c0_8, %c0_9, %c0_10] : memref<1x4x16x16xf32, #tpu.memory_space<vmem>>, vector<1x4x16x16xf32>
    %12 = vector.shape_cast %11 : vector<1x4x16x16xf32> to vector<4x16x16xf32>
    %13 = vector.extract_strided_slice %8 {offsets = [0, 0], sizes = [16, 16], strides = [1, 1]} : vector<16x64xf32> to vector<16x16xf32>
    %14 = vector.extract_strided_slice %8 {offsets = [0, 16], sizes = [16, 16], strides = [1, 1]} : vector<16x64xf32> to vector<16x16xf32>
    %15 = vector.extract_strided_slice %8 {offsets = [0, 32], sizes = [16, 16], strides = [1, 1]} : vector<16x64xf32> to vector<16x16xf32>
    %16 = vector.extract_strided_slice %8 {offsets = [0, 48], sizes = [16, 16], strides = [1, 1]} : vector<16x64xf32> to vector<16x16xf32>
    %17 = vector.shape_cast %13 : vector<16x16xf32> to vector<1x16x16xf32>
    %18 = vector.shape_cast %14 : vector<16x16xf32> to vector<1x16x16xf32>
    %19 = vector.shape_cast %15 : vector<16x16xf32> to vector<1x16x16xf32>
    %20 = vector.shape_cast %16 : vector<16x16xf32> to vector<1x16x16xf32>
    %21 = tpu.concatenate %17, %18, %19, %20 in 0 : vector<1x16x16xf32>, vector<1x16x16xf32>, vector<1x16x16xf32>, vector<1x16x16xf32> -> vector<4x16x16xf32>
    %22 = vector.extract_strided_slice %9 {offsets = [0, 0], sizes = [16, 16], strides = [1, 1]} : vector<16x64xf32> to vector<16x16xf32>
    %23 = vector.extract_strided_slice %9 {offsets = [0, 16], sizes = [16, 16], strides = [1, 1]} : vector<16x64xf32> to vector<16x16xf32>
    %24 = vector.extract_strided_slice %9 {offsets = [0, 32], sizes = [16, 16], strides = [1, 1]} : vector<16x64xf32> to vector<16x16xf32>
    %25 = vector.extract_strided_slice %9 {offsets = [0, 48], sizes = [16, 16], strides = [1, 1]} : vector<16x64xf32> to vector<16x16xf32>
    %26 = vector.shape_cast %22 : vector<16x16xf32> to vector<1x16x16xf32>
    %27 = vector.shape_cast %23 : vector<16x16xf32> to vector<1x16x16xf32>
    %28 = vector.shape_cast %24 : vector<16x16xf32> to vector<1x16x16xf32>
    %29 = vector.shape_cast %25 : vector<16x16xf32> to vector<1x16x16xf32>
    %30 = tpu.concatenate %26, %27, %28, %29 in 0 : vector<1x16x16xf32>, vector<1x16x16xf32>, vector<1x16x16xf32>, vector<1x16x16xf32> -> vector<4x16x16xf32>
    %31 = vector.extract_strided_slice %10 {offsets = [0, 0], sizes = [16, 16], strides = [1, 1]} : vector<16x64xf32> to vector<16x16xf32>
    %32 = vector.extract_strided_slice %10 {offsets = [0, 16], sizes = [16, 16], strides = [1, 1]} : vector<16x64xf32> to vector<16x16xf32>
    %33 = vector.extract_strided_slice %10 {offsets = [0, 32], sizes = [16, 16], strides = [1, 1]} : vector<16x64xf32> to vector<16x16xf32>
    %34 = vector.extract_strided_slice %10 {offsets = [0, 48], sizes = [16, 16], strides = [1, 1]} : vector<16x64xf32> to vector<16x16xf32>
    %35 = vector.shape_cast %31 : vector<16x16xf32> to vector<1x16x16xf32>
    %36 = vector.shape_cast %32 : vector<16x16xf32> to vector<1x16x16xf32>
    %37 = vector.shape_cast %33 : vector<16x16xf32> to vector<1x16x16xf32>
    %38 = vector.shape_cast %34 : vector<16x16xf32> to vector<1x16x16xf32>
    %39 = tpu.concatenate %35, %36, %37, %38 in 0 : vector<1x16x16xf32>, vector<1x16x16xf32>, vector<1x16x16xf32>, vector<1x16x16xf32> -> vector<4x16x16xf32>
    "tpu.trace_start"() <{level = 10 : i32, message = "hnd,hmd->hnm"}> : () -> ()
    %cst_11 = arith.constant dense<0.000000e+00> : vector<4x16x16xf32>
    %40 = tpu.matmul %21, %30, %cst_11 {dimension_numbers = #tpu.dot_dimension_numbers<[2], [2], [1], [1], [0, 0, 0, 1, 1, 1], [0], [0]>} : vector<4x16x16xf32>, vector<4x16x16xf32>, vector<4x16x16xf32> -> vector<4x16x16xf32>
    "tpu.trace_stop"() : () -> ()
    %41 = arith.addf %40, %12 : vector<4x16x16xf32>
    %cst_12 = arith.constant dense<0xFF800000> : vector<4x16xf32>
    %42 = vector.multi_reduction <maximumf>, %41, %cst_12 [2] : vector<4x16x16xf32> to vector<4x16xf32>
    %43 = vector.shape_cast %42 : vector<4x16xf32> to vector<4x16x1xf32>
    %44 = vector.broadcast %43 : vector<4x16x1xf32> to vector<4x16x16xf32>
    %45 = arith.subf %41, %44 : vector<4x16x16xf32>
    %46 = math.exp %45 : vector<4x16x16xf32>
    %cst_13 = arith.constant dense<0.000000e+00> : vector<4x16xf32>
    %47 = vector.multi_reduction <add>, %46, %cst_13 [2] : vector<4x16x16xf32> to vector<4x16xf32>
    %48 = vector.shape_cast %47 : vector<4x16xf32> to vector<4x16x1xf32>
    %49 = tpu.reciprocal %48 {approx = true} : vector<4x16x1xf32> -> vector<4x16x1xf32>
    %50 = vector.broadcast %49 : vector<4x16x1xf32> to vector<4x16x16xf32>
    %51 = arith.mulf %46, %50 : vector<4x16x16xf32>
    "tpu.trace_start"() <{level = 10 : i32, message = "hnm,hmd->hnd"}> : () -> ()
    %cst_14 = arith.constant dense<0.000000e+00> : vector<4x16x16xf32>
    %52 = tpu.matmul %51, %39, %cst_14 {dimension_numbers = #tpu.dot_dimension_numbers<[2], [1], [1], [2], [0, 0, 0, 1, 1, 2], [0], [0]>} : vector<4x16x16xf32>, vector<4x16x16xf32>, vector<4x16x16xf32> -> vector<4x16x16xf32>
    "tpu.trace_stop"() : () -> ()
    %53 = vector.extract_strided_slice %52 {offsets = [0, 0, 0], sizes = [1, 16, 16], strides = [1, 1, 1]} : vector<4x16x16xf32> to vector<1x16x16xf32>
    %54 = vector.shape_cast %53 : vector<1x16x16xf32> to vector<16x16xf32>
    %55 = vector.extract_strided_slice %52 {offsets = [1, 0, 0], sizes = [1, 16, 16], strides = [1, 1, 1]} : vector<4x16x16xf32> to vector<1x16x16xf32>
    %56 = vector.shape_cast %55 : vector<1x16x16xf32> to vector<16x16xf32>
    %57 = vector.extract_strided_slice %52 {offsets = [2, 0, 0], sizes = [1, 16, 16], strides = [1, 1, 1]} : vector<4x16x16xf32> to vector<1x16x16xf32>
    %58 = vector.shape_cast %57 : vector<1x16x16xf32> to vector<16x16xf32>
    %59 = vector.extract_strided_slice %52 {offsets = [3, 0, 0], sizes = [1, 16, 16], strides = [1, 1, 1]} : vector<4x16x16xf32> to vector<1x16x16xf32>
    %60 = vector.shape_cast %59 : vector<1x16x16xf32> to vector<16x16xf32>
    %61 = tpu.concatenate %54, %56, %58, %60 in 1 : vector<16x16xf32>, vector<16x16xf32>, vector<16x16xf32>, vector<16x16xf32> -> vector<16x64xf32>
    %c0_15 = arith.constant 0 : index
    %c0_16 = arith.constant 0 : index
    %62 = vector.load %arg10[%c0_15, %c0_16] : memref<64x64xf32, #tpu.memory_space<vmem>>, vector<64x64xf32>
    %cst_17 = arith.constant dense<0.000000e+00> : vector<16x64xf32>
    %63 = tpu.matmul %61, %62, %cst_17 {dimension_numbers = #tpu.dot_dimension_numbers<[1], [0], [0], [1], [0, 0, 1, 1], [], []>} : vector<16x64xf32>, vector<64x64xf32>, vector<16x64xf32> -> vector<16x64xf32>
    %c0_18 = arith.constant 0 : index
    %c0_19 = arith.constant 0 : index
    %64 = vector.load %arg11[%c0_18, %c0_19] : memref<1x64xf32, #tpu.memory_space<vmem>>, vector<1x64xf32>
    %65 = vector.broadcast %64 : vector<1x64xf32> to vector<16x64xf32>
    %66 = arith.addf %63, %65 : vector<16x64xf32>
    %67 = arith.addf %2, %66 : vector<16x64xf32>
    %c0_20 = arith.constant 0 : index
    %c0_21 = arith.constant 0 : index
    %68 = vector.load %arg24[%c0_20, %c0_21] : memref<3x64xf32, #tpu.memory_space<vmem>>, vector<1x64xf32>
    %c0_22 = arith.constant 0 : index
    %c0_23 = arith.constant 0 : index
    %69 = vector.load %arg25[%c0_22, %c0_23] : memref<3x64xf32, #tpu.memory_space<vmem>>, vector<1x64xf32>
    %cst_24 = arith.constant dense<0.000000e+00> : vector<16xf32>
    %70 = vector.multi_reduction <add>, %67, %cst_24 [1] : vector<16x64xf32> to vector<16xf32>
    %71 = vector.shape_cast %70 : vector<16xf32> to vector<16x1xf32>
    %cst_25 = arith.constant 6.400000e+01 : f32
    %72 = vector.broadcast %cst_25 : f32 to vector<16x1xf32>
    %73 = arith.divf %71, %72 : vector<16x1xf32>
    %74 = vector.broadcast %73 : vector<16x1xf32> to vector<16x64xf32>
    %75 = arith.subf %67, %74 : vector<16x64xf32>
    %76 = arith.mulf %75, %75 : vector<16x64xf32>
    %cst_26 = arith.constant dense<0.000000e+00> : vector<16xf32>
    %77 = vector.multi_reduction <add>, %76, %cst_26 [1] : vector<16x64xf32> to vector<16xf32>
    %78 = vector.shape_cast %77 : vector<16xf32> to vector<16x1xf32>
    %cst_27 = arith.constant 6.400000e+01 : f32
    %79 = vector.broadcast %cst_27 : f32 to vector<16x1xf32>
    %80 = arith.divf %78, %79 : vector<16x1xf32>
    %81 = vector.broadcast %73 : vector<16x1xf32> to vector<16x64xf32>
    %82 = arith.subf %67, %81 : vector<16x64xf32>
    %cst_28 = arith.constant 9.99999974E-6 : f32
    %83 = vector.broadcast %cst_28 : f32 to vector<16x1xf32>
    %84 = arith.addf %80, %83 : vector<16x1xf32>
    %85 = math.rsqrt %84 : vector<16x1xf32>
    %86 = vector.broadcast %85 : vector<16x1xf32> to vector<16x64xf32>
    %87 = arith.mulf %82, %86 : vector<16x64xf32>
    %88 = vector.broadcast %68 : vector<1x64xf32> to vector<16x64xf32>
    %89 = arith.mulf %87, %88 : vector<16x64xf32>
    %90 = vector.broadcast %69 : vector<1x64xf32> to vector<16x64xf32>
    %91 = arith.addf %89, %90 : vector<16x64xf32>
    %c0_29 = arith.constant 0 : index
    %c0_30 = arith.constant 0 : index
    %92 = vector.load %arg12[%c0_29, %c0_30] : memref<64x128xf32, #tpu.memory_space<vmem>>, vector<64x128xf32>
    %cst_31 = arith.constant dense<0.000000e+00> : vector<16x128xf32>
    %93 = tpu.matmul %91, %92, %cst_31 {dimension_numbers = #tpu.dot_dimension_numbers<[1], [0], [0], [1], [0, 0, 1, 1], [], []>} : vector<16x64xf32>, vector<64x128xf32>, vector<16x128xf32> -> vector<16x128xf32>
    %c0_32 = arith.constant 0 : index
    %c0_33 = arith.constant 0 : index
    %94 = vector.load %arg13[%c0_32, %c0_33] : memref<1x128xf32, #tpu.memory_space<vmem>>, vector<1x128xf32>
    %95 = vector.broadcast %94 : vector<1x128xf32> to vector<16x128xf32>
    %96 = arith.addf %93, %95 : vector<16x128xf32>
    %c0_34 = arith.constant 0 : index
    %c0_35 = arith.constant 0 : index
    %97 = vector.load %arg3[%c0_34, %c0_35] : memref<32x64xf32, #tpu.memory_space<vmem>>, vector<32x64xf32>
    %c0_36 = arith.constant 0 : index
    %c0_37 = arith.constant 0 : index
    %98 = vector.load %arg14[%c0_36, %c0_37] : memref<64x128xf32, #tpu.memory_space<vmem>>, vector<64x128xf32>
    %cst_38 = arith.constant dense<0.000000e+00> : vector<32x128xf32>
    %99 = tpu.matmul %97, %98, %cst_38 {dimension_numbers = #tpu.dot_dimension_numbers<[1], [0], [0], [1], [0, 0, 1, 1], [], []>} : vector<32x64xf32>, vector<64x128xf32>, vector<32x128xf32> -> vector<32x128xf32>
    %c0_39 = arith.constant 0 : index
    %c0_40 = arith.constant 0 : index
    %100 = vector.load %arg15[%c0_39, %c0_40] : memref<1x128xf32, #tpu.memory_space<vmem>>, vector<1x128xf32>
    %101 = vector.broadcast %100 : vector<1x128xf32> to vector<32x128xf32>
    %102 = arith.addf %99, %101 : vector<32x128xf32>
    %c0_41 = arith.constant 0 : index
    %c0_42 = arith.constant 0 : index
    %103 = vector.load %arg4[%c0_41, %c0_42] : memref<32x64xf32, #tpu.memory_space<vmem>>, vector<32x64xf32>
    %c0_43 = arith.constant 0 : index
    %c0_44 = arith.constant 0 : index
    %104 = vector.load %arg16[%c0_43, %c0_44] : memref<64x128xf32, #tpu.memory_space<vmem>>, vector<64x128xf32>
    %cst_45 = arith.constant dense<0.000000e+00> : vector<32x128xf32>
    %105 = tpu.matmul %103, %104, %cst_45 {dimension_numbers = #tpu.dot_dimension_numbers<[1], [0], [0], [1], [0, 0, 1, 1], [], []>} : vector<32x64xf32>, vector<64x128xf32>, vector<32x128xf32> -> vector<32x128xf32>
    %c0_46 = arith.constant 0 : index
    %c0_47 = arith.constant 0 : index
    %106 = vector.load %arg17[%c0_46, %c0_47] : memref<1x128xf32, #tpu.memory_space<vmem>>, vector<1x128xf32>
    %107 = vector.broadcast %106 : vector<1x128xf32> to vector<32x128xf32>
    %108 = arith.addf %105, %107 : vector<32x128xf32>
    %109 = vector.extract_strided_slice %96 {offsets = [0, 0], sizes = [16, 64], strides = [1, 1]} : vector<16x128xf32> to vector<16x64xf32>
    %110 = vector.extract_strided_slice %102 {offsets = [0, 0], sizes = [32, 64], strides = [1, 1]} : vector<32x128xf32> to vector<32x64xf32>
    %111 = vector.extract_strided_slice %102 {offsets = [0, 64], sizes = [32, 64], strides = [1, 1]} : vector<32x128xf32> to vector<32x64xf32>
    %c0_48 = arith.constant 0 : index
    %c0_49 = arith.constant 0 : index
    %c0_50 = arith.constant 0 : index
    %c0_51 = arith.constant 0 : index
    %112 = vector.load %arg6[%c0_48, %c0_49, %c0_50, %c0_51] : memref<1x4x16x32xf32, #tpu.memory_space<vmem>>, vector<1x4x16x32xf32>
    %113 = vector.shape_cast %112 : vector<1x4x16x32xf32> to vector<4x16x32xf32>
    %114 = vector.extract_strided_slice %109 {offsets = [0, 0], sizes = [16, 16], strides = [1, 1]} : vector<16x64xf32> to vector<16x16xf32>
    %115 = vector.extract_strided_slice %109 {offsets = [0, 16], sizes = [16, 16], strides = [1, 1]} : vector<16x64xf32> to vector<16x16xf32>
    %116 = vector.extract_strided_slice %109 {offsets = [0, 32], sizes = [16, 16], strides = [1, 1]} : vector<16x64xf32> to vector<16x16xf32>
    %117 = vector.extract_strided_slice %109 {offsets = [0, 48], sizes = [16, 16], strides = [1, 1]} : vector<16x64xf32> to vector<16x16xf32>
    %118 = vector.shape_cast %114 : vector<16x16xf32> to vector<1x16x16xf32>
    %119 = vector.shape_cast %115 : vector<16x16xf32> to vector<1x16x16xf32>
    %120 = vector.shape_cast %116 : vector<16x16xf32> to vector<1x16x16xf32>
    %121 = vector.shape_cast %117 : vector<16x16xf32> to vector<1x16x16xf32>
    %122 = tpu.concatenate %118, %119, %120, %121 in 0 : vector<1x16x16xf32>, vector<1x16x16xf32>, vector<1x16x16xf32>, vector<1x16x16xf32> -> vector<4x16x16xf32>
    %123 = vector.extract_strided_slice %110 {offsets = [0, 0], sizes = [32, 16], strides = [1, 1]} : vector<32x64xf32> to vector<32x16xf32>
    %124 = vector.extract_strided_slice %110 {offsets = [0, 16], sizes = [32, 16], strides = [1, 1]} : vector<32x64xf32> to vector<32x16xf32>
    %125 = vector.extract_strided_slice %110 {offsets = [0, 32], sizes = [32, 16], strides = [1, 1]} : vector<32x64xf32> to vector<32x16xf32>
    %126 = vector.extract_strided_slice %110 {offsets = [0, 48], sizes = [32, 16], strides = [1, 1]} : vector<32x64xf32> to vector<32x16xf32>
    %127 = vector.shape_cast %123 : vector<32x16xf32> to vector<1x32x16xf32>
    %128 = vector.shape_cast %124 : vector<32x16xf32> to vector<1x32x16xf32>
    %129 = vector.shape_cast %125 : vector<32x16xf32> to vector<1x32x16xf32>
    %130 = vector.shape_cast %126 : vector<32x16xf32> to vector<1x32x16xf32>
    %131 = tpu.concatenate %127, %128, %129, %130 in 0 : vector<1x32x16xf32>, vector<1x32x16xf32>, vector<1x32x16xf32>, vector<1x32x16xf32> -> vector<4x32x16xf32>
    %132 = vector.extract_strided_slice %111 {offsets = [0, 0], sizes = [32, 16], strides = [1, 1]} : vector<32x64xf32> to vector<32x16xf32>
    %133 = vector.extract_strided_slice %111 {offsets = [0, 16], sizes = [32, 16], strides = [1, 1]} : vector<32x64xf32> to vector<32x16xf32>
    %134 = vector.extract_strided_slice %111 {offsets = [0, 32], sizes = [32, 16], strides = [1, 1]} : vector<32x64xf32> to vector<32x16xf32>
    %135 = vector.extract_strided_slice %111 {offsets = [0, 48], sizes = [32, 16], strides = [1, 1]} : vector<32x64xf32> to vector<32x16xf32>
    %136 = vector.shape_cast %132 : vector<32x16xf32> to vector<1x32x16xf32>
    %137 = vector.shape_cast %133 : vector<32x16xf32> to vector<1x32x16xf32>
    %138 = vector.shape_cast %134 : vector<32x16xf32> to vector<1x32x16xf32>
    %139 = vector.shape_cast %135 : vector<32x16xf32> to vector<1x32x16xf32>
    %140 = tpu.concatenate %136, %137, %138, %139 in 0 : vector<1x32x16xf32>, vector<1x32x16xf32>, vector<1x32x16xf32>, vector<1x32x16xf32> -> vector<4x32x16xf32>
    "tpu.trace_start"() <{level = 10 : i32, message = "hnd,hmd->hnm"}> : () -> ()
    %cst_52 = arith.constant dense<0.000000e+00> : vector<4x16x32xf32>
    %141 = tpu.matmul %122, %131, %cst_52 {dimension_numbers = #tpu.dot_dimension_numbers<[2], [2], [1], [1], [0, 0, 0, 1, 1, 1], [0], [0]>} : vector<4x16x16xf32>, vector<4x32x16xf32>, vector<4x16x32xf32> -> vector<4x16x32xf32>
    "tpu.trace_stop"() : () -> ()
    %142 = arith.addf %141, %113 : vector<4x16x32xf32>
    %cst_53 = arith.constant dense<0xFF800000> : vector<4x16xf32>
    %143 = vector.multi_reduction <maximumf>, %142, %cst_53 [2] : vector<4x16x32xf32> to vector<4x16xf32>
    %144 = vector.shape_cast %143 : vector<4x16xf32> to vector<4x16x1xf32>
    %145 = vector.broadcast %144 : vector<4x16x1xf32> to vector<4x16x32xf32>
    %146 = arith.subf %142, %145 : vector<4x16x32xf32>
    %147 = math.exp %146 : vector<4x16x32xf32>
    %cst_54 = arith.constant dense<0.000000e+00> : vector<4x16xf32>
    %148 = vector.multi_reduction <add>, %147, %cst_54 [2] : vector<4x16x32xf32> to vector<4x16xf32>
    %149 = vector.shape_cast %148 : vector<4x16xf32> to vector<4x16x1xf32>
    %150 = tpu.reciprocal %149 {approx = true} : vector<4x16x1xf32> -> vector<4x16x1xf32>
    %151 = vector.broadcast %150 : vector<4x16x1xf32> to vector<4x16x32xf32>
    %152 = arith.mulf %147, %151 : vector<4x16x32xf32>
    "tpu.trace_start"() <{level = 10 : i32, message = "hnm,hmd->hnd"}> : () -> ()
    %cst_55 = arith.constant dense<0.000000e+00> : vector<4x16x16xf32>
    %153 = tpu.matmul %152, %140, %cst_55 {dimension_numbers = #tpu.dot_dimension_numbers<[2], [1], [1], [2], [0, 0, 0, 1, 1, 2], [0], [0]>} : vector<4x16x32xf32>, vector<4x32x16xf32>, vector<4x16x16xf32> -> vector<4x16x16xf32>
    "tpu.trace_stop"() : () -> ()
    %154 = vector.extract_strided_slice %153 {offsets = [0, 0, 0], sizes = [1, 16, 16], strides = [1, 1, 1]} : vector<4x16x16xf32> to vector<1x16x16xf32>
    %155 = vector.shape_cast %154 : vector<1x16x16xf32> to vector<16x16xf32>
    %156 = vector.extract_strided_slice %153 {offsets = [1, 0, 0], sizes = [1, 16, 16], strides = [1, 1, 1]} : vector<4x16x16xf32> to vector<1x16x16xf32>
    %157 = vector.shape_cast %156 : vector<1x16x16xf32> to vector<16x16xf32>
    %158 = vector.extract_strided_slice %153 {offsets = [2, 0, 0], sizes = [1, 16, 16], strides = [1, 1, 1]} : vector<4x16x16xf32> to vector<1x16x16xf32>
    %159 = vector.shape_cast %158 : vector<1x16x16xf32> to vector<16x16xf32>
    %160 = vector.extract_strided_slice %153 {offsets = [3, 0, 0], sizes = [1, 16, 16], strides = [1, 1, 1]} : vector<4x16x16xf32> to vector<1x16x16xf32>
    %161 = vector.shape_cast %160 : vector<1x16x16xf32> to vector<16x16xf32>
    %162 = tpu.concatenate %155, %157, %159, %161 in 1 : vector<16x16xf32>, vector<16x16xf32>, vector<16x16xf32>, vector<16x16xf32> -> vector<16x64xf32>
    %163 = vector.extract_strided_slice %96 {offsets = [0, 64], sizes = [16, 64], strides = [1, 1]} : vector<16x128xf32> to vector<16x64xf32>
    %164 = vector.extract_strided_slice %108 {offsets = [0, 0], sizes = [32, 64], strides = [1, 1]} : vector<32x128xf32> to vector<32x64xf32>
    %165 = vector.extract_strided_slice %108 {offsets = [0, 64], sizes = [32, 64], strides = [1, 1]} : vector<32x128xf32> to vector<32x64xf32>
    %c0_56 = arith.constant 0 : index
    %c0_57 = arith.constant 0 : index
    %c0_58 = arith.constant 0 : index
    %c0_59 = arith.constant 0 : index
    %166 = vector.load %arg7[%c0_56, %c0_57, %c0_58, %c0_59] : memref<1x4x16x32xf32, #tpu.memory_space<vmem>>, vector<1x4x16x32xf32>
    %167 = vector.shape_cast %166 : vector<1x4x16x32xf32> to vector<4x16x32xf32>
    %168 = vector.extract_strided_slice %163 {offsets = [0, 0], sizes = [16, 16], strides = [1, 1]} : vector<16x64xf32> to vector<16x16xf32>
    %169 = vector.extract_strided_slice %163 {offsets = [0, 16], sizes = [16, 16], strides = [1, 1]} : vector<16x64xf32> to vector<16x16xf32>
    %170 = vector.extract_strided_slice %163 {offsets = [0, 32], sizes = [16, 16], strides = [1, 1]} : vector<16x64xf32> to vector<16x16xf32>
    %171 = vector.extract_strided_slice %163 {offsets = [0, 48], sizes = [16, 16], strides = [1, 1]} : vector<16x64xf32> to vector<16x16xf32>
    %172 = vector.shape_cast %168 : vector<16x16xf32> to vector<1x16x16xf32>
    %173 = vector.shape_cast %169 : vector<16x16xf32> to vector<1x16x16xf32>
    %174 = vector.shape_cast %170 : vector<16x16xf32> to vector<1x16x16xf32>
    %175 = vector.shape_cast %171 : vector<16x16xf32> to vector<1x16x16xf32>
    %176 = tpu.concatenate %172, %173, %174, %175 in 0 : vector<1x16x16xf32>, vector<1x16x16xf32>, vector<1x16x16xf32>, vector<1x16x16xf32> -> vector<4x16x16xf32>
    %177 = vector.extract_strided_slice %164 {offsets = [0, 0], sizes = [32, 16], strides = [1, 1]} : vector<32x64xf32> to vector<32x16xf32>
    %178 = vector.extract_strided_slice %164 {offsets = [0, 16], sizes = [32, 16], strides = [1, 1]} : vector<32x64xf32> to vector<32x16xf32>
    %179 = vector.extract_strided_slice %164 {offsets = [0, 32], sizes = [32, 16], strides = [1, 1]} : vector<32x64xf32> to vector<32x16xf32>
    %180 = vector.extract_strided_slice %164 {offsets = [0, 48], sizes = [32, 16], strides = [1, 1]} : vector<32x64xf32> to vector<32x16xf32>
    %181 = vector.shape_cast %177 : vector<32x16xf32> to vector<1x32x16xf32>
    %182 = vector.shape_cast %178 : vector<32x16xf32> to vector<1x32x16xf32>
    %183 = vector.shape_cast %179 : vector<32x16xf32> to vector<1x32x16xf32>
    %184 = vector.shape_cast %180 : vector<32x16xf32> to vector<1x32x16xf32>
    %185 = tpu.concatenate %181, %182, %183, %184 in 0 : vector<1x32x16xf32>, vector<1x32x16xf32>, vector<1x32x16xf32>, vector<1x32x16xf32> -> vector<4x32x16xf32>
    %186 = vector.extract_strided_slice %165 {offsets = [0, 0], sizes = [32, 16], strides = [1, 1]} : vector<32x64xf32> to vector<32x16xf32>
    %187 = vector.extract_strided_slice %165 {offsets = [0, 16], sizes = [32, 16], strides = [1, 1]} : vector<32x64xf32> to vector<32x16xf32>
    %188 = vector.extract_strided_slice %165 {offsets = [0, 32], sizes = [32, 16], strides = [1, 1]} : vector<32x64xf32> to vector<32x16xf32>
    %189 = vector.extract_strided_slice %165 {offsets = [0, 48], sizes = [32, 16], strides = [1, 1]} : vector<32x64xf32> to vector<32x16xf32>
    %190 = vector.shape_cast %186 : vector<32x16xf32> to vector<1x32x16xf32>
    %191 = vector.shape_cast %187 : vector<32x16xf32> to vector<1x32x16xf32>
    %192 = vector.shape_cast %188 : vector<32x16xf32> to vector<1x32x16xf32>
    %193 = vector.shape_cast %189 : vector<32x16xf32> to vector<1x32x16xf32>
    %194 = tpu.concatenate %190, %191, %192, %193 in 0 : vector<1x32x16xf32>, vector<1x32x16xf32>, vector<1x32x16xf32>, vector<1x32x16xf32> -> vector<4x32x16xf32>
    "tpu.trace_start"() <{level = 10 : i32, message = "hnd,hmd->hnm"}> : () -> ()
    %cst_60 = arith.constant dense<0.000000e+00> : vector<4x16x32xf32>
    %195 = tpu.matmul %176, %185, %cst_60 {dimension_numbers = #tpu.dot_dimension_numbers<[2], [2], [1], [1], [0, 0, 0, 1, 1, 1], [0], [0]>} : vector<4x16x16xf32>, vector<4x32x16xf32>, vector<4x16x32xf32> -> vector<4x16x32xf32>
    "tpu.trace_stop"() : () -> ()
    %196 = arith.addf %195, %167 : vector<4x16x32xf32>
    %cst_61 = arith.constant dense<0xFF800000> : vector<4x16xf32>
    %197 = vector.multi_reduction <maximumf>, %196, %cst_61 [2] : vector<4x16x32xf32> to vector<4x16xf32>
    %198 = vector.shape_cast %197 : vector<4x16xf32> to vector<4x16x1xf32>
    %199 = vector.broadcast %198 : vector<4x16x1xf32> to vector<4x16x32xf32>
    %200 = arith.subf %196, %199 : vector<4x16x32xf32>
    %201 = math.exp %200 : vector<4x16x32xf32>
    %cst_62 = arith.constant dense<0.000000e+00> : vector<4x16xf32>
    %202 = vector.multi_reduction <add>, %201, %cst_62 [2] : vector<4x16x32xf32> to vector<4x16xf32>
    %203 = vector.shape_cast %202 : vector<4x16xf32> to vector<4x16x1xf32>
    %204 = tpu.reciprocal %203 {approx = true} : vector<4x16x1xf32> -> vector<4x16x1xf32>
    %205 = vector.broadcast %204 : vector<4x16x1xf32> to vector<4x16x32xf32>
    %206 = arith.mulf %201, %205 : vector<4x16x32xf32>
    "tpu.trace_start"() <{level = 10 : i32, message = "hnm,hmd->hnd"}> : () -> ()
    %cst_63 = arith.constant dense<0.000000e+00> : vector<4x16x16xf32>
    %207 = tpu.matmul %206, %194, %cst_63 {dimension_numbers = #tpu.dot_dimension_numbers<[2], [1], [1], [2], [0, 0, 0, 1, 1, 2], [0], [0]>} : vector<4x16x32xf32>, vector<4x32x16xf32>, vector<4x16x16xf32> -> vector<4x16x16xf32>
    "tpu.trace_stop"() : () -> ()
    %208 = vector.extract_strided_slice %207 {offsets = [0, 0, 0], sizes = [1, 16, 16], strides = [1, 1, 1]} : vector<4x16x16xf32> to vector<1x16x16xf32>
    %209 = vector.shape_cast %208 : vector<1x16x16xf32> to vector<16x16xf32>
    %210 = vector.extract_strided_slice %207 {offsets = [1, 0, 0], sizes = [1, 16, 16], strides = [1, 1, 1]} : vector<4x16x16xf32> to vector<1x16x16xf32>
    %211 = vector.shape_cast %210 : vector<1x16x16xf32> to vector<16x16xf32>
    %212 = vector.extract_strided_slice %207 {offsets = [2, 0, 0], sizes = [1, 16, 16], strides = [1, 1, 1]} : vector<4x16x16xf32> to vector<1x16x16xf32>
    %213 = vector.shape_cast %212 : vector<1x16x16xf32> to vector<16x16xf32>
    %214 = vector.extract_strided_slice %207 {offsets = [3, 0, 0], sizes = [1, 16, 16], strides = [1, 1, 1]} : vector<4x16x16xf32> to vector<1x16x16xf32>
    %215 = vector.shape_cast %214 : vector<1x16x16xf32> to vector<16x16xf32>
    %216 = tpu.concatenate %209, %211, %213, %215 in 1 : vector<16x16xf32>, vector<16x16xf32>, vector<16x16xf32>, vector<16x16xf32> -> vector<16x64xf32>
    %217 = tpu.concatenate %162, %216 in 1 : vector<16x64xf32>, vector<16x64xf32> -> vector<16x128xf32>
    %c0_64 = arith.constant 0 : index
    %c0_65 = arith.constant 0 : index
    %218 = vector.load %arg18[%c0_64, %c0_65] : memref<128x64xf32, #tpu.memory_space<vmem>>, vector<128x64xf32>
    %cst_66 = arith.constant dense<0.000000e+00> : vector<16x64xf32>
    %219 = tpu.matmul %217, %218, %cst_66 {dimension_numbers = #tpu.dot_dimension_numbers<[1], [0], [0], [1], [0, 0, 1, 1], [], []>} : vector<16x128xf32>, vector<128x64xf32>, vector<16x64xf32> -> vector<16x64xf32>
    %c0_67 = arith.constant 0 : index
    %c0_68 = arith.constant 0 : index
    %220 = vector.load %arg19[%c0_67, %c0_68] : memref<1x64xf32, #tpu.memory_space<vmem>>, vector<1x64xf32>
    %221 = vector.broadcast %220 : vector<1x64xf32> to vector<16x64xf32>
    %222 = arith.addf %219, %221 : vector<16x64xf32>
    %223 = arith.addf %91, %222 : vector<16x64xf32>
    %c1 = arith.constant 1 : index
    %c0_69 = arith.constant 0 : index
    %224 = vector.load %arg24[%c1, %c0_69] : memref<3x64xf32, #tpu.memory_space<vmem>>, vector<1x64xf32>
    %c1_70 = arith.constant 1 : index
    %c0_71 = arith.constant 0 : index
    %225 = vector.load %arg25[%c1_70, %c0_71] : memref<3x64xf32, #tpu.memory_space<vmem>>, vector<1x64xf32>
    %cst_72 = arith.constant dense<0.000000e+00> : vector<16xf32>
    %226 = vector.multi_reduction <add>, %223, %cst_72 [1] : vector<16x64xf32> to vector<16xf32>
    %227 = vector.shape_cast %226 : vector<16xf32> to vector<16x1xf32>
    %cst_73 = arith.constant 6.400000e+01 : f32
    %228 = vector.broadcast %cst_73 : f32 to vector<16x1xf32>
    %229 = arith.divf %227, %228 : vector<16x1xf32>
    %230 = vector.broadcast %229 : vector<16x1xf32> to vector<16x64xf32>
    %231 = arith.subf %223, %230 : vector<16x64xf32>
    %232 = arith.mulf %231, %231 : vector<16x64xf32>
    %cst_74 = arith.constant dense<0.000000e+00> : vector<16xf32>
    %233 = vector.multi_reduction <add>, %232, %cst_74 [1] : vector<16x64xf32> to vector<16xf32>
    %234 = vector.shape_cast %233 : vector<16xf32> to vector<16x1xf32>
    %cst_75 = arith.constant 6.400000e+01 : f32
    %235 = vector.broadcast %cst_75 : f32 to vector<16x1xf32>
    %236 = arith.divf %234, %235 : vector<16x1xf32>
    %237 = vector.broadcast %229 : vector<16x1xf32> to vector<16x64xf32>
    %238 = arith.subf %223, %237 : vector<16x64xf32>
    %cst_76 = arith.constant 9.99999974E-6 : f32
    %239 = vector.broadcast %cst_76 : f32 to vector<16x1xf32>
    %240 = arith.addf %236, %239 : vector<16x1xf32>
    %241 = math.rsqrt %240 : vector<16x1xf32>
    %242 = vector.broadcast %241 : vector<16x1xf32> to vector<16x64xf32>
    %243 = arith.mulf %238, %242 : vector<16x64xf32>
    %244 = vector.broadcast %224 : vector<1x64xf32> to vector<16x64xf32>
    %245 = arith.mulf %243, %244 : vector<16x64xf32>
    %246 = vector.broadcast %225 : vector<1x64xf32> to vector<16x64xf32>
    %247 = arith.addf %245, %246 : vector<16x64xf32>
    %c0_77 = arith.constant 0 : index
    %c0_78 = arith.constant 0 : index
    %248 = vector.load %arg20[%c0_77, %c0_78] : memref<64x128xf32, #tpu.memory_space<vmem>>, vector<64x128xf32>
    %cst_79 = arith.constant dense<0.000000e+00> : vector<16x128xf32>
    %249 = tpu.matmul %247, %248, %cst_79 {dimension_numbers = #tpu.dot_dimension_numbers<[1], [0], [0], [1], [0, 0, 1, 1], [], []>} : vector<16x64xf32>, vector<64x128xf32>, vector<16x128xf32> -> vector<16x128xf32>
    %c0_80 = arith.constant 0 : index
    %c0_81 = arith.constant 0 : index
    %250 = vector.load %arg21[%c0_80, %c0_81] : memref<1x128xf32, #tpu.memory_space<vmem>>, vector<1x128xf32>
    %251 = vector.broadcast %250 : vector<1x128xf32> to vector<16x128xf32>
    %252 = arith.addf %249, %251 : vector<16x128xf32>
    %cst_82 = arith.constant 0.000000e+00 : f32
    %253 = vector.broadcast %cst_82 : f32 to vector<16x128xf32>
    %254 = arith.maximumf %252, %253 : vector<16x128xf32>
    %c0_83 = arith.constant 0 : index
    %c0_84 = arith.constant 0 : index
    %255 = vector.load %arg22[%c0_83, %c0_84] : memref<128x64xf32, #tpu.memory_space<vmem>>, vector<128x64xf32>
    %cst_85 = arith.constant dense<0.000000e+00> : vector<16x64xf32>
    %256 = tpu.matmul %254, %255, %cst_85 {dimension_numbers = #tpu.dot_dimension_numbers<[1], [0], [0], [1], [0, 0, 1, 1], [], []>} : vector<16x128xf32>, vector<128x64xf32>, vector<16x64xf32> -> vector<16x64xf32>
    %c0_86 = arith.constant 0 : index
    %c0_87 = arith.constant 0 : index
    %257 = vector.load %arg23[%c0_86, %c0_87] : memref<1x64xf32, #tpu.memory_space<vmem>>, vector<1x64xf32>
    %258 = vector.broadcast %257 : vector<1x64xf32> to vector<16x64xf32>
    %259 = arith.addf %256, %258 : vector<16x64xf32>
    %260 = arith.addf %247, %259 : vector<16x64xf32>
    %c2 = arith.constant 2 : index
    %c0_88 = arith.constant 0 : index
    %261 = vector.load %arg24[%c2, %c0_88] : memref<3x64xf32, #tpu.memory_space<vmem>>, vector<1x64xf32>
    %c2_89 = arith.constant 2 : index
    %c0_90 = arith.constant 0 : index
    %262 = vector.load %arg25[%c2_89, %c0_90] : memref<3x64xf32, #tpu.memory_space<vmem>>, vector<1x64xf32>
    %cst_91 = arith.constant dense<0.000000e+00> : vector<16xf32>
    %263 = vector.multi_reduction <add>, %260, %cst_91 [1] : vector<16x64xf32> to vector<16xf32>
    %264 = vector.shape_cast %263 : vector<16xf32> to vector<16x1xf32>
    %cst_92 = arith.constant 6.400000e+01 : f32
    %265 = vector.broadcast %cst_92 : f32 to vector<16x1xf32>
    %266 = arith.divf %264, %265 : vector<16x1xf32>
    %267 = vector.broadcast %266 : vector<16x1xf32> to vector<16x64xf32>
    %268 = arith.subf %260, %267 : vector<16x64xf32>
    %269 = arith.mulf %268, %268 : vector<16x64xf32>
    %cst_93 = arith.constant dense<0.000000e+00> : vector<16xf32>
    %270 = vector.multi_reduction <add>, %269, %cst_93 [1] : vector<16x64xf32> to vector<16xf32>
    %271 = vector.shape_cast %270 : vector<16xf32> to vector<16x1xf32>
    %cst_94 = arith.constant 6.400000e+01 : f32
    %272 = vector.broadcast %cst_94 : f32 to vector<16x1xf32>
    %273 = arith.divf %271, %272 : vector<16x1xf32>
    %274 = vector.broadcast %266 : vector<16x1xf32> to vector<16x64xf32>
    %275 = arith.subf %260, %274 : vector<16x64xf32>
    %cst_95 = arith.constant 9.99999974E-6 : f32
    %276 = vector.broadcast %cst_95 : f32 to vector<16x1xf32>
    %277 = arith.addf %273, %276 : vector<16x1xf32>
    %278 = math.rsqrt %277 : vector<16x1xf32>
    %279 = vector.broadcast %278 : vector<16x1xf32> to vector<16x64xf32>
    %280 = arith.mulf %275, %279 : vector<16x64xf32>
    %281 = vector.broadcast %261 : vector<1x64xf32> to vector<16x64xf32>
    %282 = arith.mulf %280, %281 : vector<16x64xf32>
    %283 = vector.broadcast %262 : vector<1x64xf32> to vector<16x64xf32>
    %284 = arith.addf %282, %283 : vector<16x64xf32>
    %c0_96 = arith.constant 0 : index
    %c0_97 = arith.constant 0 : index
    %285 = vector.load %arg26[%c0_96, %c0_97] : memref<16x64xf32, #tpu.memory_space<vmem>>, vector<16x64xf32>
    tpu.vector_store %arg26[%c0_96, %c0_97], %284 {strides = array<i32>} : memref<16x64xf32, #tpu.memory_space<vmem>>, vector<16x64xf32>,
    return
  }
  func.func @transform_0(%arg0: i32) -> (i32, i32) {
    %c0_i32 = arith.constant 0 : i32
    %c0_i32_0 = arith.constant 0 : i32
    return %arg0, %c0_i32 : i32, i32
  }
  func.func @transform_1(%arg0: i32) -> (i32, i32) {
    %c0_i32 = arith.constant 0 : i32
    %c0_i32_0 = arith.constant 0 : i32
    return %arg0, %c0_i32 : i32, i32
  }
  func.func @transform_2(%arg0: i32) -> (i32, i32) {
    %c0_i32 = arith.constant 0 : i32
    %c0_i32_0 = arith.constant 0 : i32
    return %arg0, %c0_i32 : i32, i32
  }
  func.func @transform_3(%arg0: i32) -> (i32, i32) {
    %c0_i32 = arith.constant 0 : i32
    %c0_i32_0 = arith.constant 0 : i32
    return %arg0, %c0_i32 : i32, i32
  }
  func.func @transform_4(%arg0: i32) -> (i32, i32, i32, i32) {
    %c0_i32 = arith.constant 0 : i32
    %c0_i32_0 = arith.constant 0 : i32
    %c0_i32_1 = arith.constant 0 : i32
    %c0_i32_2 = arith.constant 0 : i32
    return %arg0, %c0_i32, %c0_i32_0, %c0_i32_1 : i32, i32, i32, i32
  }
  func.func @transform_5(%arg0: i32) -> (i32, i32, i32, i32) {
    %c0_i32 = arith.constant 0 : i32
    %c0_i32_0 = arith.constant 0 : i32
    %c0_i32_1 = arith.constant 0 : i32
    %c0_i32_2 = arith.constant 0 : i32
    return %arg0, %c0_i32, %c0_i32_0, %c0_i32_1 : i32, i32, i32, i32
  }
  func.func @transform_6(%arg0: i32) -> (i32, i32, i32, i32) {
    %c0_i32 = arith.constant 0 : i32
    %c0_i32_0 = arith.constant 0 : i32
    %c0_i32_1 = arith.constant 0 : i32
    %c0_i32_2 = arith.constant 0 : i32
    return %arg0, %c0_i32, %c0_i32_0, %c0_i32_1 : i32, i32, i32, i32
  }
  func.func @transform_7(%arg0: i32) -> (i32, i32) {
    %c0_i32 = arith.constant 0 : i32
    %c0_i32_0 = arith.constant 0 : i32
    %c0_i32_1 = arith.constant 0 : i32
    return %c0_i32, %c0_i32_0 : i32, i32
  }
  func.func @transform_8(%arg0: i32) -> (i32, i32) {
    %c0_i32 = arith.constant 0 : i32
    %c0_i32_0 = arith.constant 0 : i32
    %c0_i32_1 = arith.constant 0 : i32
    return %c0_i32, %c0_i32_0 : i32, i32
  }
  func.func @transform_9(%arg0: i32) -> (i32, i32) {
    %c0_i32 = arith.constant 0 : i32
    %c0_i32_0 = arith.constant 0 : i32
    %c0_i32_1 = arith.constant 0 : i32
    return %c0_i32, %c0_i32_0 : i32, i32
  }
  func.func @transform_10(%arg0: i32) -> (i32, i32) {
    %c0_i32 = arith.constant 0 : i32
    %c0_i32_0 = arith.constant 0 : i32
    %c0_i32_1 = arith.constant 0 : i32
    return %c0_i32, %c0_i32_0 : i32, i32
  }
  func.func @transform_11(%arg0: i32) -> (i32, i32) {
    %c0_i32 = arith.constant 0 : i32
    %c0_i32_0 = arith.constant 0 : i32
    %c0_i32_1 = arith.constant 0 : i32
    return %c0_i32, %c0_i32_0 : i32, i32
  }
  func.func @transform_12(%arg0: i32) -> (i32, i32) {
    %c0_i32 = arith.constant 0 : i32
    %c0_i32_0 = arith.constant 0 : i32
    %c0_i32_1 = arith.constant 0 : i32
    return %c0_i32, %c0_i32_0 : i32, i32
  }
  func.func @transform_13(%arg0: i32) -> (i32, i32) {
    %c0_i32 = arith.constant 0 : i32
    %c0_i32_0 = arith.constant 0 : i32
    %c0_i32_1 = arith.constant 0 : i32
    return %c0_i32, %c0_i32_0 : i32, i32
  }
  func.func @transform_14(%arg0: i32) -> (i32, i32) {
    %c0_i32 = arith.constant 0 : i32
    %c0_i32_0 = arith.constant 0 : i32
    %c0_i32_1 = arith.constant 0 : i32
    return %c0_i32, %c0_i32_0 : i32, i32
  }
  func.func @transform_15(%arg0: i32) -> (i32, i32) {
    %c0_i32 = arith.constant 0 : i32
    %c0_i32_0 = arith.constant 0 : i32
    %c0_i32_1 = arith.constant 0 : i32
    return %c0_i32, %c0_i32_0 : i32, i32
  }
  func.func @transform_16(%arg0: i32) -> (i32, i32) {
    %c0_i32 = arith.constant 0 : i32
    %c0_i32_0 = arith.constant 0 : i32
    %c0_i32_1 = arith.constant 0 : i32
    return %c0_i32, %c0_i32_0 : i32, i32
  }
  func.func @transform_17(%arg0: i32) -> (i32, i32) {
    %c0_i32 = arith.constant 0 : i32
    %c0_i32_0 = arith.constant 0 : i32
    %c0_i32_1 = arith.constant 0 : i32
    return %c0_i32, %c0_i32_0 : i32, i32
  }
  func.func @transform_18(%arg0: i32) -> (i32, i32) {
    %c0_i32 = arith.constant 0 : i32
    %c0_i32_0 = arith.constant 0 : i32
    %c0_i32_1 = arith.constant 0 : i32
    return %c0_i32, %c0_i32_0 : i32, i32
  }
  func.func @transform_19(%arg0: i32) -> (i32, i32) {
    %c0_i32 = arith.constant 0 : i32
    %c0_i32_0 = arith.constant 0 : i32
    %c0_i32_1 = arith.constant 0 : i32
    return %c0_i32, %c0_i32_0 : i32, i32
  }
  func.func @transform_20(%arg0: i32) -> (i32, i32) {
    %c0_i32 = arith.constant 0 : i32
    %c0_i32_0 = arith.constant 0 : i32
    %c0_i32_1 = arith.constant 0 : i32
    return %c0_i32, %c0_i32_0 : i32, i32
  }
  func.func @transform_21(%arg0: i32) -> (i32, i32) {
    %c0_i32 = arith.constant 0 : i32
    %c0_i32_0 = arith.constant 0 : i32
    %c0_i32_1 = arith.constant 0 : i32
    return %c0_i32, %c0_i32_0 : i32, i32
  }
  func.func @transform_22(%arg0: i32) -> (i32, i32) {
    %c0_i32 = arith.constant 0 : i32
    %c0_i32_0 = arith.constant 0 : i32
    %c0_i32_1 = arith.constant 0 : i32
    return %c0_i32, %c0_i32_0 : i32, i32
  }
  func.func @transform_23(%arg0: i32) -> (i32, i32) {
    %c0_i32 = arith.constant 0 : i32
    %c0_i32_0 = arith.constant 0 : i32
    %c0_i32_1 = arith.constant 0 : i32
    return %c0_i32, %c0_i32_0 : i32, i32
  }
  func.func @transform_24(%arg0: i32) -> (i32, i32) {
    %c0_i32 = arith.constant 0 : i32
    %c0_i32_0 = arith.constant 0 : i32
    %c0_i32_1 = arith.constant 0 : i32
    return %c0_i32, %c0_i32_0 : i32, i32
  }
  func.func @transform_25(%arg0: i32) -> (i32, i32) {
    %c0_i32 = arith.constant 0 : i32
    %c0_i32_0 = arith.constant 0 : i32
    return %arg0, %c0_i32 : i32, i32
  }
}

</mosaic_0001>

<bundles_post_ra>
// kernel: tpu_custom_call.1
= control target key start
LH: loop header
LB: loop body
LE: loop exit
PB: predicated region body
PF: predicated region fallthrough
CT: control target
= control target key end

     0   :  { %s5643_s0 = inlined_call_operand.hbm [shape: f32[32,64], index: 0, kind: input, shape index: {}]   ;;  %s5644_s1 = inlined_call_operand.hbm [shape: f32[32,64], index: 1, kind: input, shape index: {}]   ;;  %s5645_s2 = inlined_call_operand.vmem [shape: f32[64,64], index: 2, kind: input, shape index: {}]   ;;  %s5646_s3 = inlined_call_operand.hbm [shape: f32[64,64], index: 3, kind: input, shape index: {}]   ;;  %s5647_s4 = inlined_call_operand.vmem [shape: f32[2,4,16,16], index: 4, kind: input, shape index: {}]   ;;  %s5648_s5 = inlined_call_operand.vmem [shape: f32[2,4,16,32], index: 5, kind: input, shape index: {}]   ;;  %s5649_s6 = inlined_call_operand.hbm [shape: f32[2,4,16,32], index: 6, kind: input, shape index: {}]   ;;  %s5650_s7 = inlined_call_operand.hbm [shape: f32[64,192], index: 7, kind: input, shape index: {}]   ;;  %s5651_s8 = inlined_call_operand.hbm [shape: f32[1,192], index: 8, kind: input, shape index: {}]   ;;  %s5652_s9 = inlined_call_operand.hbm [shape: f32[64,64], index: 9, kind: input, shape index: {}]   ;;  %s5653_s10 = inlined_call_operand.vmem [shape: f32[1,64], index: 10, kind: input, shape index: {}]   ;;  %s5654_s11 = inlined_call_operand.hbm [shape: f32[64,128], index: 11, kind: input, shape index: {}]   ;;  %s5655_s12 = inlined_call_operand.hbm [shape: f32[1,128], index: 12, kind: input, shape index: {}]   ;;  %s5656_s13 = inlined_call_operand.hbm [shape: f32[64,128], index: 13, kind: input, shape index: {}]   ;;  %s5657_s14 = inlined_call_operand.hbm [shape: f32[1,128], index: 14, kind: input, shape index: {}]   ;;  %s5658_s15 = inlined_call_operand.hbm [shape: f32[64,128], index: 15, kind: input, shape index: {}]   ;;  %s5659_s16 = inlined_call_operand.vmem [shape: f32[1,128], index: 16, kind: input, shape index: {}]   ;;  %s5660_s17 = inlined_call_operand.vmem [shape: f32[128,64], index: 17, kind: input, shape index: {}]   ;;  %s5661_s18 = inlined_call_operand.vmem [shape: f32[1,64], index: 18, kind: input, shape index: {}]   ;;  %s5662_s19 = inlined_call_operand.hbm [shape: f32[64,128], index: 19, kind: input, shape index: {}]   ;;  %s5663_s20 = inlined_call_operand.vmem [shape: f32[1,128], index: 20, kind: input, shape index: {}]   ;;  %s5664_s21 = inlined_call_operand.vmem [shape: f32[128,64], index: 21, kind: input, shape index: {}]   ;;  %s5665_s22 = inlined_call_operand.vmem [shape: f32[1,64], index: 22, kind: input, shape index: {}]   ;;  %s5666_s23 = inlined_call_operand.vmem [shape: f32[3,64], index: 23, kind: input, shape index: {}]   ;;  %s5667_s24 = inlined_call_operand.vmem [shape: f32[3,64], index: 24, kind: input, shape index: {}]   ;;  %s5668_s25 = inlined_call_operand.hbm [shape: f32[32,64], index: 25, kind: output, shape index: {}]  }
   0x1   :  { %5690 = sst [smem:[#allocation38_spill]] %s5643_s0 }
   0x2   :  { %5691 = sst [smem:[#allocation39_spill]] %s5644_s1 }
   0x3   :  { %5692 = sst [smem:[#allocation40_spill]] %s5645_s2 }
   0x4   :  { %5693 = sst [smem:[#allocation41_spill]] %s5646_s3 }
   0x5   :  { %5694 = sst [smem:[#allocation42_spill]] %s5647_s4 }
   0x6   :  { %5695 = sst [smem:[#allocation43_spill]] %s5648_s5 }
   0x7   :  { %5696 = sst [smem:[#allocation44_spill]] %s5649_s6 }
   0x8   :  { %5697 = sst [smem:[#allocation45_spill]] %s5650_s7 }
   0x9   :  { %5698 = sst [smem:[#allocation46_spill]] %s5651_s8 }
   0xa   :  { %5699 = sst [smem:[#allocation47_spill]] %s5652_s9 }
   0xb   :  { %5700 = sst [smem:[#allocation48_spill]] %s5654_s11 }
   0xc   :  { %5701 = sst [smem:[#allocation49_spill]] %s5655_s12 }
   0xd   :  { %5702 = sst [smem:[#allocation50_spill]] %s5656_s13 }
   0xe   :  { %5703 = sst [smem:[#allocation51_spill]] %s5657_s14 }
   0xf   :  { %5704 = sst [smem:[#allocation52_spill]] %s5658_s15 }
  0x10   :  { %5705 = sst [smem:[#allocation53_spill]] %s5660_s17 }
  0x11   :  { %5706 = sst [smem:[#allocation54_spill]] %s5661_s18 }
  0x12   :  { %5707 = sst [smem:[#allocation55_spill]] %s5662_s19 }
  0x13   :  { %5708 = sst [smem:[#allocation56_spill]] %s5663_s20 }
  0x14   :  { %5709 = sst [smem:[#allocation57_spill]] %s5664_s21 }
  0x15   :  { %5710 = sst [smem:[#allocation58_spill]] %s5665_s22 }
  0x16   :  { %5711 = sst [smem:[#allocation59_spill]] %s5668_s25 }
  0x17   :  { %30 = vsyncpa [#allocation3], 0 }
  0x18   :  { %32 = vsyncpa [#allocation3 + $0x1], 0 }
  0x19   :  { %33 = vsyncpa [#allocation6], 0 }
  0x1a   :  { %35 = vsyncpa [#allocation6 + $0x1], 0 }
  0x1b   :  { %36 = vsyncpa [#allocation9], 0 }
  0x1c   :  { %38 = vsyncpa [#allocation9 + $0x1], 0 }
  0x1d   :  { %39 = vsyncpa [#allocation12], 0 }
  0x1e   :  { %40 = vsyncpa [#allocation15], 0 }
  0x1f   :  { %41 = vsyncpa [#allocation18], 0 }
  0x20   :  { %42 = vsyncpa [#allocation21], 0 }
  0x21   :  { %43 = vsyncpa [#allocation4], 0 }
  0x22   :  { %45 = vsyncpa [#allocation4 + $0x1], 0  ;;  %s4537_s29 = smov 0   ;;  %s4539_s2 = smov 0  }
  0x23   :  { %s4541_s6 = smov 0   ;;  %s4543_s30 = smov 0  }
  0x24 LB: > { %5712 = sst [smem:[#allocation33_spill]] %s4370_s29  ;;  %s4561_s8 = sadd.s32 4294967295, %s4382_s30   ;;  %s4382_s30 = sphi %s4543_s30, %s5763_s30   ;;  %s4378_s6 = sphi %s4541_s6, %s5765_s6   ;;  %s4374_s2 = sphi %s4539_s2, %s5767_s2   ;;  %s4370_s29 = sphi %s4537_s29, %s5766_s29  }
  0x25   : > { %5713 = sst [smem:[#allocation34_spill]] %s4378_s6  ;;  %p3345_p0 = scmp.ge.s32.totalorder %s4382_s30, 1 }
  0x26   : > { %s5714_s26 = sld [smem:[#allocation45_spill]]  ;;  %p5684_p1 = scmp.eq.s32.totalorder %s4561_s8, 0 }
  0x27   : > { %p642_p2 = scmp.lt.s32.totalorder %s4382_s30, 3  ;;  %s4384_s4 = smov [#allocation10]  }
  0x28   : > { %s655_s28 = sshll.u32 %s4384_s4, 4  ;;  %s5716_s0 = sld [smem:[#allocation46_spill]]  ;;  %s656_s28 = int_to_ptr.vmem [resolvable:$true] %s655_s28 }
  0x29   : > { %p4566_p3 = pnand %p3345_p0, %p642_p2  ;;  %s4386_s4 = smov 256  }
  0x2a   : > { %s4387_s22 = smov 16   ;;  %s5718_s11 = sld [smem:[#allocation48_spill]] }
  0x2b   : > { %p3555_p4 = pneg %p4566_p3  ;;  %s4388_s20 = smov [#allocation14]  }
  0x2c   : > { %s653_s1 = sshll.u32 %s5714_s26, 4  ;;  %s4385_s26 = smov [#allocation11]   ;;  %s654_s1 = int_to_ptr.hbm [resolvable:$true] %s653_s1 }
  0x2d   : > { %p4578_p6 = pnand %p3555_p4, %p5684_p1  ;;  %s670_s25 = sshll.u32 %s4385_s26, 4  ;;  %s671_s25 = int_to_ptr.vmem [resolvable:$true] %s670_s25 }
  0x2e   : > { %s668_s7 = sshll.u32 %s5716_s0, 4  ;;  %s698_s21 = sshll.u32 %s4388_s20, 4  ;;  %s669_s7 = int_to_ptr.hbm [resolvable:$true] %s668_s7  ;;  %s699_s21 = int_to_ptr.vmem [resolvable:$true] %s698_s21 }
  0x2f   : > { %3558 = dma.hbm_to_vmem [thread:$0]  (!%p4578_p6), %s654_s1, 2048, %s656_s28, [#allocation9], %s4386_s4, %s4386_s4, %s4387_s22  }
  0x30   : > { %3561 = dma.hbm_to_vmem [thread:$0]  (!%p4578_p6), %s669_s7, 32, %s671_s25, [#allocation12]  }
  0x31   : > { %s696_s0 = sshll.u32 %s5718_s11, 4  ;;  %s5719_s13 = sld [smem:[#allocation50_spill]]  ;;  %s697_s0 = int_to_ptr.hbm [resolvable:$true] %s696_s0 }
  0x32   : > { %s5676_s22 = smov 128   ;;  %s5678_s1 = smov 8  }
  0x33   : > { %3567 = dma.hbm_to_vmem [thread:$0]  (!%p4578_p6), %s697_s0, 1024, %s699_s21, [#allocation15], %s5676_s22, %s5676_s22, %s5678_s1  }
  0x34   : > { %s4391_s20 = smov [#allocation17]   ;;  %s5720_s15 = sld [smem:[#allocation52_spill]] }
  0x35   : > { %s724_s25 = sshll.u32 %s4391_s20, 4  ;;  %s4392_s21 = smov [#allocation20]   ;;  %s725_s25 = int_to_ptr.vmem [resolvable:$true] %s724_s25 }
  0x36   : > { %s750_s7 = sshll.u32 %s4392_s21, 4  ;;  %s3344_s4 = sadd.s32 4294967294, %s4382_s30   ;;  %s751_s7 = int_to_ptr.vmem [resolvable:$true] %s750_s7 }
  0x37   : > { %s722_s26 = sshll.u32 %s5719_s13, 4  ;;  %s4612_s9 = sadd.s32 1, %s4382_s30   ;;  %s723_s26 = int_to_ptr.hbm [resolvable:$true] %s722_s26 }
  0x38   : > { %3573 = dma.hbm_to_vmem [thread:$0]  (!%p4578_p6), %s723_s26, 1024, %s725_s25, [#allocation18], %s5676_s22, %s5676_s22, %s5678_s1  }
  0x39   : > { %5721 = sst [smem:[#allocation35_spill]] %s4612_s9  ;;  %s58_s5 = sadd.s32 1, %s4378_s6 }
  0x3a   : > { %s748_s18 = sshll.u32 %s5720_s15, 4  ;;  %s55_s0 = ssub.s32 %s4382_s30, %s4612_s9  ;;  %s749_s18 = int_to_ptr.hbm [resolvable:$true] %s748_s18 }
  0x3b   : > { %3579 = dma.hbm_to_vmem [thread:$0]  (!%p4578_p6), %s749_s18, 1024, %s751_s7, [#allocation21], %s5676_s22, %s5676_s22, %s5678_s1  }
  0x3c   : > { %p65_p7 = scmp.ne.s32.totalorder %s4378_s6, %s4374_s2  ;;  %p56_p8 = scmp.eq.s32.totalorder %s55_s0, 0 }
  0x3d   : > { %p66_p9 = scmp.eq.s32.totalorder %s4382_s30, 0  ;;  %p71_p10 = scmp.ne.s32.totalorder %s4374_s2, %s4370_s29 }
  0x3e   : > { %p629_p11 = scmp.eq.s32.totalorder %s4561_s8, 1  ;;  %p635_p2 = scmp.eq.s32.totalorder %s3344_s4, 1 }
  0x3f   : > { %s4624_s26 = scalar_select %p56_p8, %s4378_s6, %s58_s5  }
  0x40   : > { %p67_p12 = por %p66_p9, %p65_p7  ;;  %p4628_p13 = por %p5684_p1, %p71_p10 }
  0x41   : > { %5722 = sst [smem:[#allocation36_spill]] %s4624_s26  ;;  %p4632_p0 = por %p629_p11, %p65_p7 }
  0x42   : > { %p3609_p4 = scmp.lt.s32.totalorder %s4382_s30, 2  ;;  %s4638_s28 = sand.u32 1, %s4378_s6  }
  0x43   : > { %p4640_p5 = por %p635_p2, %p71_p10  ;;  %s5683_s18 = sshll.u32 %s4638_s28, 4 }
  0x44   : > { %s5686_s21 = sshll.u32 %s4382_s30, 4  ;;  %p4646_p8 = pnand %p3609_p4, %p67_p12 }
  0x45   : > { %s5725_s17 = scalar_select %p4640_p5, 1, 0 }
  0x46   : > { %s5685_s5 = sand.u32 1, %s4382_s30   ;;  %s5728_s22 = sld [smem:[#allocation39_spill]] }
  0x47   : > { %5726 = sst [smem:[#allocation37_spill]] %s5725_s17  ;;  %s828_s11 = scalar_lea.vmem [#allocation5], %s5683_s18 }
  0x48   : > { %s836_s13 = sshll.u32 %s828_s11, 4  ;;  %s4660_s26 = scalar_lea.sflag [#allocation6], %s5685_s5  ;;  %s837_s13 = int_to_ptr.vmem [resolvable:$true] %s836_s13 }
  0x49   : > { %p4052_p9 = pneg %p4646_p8 }
  0x4c   : > { %s833_s1 = scalar_lea.hbm %s5728_s22, %s5686_s21  ;;  %s4055_s11 = scalar_lea.hbm %s5728_s22, 32 }
  0x4d   : > { %s834_s15 = sshll.u32 %s833_s1, 4  ;;  %s835_s15 = int_to_ptr.hbm [resolvable:$true] %s834_s15 }
  0x4e   : > { %s4048_s6 = sshra.s32 %s835_s15, 4  ;;  %s4049_s6 = int_to_ptr.hbm [resolvable:$true] %s4048_s6 }
  0x4f   : > { %s4050_s9 = scalar_lea.hbm %s4049_s6, 16  ;;  %p4056_p12 = scmp.lt.s32.totalorder %s4049_s6, %s5728_s22 }
  0x50   : > { %p4051_p7 = scmp.ne.s32.totalorder %s4049_s6, %s4050_s9  ;;  %p4057_p2 = scmp.lt.s32.totalorder %s4055_s11, %s4050_s9 }
  0x52   : > { %p4053_p10 = pnand %p4052_p9, %p4051_p7  ;;  %p4058_p4 = por %p4057_p2, %p4056_p12 }
  0x54   : > { %p4054_p11 = pneg %p4053_p10 }
  0x56   : > { %p4059_p1 = pnand %p4058_p4, %p4054_p11 }
  0x58   : > { %4062 = shalt.err (!%p4059_p1)
}
  0x59   : > { %s5729_s5 = smov 8   ;;  %s5730_s21 = smov 128  }
  0x5a   : > { %3589 = dma.hbm_to_vmem [thread:$0]  (!%p4646_p8), %s835_s15, 256, %s837_s13, %s4660_s26, %s5730_s21, %s5730_s21, %s5729_s5  }
  0x5b   : > { %s5731_s0 = sld [smem:[#allocation47_spill]]  ;;  %s4393_s18 = smov [#allocation13]  }
  0x5c   : > { %s681_s6 = sshll.u32 %s4393_s18, 4  ;;  %s5732_s12 = sld [smem:[#allocation49_spill]]  ;;  %s682_s6 = int_to_ptr.vmem [resolvable:$true] %s681_s6 }
  0x5d   : > { %s4394_s13 = smov [#allocation16]   ;;  %s5733_s14 = sld [smem:[#allocation51_spill]] }
  0x5e   : > { %s713_s15 = sshll.u32 %s4394_s13, 4  ;;  %s5734_s19 = sld [smem:[#allocation55_spill]]  ;;  %s714_s15 = int_to_ptr.vmem [resolvable:$true] %s713_s15 }
  0x5f   : > { %s4396_s13 = smov [#allocation22]   ;;  %s5736_s18 = sld [smem:[#allocation38_spill]] }
  0x60   : > { %s773_s17 = sshll.u32 %s4396_s13, 4  ;;  %s774_s17 = int_to_ptr.vmem [resolvable:$true] %s773_s17 }
  0x61   : > { %s679_s29 = sshll.u32 %s5731_s0, 4  ;;  %s680_s29 = int_to_ptr.hbm [resolvable:$true] %s679_s29 }
  0x62   : > { %s711_s1 = sshll.u32 %s5732_s12, 4  ;;  %s5737_s12 = sshll.u32 %s4638_s28, 4  ;;  %s712_s1 = int_to_ptr.hbm [resolvable:$true] %s711_s1 }
  0x63   : > { %3564 = dma.hbm_to_vmem [thread:$0]  (!%p4578_p6), %s680_s29, 1024, %s682_s6, [#allocation12], %s5730_s21, %s5730_s21, %s5729_s5  }
  0x64   : > { %s737_s0 = sshll.u32 %s5733_s14, 4  ;;  %s771_s11 = sshll.u32 %s5734_s19, 4  ;;  %s738_s0 = int_to_ptr.hbm [resolvable:$true] %s737_s0  ;;  %s772_s11 = int_to_ptr.hbm [resolvable:$true] %s771_s11 }
  0x65   : > { %3570 = dma.hbm_to_vmem [thread:$0]  (!%p4578_p6), %s712_s1, 16, %s714_s15, [#allocation15]  }
  0x66   : > { %s4395_s29 = smov [#allocation19]   ;;  %s5735_s1 = sshll.u32 %s4382_s30, 4 }
  0x67   : > { %s739_s6 = sshll.u32 %s4395_s29, 4  ;;  %s811_s9 = scalar_lea.hbm %s5736_s18, %s5735_s1  ;;  %s740_s6 = int_to_ptr.vmem [resolvable:$true] %s739_s6 }
  0x68   : > { %3576 = dma.hbm_to_vmem [thread:$0]  (!%p4578_p6), %s738_s0, 16, %s740_s6, [#allocation18]  }
  0x69   : > { %3582 = dma.hbm_to_vmem [thread:$0]  (!%p4578_p6), %s772_s11, 1024, %s774_s17, [#allocation21], %s5730_s21, %s5730_s21, %s5729_s5  }
  0x6a   : > { %s806_s29 = scalar_lea.vmem [#allocation2], %s5737_s12  ;;  %s812_s19 = sshll.u32 %s811_s9, 4  ;;  %s813_s19 = int_to_ptr.hbm [resolvable:$true] %s812_s19 }
  0x6b   : > { %s814_s14 = sshll.u32 %s806_s29, 4  ;;  %s3362_s0 = sshll.u32 %s4638_s28, 5  ;;  %s815_s14 = int_to_ptr.vmem [resolvable:$true] %s814_s14 }
  0x6c   : > { %s803_s6 = scalar_lea.sflag [#allocation3], %s4638_s28  ;;  %s4198_s13 = sshra.s32 %s813_s19, 4  ;;  %s4199_s13 = int_to_ptr.hbm [resolvable:$true] %s4198_s13 }
  0x6d   : > { %s4200_s3 = scalar_lea.hbm %s4199_s13, 16  ;;  %s4205_s1 = scalar_lea.hbm %s5736_s18, 32 }
  0x6e   : > { %p4201_p1 = scmp.ne.s32.totalorder %s4199_s13, %s4200_s3  ;;  %p4206_p10 = scmp.lt.s32.totalorder %s4199_s13, %s5736_s18 }
  0x6f   : > { %p4207_p11 = scmp.lt.s32.totalorder %s4205_s1, %s4200_s3 }
  0x70   : > { %p4203_p6 = pnand %p4201_p1, %p4052_p9 }
  0x71   : > { %p4208_p12 = por %p4207_p11, %p4206_p10 }
  0x72   : > { %p4204_p7 = pneg %p4203_p6 }
  0x74   : > { %p4209_p2 = pnand %p4208_p12, %p4204_p7 }
  0x76   : > { %4212 = shalt.err (!%p4209_p2)
}
  0x77   : > { %3586 = dma.hbm_to_vmem [thread:$0]  (!%p4646_p8), %s813_s19, 256, %s815_s14, %s803_s6, %s5730_s21, %s5730_s21, %s5729_s5  }
  0x78   : > { %s3502_s4 = sshll.u32 %s4382_s30, 5  ;;  %s5738_s11 = sld [smem:[#allocation41_spill]] }
  0x79   : > { %s859_s15 = scalar_lea.vmem [#allocation7], %s3362_s0  ;;  %s3365_s1 = sshll.u32 %s4638_s28, 6 }
  0x7a   : > { %s867_s13 = sshll.u32 %s859_s15, 4  ;;  %s868_s13 = int_to_ptr.vmem [resolvable:$true] %s867_s13 }
  0x7e   : > { %s864_s17 = scalar_lea.hbm %s5738_s11, %s3502_s4  ;;  %s4235_s6 = scalar_lea.hbm %s5738_s11, 64 }
  0x7f   : > { %s865_s3 = sshll.u32 %s864_s17, 4  ;;  %s866_s3 = int_to_ptr.hbm [resolvable:$true] %s865_s3 }
  0x80   : > { %s4228_s12 = sshra.s32 %s866_s3, 4  ;;  %s4229_s12 = int_to_ptr.hbm [resolvable:$true] %s4228_s12 }
  0x81   : > { %s4230_s18 = scalar_lea.hbm %s4229_s12, 32  ;;  %p4236_p7 = scmp.lt.s32.totalorder %s4229_s12, %s5738_s11 }
  0x82   : > { %p4231_p4 = scmp.ne.s32.totalorder %s4229_s12, %s4230_s18  ;;  %p4237_p10 = scmp.lt.s32.totalorder %s4235_s6, %s4230_s18 }
  0x84   : > { %p4233_p1 = pnand %p4231_p4, %p4052_p9  ;;  %p4238_p11 = por %p4237_p10, %p4236_p7 }
  0x86   : > { %p4234_p6 = pneg %p4233_p1 }
  0x88   : > { %p4239_p12 = pnand %p4238_p11, %p4234_p6 }
  0x8a   : > { %4242 = shalt.err (!%p4239_p12)
}
  0x8b   : > { %3592 = dma.hbm_to_vmem [thread:$0]  (!%p4646_p8), %s866_s3, 512, %s868_s13, %s4660_s26, %s5730_s21, %s5730_s21, %s5729_s5  }
  0x8c   : > { %s3503_s28 = sshll.u32 %s4382_s30, 6  ;;  %s5739_s17 = sld [smem:[#allocation44_spill]] }
  0x8d   : > { %s897_s12 = scalar_lea.vmem [#allocation8], %s3365_s1  ;;  %s5740_s19 = sand.u32 1, %s4382_s30  }
  0x8e   : > { %s905_s18 = sshll.u32 %s897_s12, 4  ;;  %s894_s6 = scalar_lea.sflag [#allocation9], %s5740_s19  ;;  %s906_s18 = int_to_ptr.vmem [resolvable:$true] %s905_s18 }
  0x92   : > { %s902_s15 = scalar_lea.hbm %s5739_s17, %s3503_s28  ;;  %s4265_s3 = scalar_lea.hbm %s5739_s17, 128 }
  0x93   : > { %s903_s14 = sshll.u32 %s902_s15, 4  ;;  %s904_s14 = int_to_ptr.hbm [resolvable:$true] %s903_s14 }
  0x94   : > { %s4258_s9 = sshra.s32 %s904_s14, 4  ;;  %s4259_s9 = int_to_ptr.hbm [resolvable:$true] %s4258_s9 }
  0x95   : > { %s4260_s4 = scalar_lea.hbm %s4259_s9, 64  ;;  %p4266_p6 = scmp.lt.s32.totalorder %s4259_s9, %s5739_s17 }
  0x96   : > { %p4261_p2 = scmp.ne.s32.totalorder %s4259_s9, %s4260_s4  ;;  %p4267_p7 = scmp.lt.s32.totalorder %s4265_s3, %s4260_s4 }
  0x98   : > { %p4263_p4 = pnand %p4261_p2, %p4052_p9  ;;  %p4268_p10 = por %p4267_p7, %p4266_p6 }
  0x9a   : > { %p4264_p1 = pneg %p4263_p4 }
  0x9c   : > { %p4269_p11 = pnand %p4268_p10, %p4264_p1 }
  0x9e   : > { %4272 = shalt.err (!%p4269_p11)
}
  0x9f   : > { %3595 = dma.hbm_to_vmem [thread:$0]  (!%p4646_p8), %s904_s14, 1024, %s906_s18, %s894_s6, %s5730_s21, %s5730_s21, %s5729_s5  }
  0xa0   : > { %917 = sbr.rel (%p4566_p3) target bundleno = 4114 (0x1012), region = 120  ;;  %s4771_s0 = sand.u32 (!%p4566_p3), 1, %s4374_s2  }
  0xa1   : > { %s4774_s29 = sshll.u32 (!%p4566_p3), %s4771_s0, 4  ;;  %s920_s15 = scalar_lea.sflag (!%p4566_p3), [#allocation3], %s4771_s0 }
  0xa2   : > { %s923_s12 = scalar_lea.vmem (!%p4566_p3), [#allocation2], %s4774_s29 }
  0xa5   : > { %4333 = dma.done.wait (%p4628_p13), %s920_s15, 256  }
  0xa6   : > { %4335 = vsyncadd (%p4628_p13), %s920_s15, 4294967040  ;;  %s929_s27 = sand.u32 1, %s4561_s8   ;;  %s933_s7 = scalar_lea.vmem [#allocation5], %s4774_s29 }
  0xa7   : > { %s930_s21 = scalar_lea.sflag [#allocation6], %s929_s27 }
  0xa8   : > { %4337 = dma.done.wait (%p4628_p13), %s930_s21, 768  }
  0xa9   : > { %4339 = vsyncadd (%p4628_p13), %s930_s21, 4294966528  ;;  %s3371_s5 = sshll.u32 %s4771_s0, 5  ;;  %s3372_s18 = sshll.u32 %s4771_s0, 6 }
  0xaa   : > { %s4790_s14 = scalar_lea.vmem [#allocation7], %s3371_s5  ;;  %s950_s19 = scalar_lea.sflag [#allocation9], %s929_s27 }
  0xab   : > { %s4792_s6 = scalar_lea.vmem [#allocation8], %s3372_s18 }
  0xac   : > { %4341 = dma.done.wait (%p4628_p13), %s950_s19, 1024  }
  0xad   : > { %4343 = vsyncadd (%p4628_p13), %s950_s19, 4294966272  ;;  %p5741_p3 = scmp.eq.s32.totalorder %s4561_s8, 0 }
  0xaf   : > { %4345 = dma.done.wait (%p5741_p3), [#allocation9], 2048   ;;  %p5742_p8 = pmov %p5741_p3 }
  0xb0   : > { %p5743_p9 = pmov %p5741_p3 }
  0xb1   : > { %4347 = vsyncadd (%p5742_p8), [#allocation9], 4294965248 }
  0xb2   : > { %4349 = dma.done.wait (%p5743_p9), [#allocation12], 1056   ;;  %p5744_p12 = pmov %p5741_p3 }
  0xb3   : > { %p5745_p2 = pmov %p5741_p3 }
  0xb4   : > { %4351 = vsyncadd (%p5744_p12), [#allocation12], 4294966240 }
  0xb5   : > { %4353 = dma.done.wait (%p5745_p2), [#allocation15], 1040   ;;  %p5746_p4 = pmov %p5745_p2 }
  0xb6   : > { %p5747_p13 = pmov %p5745_p2 }
  0xb7   : > { %4355 = vsyncadd (%p5746_p4), [#allocation15], 4294966256 }
  0xb8   : > { %4357 = dma.done.wait (%p5747_p13), [#allocation18], 1040   ;;  %p5748_p1 = pmov %p5745_p2 }
  0xba   : > { %4359 = vsyncadd (%p5748_p1), [#allocation18], 4294966256  ;;  %p5749_p6 = pmov %p5748_p1 }
  0xbb   : > { %p5750_p7 = pmov %p5748_p1 }
  0xbc   : > { %4361 = dma.done.wait (%p5749_p6), [#allocation21], 2048  }
  0xbd   : > { %4363 = vsyncadd (%p5750_p7), [#allocation21], 4294965248  ;;  %v1136_v0 = vld [vmem:[#allocation10 + $0x70] sm:$0xff]  ;;  %v1134_v1 = vld [vmem:[#allocation10 + $0x60] sm:$0xff]  ;;  %vm1144_vm0 = vcmask 523264   ;;  %s4397_s20 = smov 96  }
  0xbe   : > { %1159 = vmatpush.msra.mxu1 %v1136_v0  ;;  %v1132_v2 = vld [vmem:[#allocation10 + $0x50] sm:$0xff]  ;;  %v1130_v3 = vld [vmem:[#allocation10 + $0x40] sm:$0xff]  ;;  %v1117_v11 = vld [vmem:[%s923_s12 + $0x8] sm:$0xff]  ;;  %s4398_s9 = smov 112   ;;  %s4399_s4 = smov 80   ;;  %vm1243_vm1 = vcmask 130048  }
  0xbf   : > { %v1128_v4 = vld [vmem:[#allocation10 + $0x30] sm:$0xff]  ;;  %v1126_v5 = vld [vmem:[#allocation10 + $0x20] sm:$0xff]  ;;  %v1119_v12 = vld [vmem:[%s933_s7 + $0x8] sm:$0xff]  ;;  %s4400_s26 = smov 64   ;;  %p1105_p10 = scmp.lt.s32.totalorder %s4561_s8, 1  ;;  %vm1610_vm2 = vcmask 261120  }
  0xc0   : > { %1160 = vmatpush.msra.mxu1 %v1134_v1  ;;  %v1116_v6 = vld [vmem:[%s923_s12] sm:$0xff]  ;;  %v4830_v13 = vadd.f32 %v1119_v12, %v1117_v11  ;;  %v1137_v28 = vld [vmem:[#allocation10 + $0x78] sm:$0xff]  ;;  %v1135_v29 = vld [vmem:[#allocation10 + $0x68] sm:$0xff]  ;;  %s5751_s15 = sld [smem:[#allocation42_spill]]  ;;  %s4401_s27 = smov 32   ;;  %vm1613_vm3 = vcmask 392192  }
  0xc1   : > { %v1118_v7 = vld [vmem:[%s933_s7] sm:$0xff]  ;;  %v1133_v30 = vld [vmem:[#allocation10 + $0x58] sm:$0xff]  ;;  %v1131_v34 = vld [vmem:[#allocation10 + $0x48] sm:$0xff]  ;;  %s4875_s13 = scalar_select %p1105_p10, %s4561_s8, 1 }
  0xc2   : > { %1161 = vmatpush.msra.mxu1 %v1132_v2  ;;  %v1124_v8 = vld [vmem:[#allocation10 + $0x10] sm:$0xff]  ;;  %v1122_v9 = vld [vmem:[#allocation10] sm:$0xff]  ;;  %v4822_v10 = vadd.f32 %v1118_v7, %v1116_v6  ;;  %v1129_v35 = vld [vmem:[#allocation10 + $0x38] sm:$0xff]  ;;  %s4402_s21 = smov 16   ;;  %s4403_s7 = smov 48  }
  0xc3   : > { %v4834_v14 = vld [vmem:[#allocation11] sm:$0x3]  ;;  %v1127_v36 = vld [vmem:[#allocation10 + $0x28] sm:$0xff]  ;;  %v1125_v37 = vld [vmem:[#allocation10 + $0x18] sm:$0xff]  ;;  %s3504_s3 = sshll.u32 %s4875_s13, 6  ;;  %s3383_s19 = sshll.u32 %s4561_s8, 2 }
  0xc4   : > { %1162 = vmatpush.msra.mxu1 %v1130_v3  ;;  %v1140_v15 = vperm.slane %v4834_v14, 0  ;;  %v1123_v39 = vld [vmem:[#allocation10 + $0x8] sm:$0xff]  ;;  %v1141_v56 = vperm.slane %v4834_v14, 1  ;;  %p1099_p11 = scmp.lt.s32.totalorder %s3383_s19, 7  ;;  %s5755_s13 = sld [smem:[#allocation54_spill]] }
  0xc6   : > { %1163 = vmatpush.msra.mxu1 %v1128_v4  ;;  %s4883_s12 = scalar_lea.vmem %s5751_s15, %s3504_s3  ;;  %s5769_s19 = smov (!%p1099_p11, %s3383_s19), 7 }
  0xc7   : > { %v1199_v42 = vld [vmem:[%s4883_s12 + $0x10] sm:$0xff]  ;;  %v1197_v46 = vld [vmem:[%s4883_s12] sm:$0xff]  ;;  %v1202_v63 = vld [vmem:[%s4883_s12 + $0x28] sm:$0xff]  ;;  %s3384_s28 = sshll.u32 %s5769_s19, 3 }
  0xc8   : > { %1164 = vmatpush.msra.mxu1 %v1126_v5  ;;  %v1201_v52 = vld [vmem:[%s4883_s12 + $0x20] sm:$0xff]  ;;  %v1203_v57 = vld [vmem:[%s4883_s12 + $0x30] sm:$0xff]  ;;  %v1200_v2 = vld [vmem:[%s4883_s12 + $0x18] sm:$0xff] }
  0xc9   : > { %v1204_v7 = vld [vmem:[%s4883_s12 + $0x38] sm:$0xff]  ;;  %v1198_v14 = vld [vmem:[%s4883_s12 + $0x8] sm:$0xff]  ;;  %s5752_s12 = sld [smem:[#allocation40_spill]] }
  0xca   : > { %1165 = vmatpush.msra.mxu1 %v1124_v8 }
  0xcc   : > { %1166 = vmatpush.msra.mxu1 %v1122_v9 }
  0xcd   : > { %3389 = vmatmul.msk.f32.vlgmr.msra.gmra.mxu1 %vm1144_vm0, %v4822_v10 }
  0xce   : > { %1182 = vmatpush.msrb.mxu1 %v1137_v28 }
  0xcf   : > { %s1102_s5 = scalar_lea.vmem %s5752_s12, %s3384_s28  ;;  %s5758_s12 = sld [smem:[#allocation58_spill]] }
  0xd0   : > { %1183 = vmatpush.msrb.mxu1 %v1135_v29 }
  0xd2   : > { %1184 = vmatpush.msrb.mxu1 %v1133_v30 }
  0xd4   : > { %1185 = vmatpush.msrb.mxu1 %v1131_v34 }
  0xd5   : > { %3390 = vmatmul.msk.f32.gmra.mxu1 %vm1144_vm0, %v4830_v13 }
  0xd6   : > { %1186 = vmatpush.msrb.mxu1 %v1129_v35 }
  0xd8   : > { %1187 = vmatpush.msrb.mxu1 %v1127_v36 }
  0xda   : > { %1188 = vmatpush.msrb.mxu1 %v1125_v37 }
  0xdc   : > { %1189 = vmatpush.msrb.mxu1 %v1123_v39 }
  0xdd   : > { %3391 = vmatmul.msk.f32.vlgmr.msrb.gmra.mxu1 %vm1144_vm0, %v4822_v10 }
  0xe5   : > { %3392 = vmatmul.msk.f32.gmra.mxu1 %vm1144_vm0, %v4830_v13 }
 0x14a   : > { %v1168_v16 = vpop.f32.mrf.mxu1 }
 0x14b   : > { %v1169_v17 = vadd.f32 %v1168_v16, %v1140_v15 }
 0x14d   : > { %1211 = vrot.lane.b32.xlu2 %v1169_v17, %s4397_s20 }
 0x152   : > { %v1171_v18 = vpop.f32.mrf.mxu1 }
 0x153   : > { %v1172_v19 = vadd.f32 %v1171_v18, %v1140_v15 }
 0x155   : > { %1213 = vrot.lane.b32.xlu1 %v1172_v19, %s4397_s20  ;;  %1209 = vrot.lane.b32.xlu0 %v1172_v19, %s4398_s9 }
 0x156   : > { %1215 = vrot.lane.b32.xlu2 %v1169_v17, %s4399_s4 }
 0x15a   : > { %v1191_v51 = vpop.f32.mrf.mxu1 }
 0x15b   : > { %v1192_v1 = vadd.f32 %v1191_v51, %v1141_v56 }
 0x15d   : > { %1217 = vrot.lane.b32.xlu1 %v1172_v19, %s4399_s4  ;;  %1207 = vrot.lane.b32.xlu0 %v1169_v17, %s4398_s9 }
 0x15e   : > { %1241 = vrot.lane.b32.xlu2 %v1172_v19, %s4400_s26 }
 0x162   : > { %v1194_v60 = vpop.f32.mrf.mxu1 }
 0x163   : > { %v1195_v62 = vadd.f32 %v1194_v60, %v1141_v56 }
 0x1a7   : > { %v1212_v20 = vpop.permute.xlu2 %1211 }
 0x1b0   : > { %v1216_v21 = vpop.permute.xlu2 %1215 }
 0x1b8   : > { %v1242_v22 = vpop.permute.xlu2 %1241 }
 0x1b9   : > { %3393 = vmatpush.xpose.msk.msra.mxu0 %vm1243_vm1, %v1242_v22  ;;  %3507 = vmatpush.xpose.msk.msra.mxu2 %vm1243_vm1, %v1242_v22 }
 0x1c7   : > { %v1214_v23 = vpop.permute.xlu1 %1213  ;;  %v1210_v24 = vpop.permute.xlu0 %1209 }
 0x1c8   : > { %1277 = vrot.lane.b32.xlu0 %v1210_v24, %s4400_s26 }
 0x1cf   : > { %v1218_v25 = vpop.permute.xlu1 %1217  ;;  %v1208_v26 = vpop.permute.xlu0 %1207 }
 0x1d0   : > { %1347 = vrot.lane.b32.xlu2 %v1218_v25, %s4400_s26  ;;  %1239 = vrot.lane.b32.xlu0 %v1169_v17, %s4400_s26 }
 0x1d1   : > { %1275 = vrot.lane.b32.xlu1 %v1208_v26, %s4400_s26 }
 0x1d8   : > { %1310 = vrot.lane.b32.xlu0 %v1212_v20, %s4400_s26 }
 0x1d9   : > { %1312 = vrot.lane.b32.xlu1 %v1214_v23, %s4400_s26 }
 0x1e1   : > { %1345 = vrot.lane.b32.xlu1 %v1216_v21, %s4400_s26 }
 0x22a   : > { %v1348_v33 = vpop.permute.xlu2 %1347 }
 0x23a   : > { %v1278_v27 = vpop.permute.xlu0 %1277 }
 0x23b   : > { %3397 = vmatpush.xpose.msk.msra.mxu3 %vm1243_vm1, %v1278_v27 }
 0x242   : > { %v1240_v31 = vpop.permute.xlu0 %1239 }
 0x243   : > { %v1276_v32 = vpop.permute.xlu1 %1275  ;;  %3394 = vmatpush.xpose.msk.msra.mxu0 %vm1243_vm1, %v1240_v31  ;;  %3508 = vmatpush.xpose.msk.msra.mxu2 %vm1243_vm1, %v1240_v31 }
 0x244   : > { %3398 = vmatpush.xpose.msk.msra.mxu3 %vm1243_vm1, %v1276_v32 }
 0x246   : > { %3395 = vmatmul.msk.f32.vlgmr.msra.gmra.mxu0 %vm1243_vm1, %v1169_v17  ;;  %3396 = vmatmul.msk.f32.vlgmr.msra.gmra.mxu2 %vm1243_vm1, %v1172_v19  ;;  %v3675_v17 = vpack.i.bf16 %v1192_v1, %v1195_v62 }
 0x247   : > { %3399 = vmatmul.msk.f32.vlgmr.msra.gmra.mxu3 %vm1243_vm1, %v1208_v26  ;;  %1488 = vmatpush.msrb.mxu0 %v1195_v62 }
 0x248   : > { %3405 = vmatpush.xpose.msk.msrb.mxu3 %vm1243_vm1, %v1348_v33 }
 0x249   : > { %1489 = vmatpush.msrb.mxu0 %v1192_v1 }
 0x24a   : > { %v1311_v40 = vpop.permute.xlu0 %1310 }
 0x24b   : > { %v1313_v38 = vpop.permute.xlu1 %1312 }
 0x24c   : > { %3401 = vmatpush.xpose.msk.msrb.mxu2 %vm1243_vm1, %v1313_v38 }
 0x24f   : > { %3400 = vmatmul.msk.f32.gmra.mxu3 %vm1243_vm1, %v1210_v24 }
 0x250   : > { %3402 = vmatpush.xpose.msk.msrb.mxu2 %vm1243_vm1, %v1311_v40 }
 0x253   : > { %v1346_v41 = vpop.permute.xlu1 %1345  ;;  %3403 = vmatmul.msk.f32.vlgmr.msrb.gmra.mxu2 %vm1243_vm1, %v1212_v20 }
 0x254   : > { %3406 = vmatpush.xpose.msk.msrb.mxu3 %vm1243_vm1, %v1346_v41 }
 0x257   : > { %3407 = vmatmul.msk.f32.vlgmr.msrb.gmra.mxu3 %vm1243_vm1, %v1216_v21 }
 0x25b   : > { %3404 = vmatmul.msk.f32.gmra.mxu2 %vm1243_vm1, %v1214_v23 }
 0x25f   : > { %3408 = vmatmul.msk.f32.gmra.mxu3 %vm1243_vm1, %v1218_v25 }
 0x2c3   : > { %v1269_v47 = vpop.f32.mrf.mxu0 }
 0x2c4   : > { %v4888_v49 = vadd.f32 %v1269_v47, %v1197_v46 }
 0x2c6   : > { %v1380_v53 = vsel %vm1243_vm1, %v4888_v49, -inf }
 0x2c9   : > { %v1272_v48 = vpop.f32.mrf.mxu2 }
 0x2ca   : > { %v1304_v43 = vpop.f32.mrf.mxu3  ;;  %v1273_v15 = vadd.f32 %v1272_v48, %v1198_v14 }
 0x2cb   : > { %v1305_v44 = vadd.f32 %v1304_v43, %v1199_v42 }
 0x2cc   : > { %v1383_v16 = vsel %vm1243_vm1, %v1273_v15, -inf }
 0x2cd   : > { %v1386_v45 = vsel %vm1243_vm1, %v1305_v44, -inf }
 0x2ce   : > { %1387 = vmax.xlane.f32.xlu1 %v1386_v45 }
 0x2d2   : > { %v1307_v50 = vpop.f32.mrf.mxu3 }
 0x2d3   : > { %v1308_v5 = vadd.f32 %v1307_v50, %v1200_v2 }
 0x2d5   : > { %v1389_v11 = vsel %vm1243_vm1, %v1308_v5, -inf }
 0x2d6   : > { %1381 = vmax.xlane.f32.xlu1 %v1380_v53  ;;  %v1339_v54 = vpop.f32.mrf.mxu2 }
 0x2d7   : > { %v1340_v55 = vadd.f32 %v1339_v54, %v1201_v52 }
 0x2d9   : > { %v1392_v58 = vsel %vm1243_vm1, %v1340_v55, -inf }
 0x2da   : > { %v1374_v59 = vpop.f32.mrf.mxu3  ;;  %1393 = vmax.xlane.f32.xlu2 %v1392_v58 }
 0x2db   : > { %v1375_v61 = vadd.f32 %v1374_v59, %v1203_v57 }
 0x2dd   : > { %v1398_v0 = vsel %vm1243_vm1, %v1375_v61, -inf }
 0x2de   : > { %1399 = vmax.xlane.f32.xlu0 %v1398_v0  ;;  %v1342_v3 = vpop.f32.mrf.mxu2 }
 0x2df   : > { %v1343_v4 = vadd.f32 %v1342_v3, %v1202_v63 }
 0x2e1   : > { %v1395_v6 = vsel %vm1243_vm1, %v1343_v4, -inf }
 0x2e2   : > { %v1377_v8 = vpop.f32.mrf.mxu3  ;;  %1396 = vmax.xlane.f32.xlu2 %v1395_v6 }
 0x2e3   : > { %v1378_v9 = vadd.f32 %v1377_v8, %v1204_v7 }
 0x2e5   : > { %v1401_v12 = vsel %vm1243_vm1, %v1378_v9, -inf }
 0x2e6   : > { %1390 = vmax.xlane.f32.xlu0 %v1389_v11 }
 0x2ea   : > { %1402 = vmax.xlane.f32.xlu2 %v1401_v12 }
 0x2f2   : > { %1384 = vmax.xlane.f32.xlu2 %v1383_v16 }
 0x2fa   : > { %3676 = vrot.lane.b32.xlu0 %v3675_v17, %s4397_s20 }
 0x341   : > { %v1388_v18 = vpop.xlane.xlu1 %1387 }
 0x342   : > { %v1406_v19 = vsub.f32 %v1305_v44, %v1388_v18 }
 0x344   : > { %v1416_v20 = vmul.f32 1.442695, %v1406_v19 }
 0x346   : > { %3788 = vpow2.f32 %v1416_v20 }
 0x34c   : > { %v4906_v21 = vpop.eup %3788 }
 0x34d   : > { %v1394_v22 = vpop.xlane.xlu2 %1393  ;;  %v1434_v23 = vsel %vm1243_vm1, %v4906_v21, 0.0 }
 0x34e   : > { %v1408_v24 = vsub.f32 %v1340_v55, %v1394_v22  ;;  %1435 = vadd.xlane.f32.xlu2 %v1434_v23  ;;  %v1382_v55 = vpop.xlane.xlu1 %1381 }
 0x34f   : > { %v1404_v56 = vsub.f32 %v4888_v49, %v1382_v55 }
 0x350   : > { %v1420_v25 = vmul.f32 1.442695, %v1408_v24 }
 0x351   : > { %v1400_v26 = vpop.xlane.xlu0 %1399  ;;  %v1412_v57 = vmul.f32 1.442695, %v1404_v56 }
 0x352   : > { %3790 = vpow2.f32 %v1420_v25  ;;  %v1410_v27 = vsub.f32 %v1375_v61, %v1400_v26 }
 0x354   : > { %v1424_v28 = vmul.f32 1.442695, %v1410_v27 }
 0x355   : > { %v1397_v29 = vpop.xlane.xlu2 %1396 }
 0x356   : > { %3792 = vpow2.f32 %v1424_v28  ;;  %v1409_v30 = vsub.f32 %v1343_v4, %v1397_v29 }
 0x358   : > { %v3791_v31 = vpop.eup %3790  ;;  %v1422_v32 = vmul.f32 1.442695, %v1409_v30 }
 0x359   : > { %v1440_v33 = vsel %vm1243_vm1, %v3791_v31, 0.0  ;;  %v1391_v35 = vpop.xlane.xlu0 %1390 }
 0x35a   : > { %3794 = vpow2.f32 %v1422_v32  ;;  %1441 = vadd.xlane.f32.xlu0 %v1440_v33  ;;  %v1407_v40 = vsub.f32 %v1308_v5, %v1391_v35  ;;  %v1623_v35 = vld [vmem:[#allocation13 + $0x38] sm:$0xff] }
 0x35b   : > { %1642 = vmatpush.msra.mxu0 %v1623_v35  ;;  %v1722_v35 = vld [vmem:[#allocation14 + $0x20] sm:$0xff] }
 0x35c   : > { %v4911_v34 = vpop.eup %3792  ;;  %v1418_v43 = vmul.f32 1.442695, %v1407_v40  ;;  %v1618_v40 = vld [vmem:[#allocation13 + $0x10] sm:$0xff] }
 0x35d   : > { %v1403_v36 = vpop.xlane.xlu2 %1402  ;;  %v1446_v37 = vsel %vm1243_vm1, %v4911_v34, 0.0 }
 0x35e   : > { %v1411_v38 = vsub.f32 %v1378_v9, %v1403_v36  ;;  %1447 = vadd.xlane.f32.xlu1 %v1446_v37  ;;  %v1622_v36 = vld [vmem:[#allocation13 + $0x30] sm:$0xff]  ;;  %v1621_v37 = vld [vmem:[#allocation13 + $0x28] sm:$0xff] }
 0x35f   : > { %1643 = vmatpush.msra.mxu0 %v1622_v36  ;;  %v1826_v36 = vld [vmem:[#allocation20 + $0x30] sm:$0xff] }
 0x360   : > { %v3795_v39 = vpop.eup %3794  ;;  %v1426_v41 = vmul.f32 1.442695, %v1411_v38  ;;  %v1620_v38 = vld [vmem:[#allocation13 + $0x20] sm:$0xff] }
 0x361   : > { %v1443_v42 = vsel %vm1243_vm1, %v3795_v39, 0.0  ;;  %1644 = vmatpush.msra.mxu0 %v1621_v37  ;;  %v1721_v37 = vld [vmem:[#allocation14 + $0x18] sm:$0xff] }
 0x362   : > { %3796 = vpow2.f32 %v1426_v41  ;;  %1444 = vadd.xlane.f32.xlu2 %v1443_v42  ;;  %v1617_v41 = vld [vmem:[#allocation13 + $0x8] sm:$0xff]  ;;  %v1616_v42 = vld [vmem:[#allocation13] sm:$0xff] }
 0x363   : > { %3798 = vpow2.f32 %v1418_v43  ;;  %1645 = vmatpush.msra.mxu0 %v1620_v38  ;;  %v1825_v38 = vld [vmem:[#allocation20 + $0x28] sm:$0xff] }
 0x365   : > { %v1385_v52 = vpop.xlane.xlu2 %1384 }
 0x366   : > { %v1405_v53 = vsub.f32 %v1273_v15, %v1385_v52 }
 0x368   : > { %v4916_v44 = vpop.eup %3796  ;;  %v1414_v54 = vmul.f32 1.442695, %v1405_v53 }
 0x369   : > { %v1449_v45 = vsel %vm1243_vm1, %v4916_v44, 0.0  ;;  %v3799_v46 = vpop.eup %3798 }
 0x36a   : > { %1450 = vadd.xlane.f32.xlu2 %v1449_v45  ;;  %v1437_v47 = vsel %vm1243_vm1, %v3799_v46, 0.0  ;;  %3800 = vpow2.f32 %v1414_v54 }
 0x36b   : > { %3802 = vpow2.f32 %v1412_v57 }
 0x36c   : > { %v3677_v48 = vpop.permute.xlu0 %3676 }
 0x36d   : > { %v3679_v50 = vunpack.i.h.bf16 %v3677_v48  ;;  %v3678_v51 = vunpack.i.l.bf16 %v3677_v48 }
 0x36e   : > { %3686 = vrot.lane.b32.xlu0 %v3675_v17, %s4398_s9 }
 0x36f   : > { %1546 = vmatpush.msra.mxu2 %v3678_v51 }
 0x370   : > { %v3801_v58 = vpop.eup %3800 }
 0x371   : > { %1547 = vmatpush.msra.mxu2 %v3679_v50  ;;  %v1431_v59 = vsel %vm1243_vm1, %v3801_v58, 0.0  ;;  %v3803_v60 = vpop.eup %3802 }
 0x372   : > { %1438 = vadd.xlane.f32.xlu2 %v1437_v47  ;;  %v1428_v61 = vsel %vm1243_vm1, %v3803_v60, 0.0 }
 0x377   : > { %3681 = vrot.lane.b32.xlu1 %v3675_v17, %s4399_s4 }
 0x398   : > { %1432 = vadd.xlane.f32.xlu0 %v1431_v59 }
 0x3a1   : > { %1429 = vadd.xlane.f32.xlu1 %v1428_v61 }
 0x3c1   : > { %v1436_v62 = vpop.xlane.xlu2 %1435 }
 0x3cd   : > { %v1442_v63 = vpop.xlane.xlu0 %1441 }
 0x3ce   : > { %3804 = vrcp.f32 %v1442_v63 }
 0x3d1   : > { %v1448_v7 = vpop.xlane.xlu1 %1447 }
 0x3d4   : > { %v3805_v0 = vpop.eup %3804 }
 0x3d5   : > { %v1464_v1 = vmul.f32 %v3805_v0, %v3791_v31  ;;  %v1445_v2 = vpop.xlane.xlu2 %1444 }
 0x3d6   : > { %3806 = vrcp.f32 %v1445_v2 }
 0x3d7   : > { %3413 = vmatmul.msk.f32.vlgmr.msra.gmra.mxu2 %vm1243_vm1, %v1464_v1  ;;  %3808 = vrcp.f32 %v1436_v62 }
 0x3d8   : > { %3810 = vrcp.f32 %v1448_v7 }
 0x3dc   : > { %v3807_v49 = vpop.eup %3806 }
 0x3dd   : > { %v1451_v3 = vpop.xlane.xlu2 %1450  ;;  %v1465_v4 = vmul.f32 %v3807_v49, %v3795_v39  ;;  %v3809_v6 = vpop.eup %3808  ;;  %v1619_v39 = vld [vmem:[#allocation13 + $0x18] sm:$0xff]  ;;  %v4404_v49 = vmov 64.0  }
 0x3de   : > { %v1462_v11 = vmul.f32 %v3809_v6, %v4906_v21  ;;  %v3811_v15 = vpop.eup %3810  ;;  %1646 = vmatpush.msra.mxu0 %v1619_v39  ;;  %v1720_v39 = vld [vmem:[#allocation14 + $0x10] sm:$0xff] }
 0x3df   : > { %3414 = vmatmul.msk.f32.gmra.mxu2 %vm1243_vm1, %v1465_v4  ;;  %v1466_v19 = vmul.f32 %v3811_v15, %v4911_v34  ;;  %v1766_v15 = vld [vmem:[#allocation17 + $0x18] sm:$0xff] }
 0x3e0   : > { %v3687_v5 = vpop.permute.xlu0 %3686  ;;  %1647 = vmatpush.msra.mxu0 %v1618_v40  ;;  %v1824_v40 = vld [vmem:[#allocation20 + $0x20] sm:$0xff] }
 0x3e1   : > { %v3688_v8 = vunpack.i.l.bf16 %v3687_v5  ;;  %v3689_v9 = vunpack.i.h.bf16 %v3687_v5 }
 0x3e2   : > { %1648 = vmatpush.msra.mxu0 %v1617_v41  ;;  %v1719_v41 = vld [vmem:[#allocation14 + $0x8] sm:$0xff] }
 0x3e3   : > { %1517 = vmatpush.msra.mxu1 %v3688_v8  ;;  %v1769_v8 = vld [vmem:[#allocation17 + $0x30] sm:$0xff] }
 0x3e4   : > { %1649 = vmatpush.msra.mxu0 %v1616_v42  ;;  %v1823_v42 = vld [vmem:[#allocation20 + $0x18] sm:$0xff] }
 0x3e5   : > { %v1439_v12 = vpop.xlane.xlu2 %1438  ;;  %1518 = vmatpush.msra.mxu1 %v3689_v9  ;;  %v1768_v9 = vld [vmem:[#allocation17 + $0x28] sm:$0xff] }
 0x3e6   : > { %3812 = vrcp.f32 %v1439_v12  ;;  %3411 = vmatmul.msk.f32.vlgmr.msra.gmra.mxu1 %vm1243_vm1, %v1462_v11 }
 0x3e7   : > { %3814 = vrcp.f32 %v1451_v3 }
 0x3e9   : > { %v3682_v14 = vpop.permute.xlu1 %3681 }
 0x3ea   : > { %v3683_v16 = vunpack.i.l.bf16 %v3682_v14  ;;  %v3684_v18 = vunpack.i.h.bf16 %v3682_v14 }
 0x3ec   : > { %v3813_v17 = vpop.eup %3812  ;;  %1575 = vmatpush.msra.mxu3 %v3683_v16 }
 0x3ed   : > { %v1463_v20 = vmul.f32 %v3813_v17, %v3799_v46  ;;  %v3815_v21 = vpop.eup %3814  ;;  %v1765_v17 = vld [vmem:[#allocation17 + $0x10] sm:$0xff] }
 0x3ee   : > { %1576 = vmatpush.msra.mxu3 %v3684_v18  ;;  %v1467_v22 = vmul.f32 %v3815_v21, %v4916_v44  ;;  %v1763_v21 = vld [vmem:[#allocation17] sm:$0xff] }
 0x3ef   : > { %3412 = vmatmul.msk.f32.gmra.mxu1 %vm1243_vm1, %v1463_v20  ;;  %3415 = vmatmul.msk.f32.vlgmr.msra.gmra.mxu3 %vm1243_vm1, %v1466_v19  ;;  %v1764_v19 = vld [vmem:[#allocation17 + $0x8] sm:$0xff] }
 0x3f7   : > { %3416 = vmatmul.msk.f32.gmra.mxu3 %vm1243_vm1, %v1467_v22  ;;  %v1759_v22 = vld [vmem:[%s1102_s5] sm:$0xff] }
 0x40b   : > { %v1433_v24 = vpop.xlane.xlu0 %1432 }
 0x414   : > { %v1430_v23 = vpop.xlane.xlu1 %1429 }
 0x415   : > { %3816 = vrcp.f32 %v1430_v23  ;;  %v1760_v23 = vld [vmem:[%s1102_s5 + $0x8] sm:$0xff] }
 0x416   : > { %3818 = vrcp.f32 %v1433_v24 }
 0x417   : > { %3820 = vrcp.f32 %v4404_v49 }
 0x41b   : > { %v3817_v25 = vpop.eup %3816 }
 0x41c   : > { %v1460_v26 = vmul.f32 %v3817_v25, %v3803_v60  ;;  %v3819_v27 = vpop.eup %3818 }
 0x41d   : > { %v1461_v28 = vmul.f32 %v3819_v27, %v3801_v58  ;;  %v3775_v58 = vld [vmem:[%s5653_s10] ss:$0 sm:$0xff]  ;;  %v3821_v3 = vpop.eup %3820 }
 0x41e   : > { %3409 = vmatmul.msk.f32.vlgmr.msrb.gmra.mxu0 %vm1243_vm1, %v1460_v26  ;;  %v1668_v4 = vmul.f32 64.0, %v3821_v3  ;;  %vm1672_vm4 = vweird.f32 %v3821_v3 }
 0x420   : > { %v1669_v5 = vsub.f32 1.0, %v1668_v4 }
 0x422   : > { %v1670_v6 = vmul.f32 %v3821_v3, %v1669_v5  ;;  %v3778_v5 = vld [vmem:[#allocation19] ss:$0 sm:$0xff] }
 0x424   : > { %v1671_v7 = vadd.f32 %v3821_v3, %v1670_v6 }
 0x426   : > { %3410 = vmatmul.msk.f32.gmra.mxu0 %vm1243_vm1, %v1461_v28  ;;  %v4959_v11 = vsel %vm1672_vm4, %v3821_v3, %v1671_v7  ;;  %v1761_v28 = vld [vmem:[%s1102_s5 + $0x10] sm:$0xff]  ;;  %v3777_v3 = vld [vmem:[%s5667_s24] ss:$0 sm:$0xff] }
 0x45a   : > { %v1549_v29 = vpop.f32.mrf.mxu2 }
 0x462   : > { %v1552_v30 = vpop.f32.mrf.mxu2 }
 0x463   : > { %v1520_v31 = vpop.f32.mrf.mxu1  ;;  %1596 = vrot.lane.b32.xlu0 %v1552_v30, %s4401_s27  ;;  %v1762_v30 = vld [vmem:[%s1102_s5 + $0x18] sm:$0xff]  ;;  %s5753_s5 = sld [smem:[#allocation43_spill]] }
 0x464   : > { %1586 = vrot.lane.b32.xlu2 %v1520_v31, %s4402_s21  ;;  %v1725_v31 = vld [vmem:[#allocation14 + $0x38] sm:$0xff] }
 0x465   : > { %1744 = vmatpush.msrb.mxu1 %v1725_v31 }
 0x469   : > { %s5138_s18 = scalar_lea.vmem %s5753_s5, %s3504_s3 }
 0x46c   : > { %v1523_v32 = vpop.f32.mrf.mxu1  ;;  %1594 = vrot.lane.b32.xlu2 %v1549_v29, %s4401_s27 }
 0x46d   : > { %1588 = vrot.lane.b32.xlu1 %v1523_v32, %s4402_s21  ;;  %v1724_v32 = vld [vmem:[#allocation14 + $0x30] sm:$0xff] }
 0x46e   : > { %1745 = vmatpush.msrb.mxu1 %v1724_v32 }
 0x472   : > { %v1578_v33 = vpop.f32.mrf.mxu3 }
 0x474   : > { %1602 = vrot.lane.b32.xlu2 %v1578_v33, %s4403_s7  ;;  %v1723_v33 = vld [vmem:[#allocation14 + $0x28] sm:$0xff] }
 0x475   : > { %1746 = vmatpush.msrb.mxu1 %v1723_v33 }
 0x477   : > { %1747 = vmatpush.msrb.mxu1 %v1722_v35 }
 0x479   : > { %1748 = vmatpush.msrb.mxu1 %v1721_v37 }
 0x47a   : > { %v1581_v34 = vpop.f32.mrf.mxu3 }
 0x47b   : > { %1749 = vmatpush.msrb.mxu1 %v1720_v39 }
 0x47c   : > { %1604 = vrot.lane.b32.xlu2 %v1581_v34, %s4403_s7  ;;  %v1827_v34 = vld [vmem:[#allocation20 + $0x38] sm:$0xff] }
 0x47d   : > { %1852 = vmatpush.msrb.mxu3 %v1827_v34  ;;  %1750 = vmatpush.msrb.mxu1 %v1719_v41  ;;  %v3780_v41 = vld [vmem:[%s5659_s16] ss:$0 sm:$0xff] }
 0x47f   : > { %1853 = vmatpush.msrb.mxu3 %v1826_v36 }
 0x481   : > { %1854 = vmatpush.msrb.mxu3 %v1825_v38 }
 0x483   : > { %1855 = vmatpush.msrb.mxu3 %v1824_v40 }
 0x485   : > { %1856 = vmatpush.msrb.mxu3 %v1823_v42 }
 0x49b   : > { %v1491_v45 = vpop.f32.mrf.mxu0 }
 0x4a3   : > { %v1494_v51 = vpop.f32.mrf.mxu0 }
 0x4be   : > { %v1587_v43 = vpop.permute.xlu2 %1586 }
 0x4bf   : > { %v1608_v46 = vsel %vm1243_vm1, %v1491_v45, %v1587_v43  ;;  %v1718_v43 = vld [vmem:[#allocation14] sm:$0xff]  ;;  %v1821_v45 = vld [vmem:[#allocation20 + $0x8] sm:$0xff] }
 0x4c0   : > { %1751 = vmatpush.msrb.mxu1 %v1718_v43 }
 0x4c6   : > { %v1595_v44 = vpop.permute.xlu2 %1594 }
 0x4c7   : > { %v1611_v47 = vsel %vm1610_vm2, %v1608_v46, %v1595_v44  ;;  %v1822_v44 = vld [vmem:[#allocation20 + $0x10] sm:$0xff]  ;;  %v1820_v46 = vld [vmem:[#allocation20] sm:$0xff] }
 0x4c8   : > { %1857 = vmatpush.msrb.mxu3 %v1822_v44 }
 0x4ca   : > { %1858 = vmatpush.msrb.mxu3 %v1821_v45 }
 0x4cc   : > { %1859 = vmatpush.msrb.mxu3 %v1820_v46 }
 0x4ce   : > { %v1603_v48 = vpop.permute.xlu2 %1602 }
 0x4cf   : > { %v1614_v50 = vsel %vm1613_vm3, %v1611_v47, %v1603_v48  ;;  %v1816_v48 = vld [vmem:[%s4790_s14] sm:$0xff] }
 0x4d0   : > { %3417 = vmatmul.msk.f32.vlgmr.msra.gmra.mxu0 %vm1144_vm0, %v1614_v50  ;;  %3425 = vmatmul.msk.f32.vlgmr.msrb.gmra.mxu3 %vm1144_vm0, %v1816_v48 }
 0x4d5   : > { %v1597_v53 = vpop.permute.xlu0 %1596 }
 0x4d6   : > { %v1605_v55 = vpop.permute.xlu2 %1604 }
 0x4df   : > { %v1589_v52 = vpop.permute.xlu1 %1588 }
 0x4e0   : > { %v1609_v54 = vsel %vm1243_vm1, %v1494_v51, %v1589_v52  ;;  %v1817_v52 = vld [vmem:[%s4790_s14 + $0x8] sm:$0xff] }
 0x4e1   : > { %v1612_v56 = vsel %vm1610_vm2, %v1609_v54, %v1597_v53  ;;  %3426 = vmatmul.msk.f32.gmra.mxu3 %vm1144_vm0, %v1817_v52 }
 0x4e2   : > { %v1615_v57 = vsel %vm1613_vm3, %v1612_v56, %v1605_v55 }
 0x4e3   : > { %3418 = vmatmul.msk.f32.gmra.mxu0 %vm1144_vm0, %v1615_v57  ;;  %v1818_v57 = vld [vmem:[%s4790_s14 + $0x10] sm:$0xff] }
 0x4e9   : > { %3427 = vmatmul.msk.f32.gmra.mxu3 %vm1144_vm0, %v1818_v57 }
 0x54d   : > { %v1651_v59 = vpop.f32.mrf.mxu0 }
 0x54e   : > { %v1652_v60 = vadd.f32 %v3775_v58, %v1651_v59 }
 0x550   : > { %v1657_v61 = vadd.f32 %v1652_v60, %v4822_v10  ;;  %v1770_v10 = vld [vmem:[#allocation17 + $0x38] sm:$0xff] }
 0x551   : > { %1795 = vmatpush.msrb.mxu2 %v1770_v10 }
 0x552   : > { %v1661_v62 = vsel %vm1144_vm0, %v1657_v61, 0.0 }
 0x553   : > { %1662 = vadd.xlane.f32.xlu2 %v1661_v62  ;;  %1796 = vmatpush.msrb.mxu2 %v1769_v8 }
 0x555   : > { %1797 = vmatpush.msrb.mxu2 %v1768_v9 }
 0x560   : > { %v1654_v63 = vpop.f32.mrf.mxu0 }
 0x561   : > { %v1655_v0 = vadd.f32 %v3775_v58, %v1654_v63  ;;  %v3776_v63 = vld [vmem:[%s5666_s23] ss:$0 sm:$0xff] }
 0x563   : > { %v1658_v1 = vadd.f32 %v1655_v0, %v4830_v13  ;;  %v1767_v13 = vld [vmem:[#allocation17 + $0x20] sm:$0xff] }
 0x564   : > { %1798 = vmatpush.msrb.mxu2 %v1767_v13 }
 0x565   : > { %v1664_v2 = vsel %vm1144_vm0, %v1658_v1, 0.0 }
 0x566   : > { %1665 = vadd.xlane.f32.xlu0 %v1664_v2  ;;  %1799 = vmatpush.msrb.mxu2 %v1766_v15  ;;  %v1819_v2 = vld [vmem:[%s4790_s14 + $0x18] sm:$0xff]  ;;  %s5757_s14 = sld [smem:[#allocation56_spill]] }
 0x567   : > { %3428 = vmatmul.msk.f32.gmra.mxu3 %vm1144_vm0, %v1819_v2 }
 0x568   : > { %1800 = vmatpush.msrb.mxu2 %v1765_v17 }
 0x56a   : > { %1801 = vmatpush.msrb.mxu2 %v1764_v19 }
 0x56c   : > { %1802 = vmatpush.msrb.mxu2 %v1763_v21 }
 0x56d   : > { %3421 = vmatmul.msk.f32.vlgmr.msrb.gmra.mxu2 %vm1144_vm0, %v1759_v22 }
 0x575   : > { %3422 = vmatmul.msk.f32.gmra.mxu2 %vm1144_vm0, %v1760_v23 }
 0x57d   : > { %3423 = vmatmul.msk.f32.gmra.mxu2 %vm1144_vm0, %v1761_v28 }
 0x585   : > { %3424 = vmatmul.msk.f32.gmra.mxu2 %vm1144_vm0, %v1762_v30 }
 0x5c6   : > { %v1663_v12 = vpop.xlane.xlu2 %1662 }
 0x5c7   : > { %v1674_v14 = vmul.f32 %v4959_v11, %v1663_v12 }
 0x5c9   : > { %v4962_v16 = vsub.f32 %v1657_v61, %v1674_v14 }
 0x5cb   : > { %v1678_v18 = vmul.f32 %v4962_v16, %v4962_v16 }
 0x5cd   : > { %v1680_v20 = vsel %vm1144_vm0, %v1678_v18, 0.0 }
 0x5ce   : > { %1681 = vadd.xlane.f32.xlu1 %v1680_v20 }
 0x5d9   : > { %v1666_v24 = vpop.xlane.xlu0 %1665 }
 0x5da   : > { %v1675_v25 = vmul.f32 %v4959_v11, %v1666_v24 }
 0x5dc   : > { %v4973_v26 = vsub.f32 %v1658_v1, %v1675_v25 }
 0x5de   : > { %v1679_v27 = vmul.f32 %v4973_v26, %v4973_v26 }
 0x5e0   : > { %v1683_v29 = vsel %vm1144_vm0, %v1679_v27, 0.0  ;;  %v3779_v27 = vld [vmem:[#allocation16] ss:$0 sm:$0xff] }
 0x5e1   : > { %1684 = vadd.xlane.f32.xlu2 %v1683_v29 }
 0x5f0   : > { %v1804_v60 = vpop.f32.mrf.mxu2 }
 0x5f1   : > { %v5010_v20 = vadd.f32 %v3778_v5, %v1804_v60 }
 0x5f8   : > { %v1807_v7 = vpop.f32.mrf.mxu2 }
 0x5f9   : > { %v4999_v10 = vadd.f32 %v3778_v5, %v1807_v7 }
 0x5fb   : > { %1901 = vrot.lane.b32.xlu1 %v4999_v10, %s4398_s9 }
 0x600   : > { %v1810_v14 = vpop.f32.mrf.mxu2 }
 0x601   : > { %v5005_v15 = vadd.f32 %v3778_v5, %v1810_v14 }
 0x603   : > { %1903 = vrot.lane.b32.xlu0 %v5005_v15, %s4398_s9 }
 0x608   : > { %v1813_v21 = vpop.f32.mrf.mxu2 }
 0x609   : > { %v5012_v23 = vadd.f32 %v3778_v5, %v1813_v21  ;;  %v1874_v5 = vld [vmem:[%s5138_s18 + $0x8] sm:$0xff] }
 0x60b   : > { %1899 = vrot.lane.b32.xlu0 %v5010_v20, %s4398_s9  ;;  %1913 = vrot.lane.b32.xlu1 %v5012_v23, %s4397_s20  ;;  %v3720_v25 = vpack.i.bf16 %v5005_v15, %v5012_v23 }
 0x60c   : > { %3429 = vmatpush.xpose.msk.msrb.mxu0 %vm1243_vm1, %v5012_v23  ;;  %1905 = vrot.lane.b32.xlu2 %v5012_v23, %s4398_s9 }
 0x610   : > { %3430 = vmatpush.xpose.msk.msrb.mxu0 %vm1243_vm1, %v5005_v15 }
 0x613   : > { %1921 = vrot.lane.b32.xlu0 %v5012_v23, %s4399_s4  ;;  %1919 = vrot.lane.b32.xlu1 %v5005_v15, %s4399_s4 }
 0x614   : > { %3431 = vmatpush.xpose.msk.msrb.mxu0 %vm1243_vm1, %v4999_v10  ;;  %1911 = vrot.lane.b32.xlu2 %v5005_v15, %s4397_s20 }
 0x618   : > { %3432 = vmatpush.xpose.msk.msrb.mxu0 %vm1243_vm1, %v5010_v20 }
 0x61b   : > { %1907 = vrot.lane.b32.xlu0 %v5010_v20, %s4397_s20  ;;  %1917 = vrot.lane.b32.xlu1 %v4999_v10, %s4399_s4 }
 0x641   : > { %v1682_v47 = vpop.xlane.xlu1 %1681 }
 0x642   : > { %v1686_v50 = vmul.f32 %v1682_v47, %v4959_v11 }
 0x644   : > { %v1688_v51 = vadd.f32 1e-05, %v1686_v50 }
 0x646   : > { %3822 = vrsqrt.f32 %v1688_v51  ;;  %vm1696_vm6 = vweird.f32 %v1688_v51 }
 0x64c   : > { %v3823_v53 = vpop.eup %3822 }
 0x64d   : > { %v1691_v54 = vmul.f32 %v3823_v53, %v1688_v51  ;;  %vm1697_vm5 = vweird.f32 %v3823_v53 }
 0x64e   : > { %vm1698_vm7 = vmor %vm1696_vm6, %vm1697_vm5 }
 0x64f   : > { %v1692_v55 = vmul.f32 %v3823_v53, %v1691_v54 }
 0x651   : > { %v1693_v56 = vmul.f32 0.5, %v1692_v55 }
 0x653   : > { %v1694_v58 = vsub.f32 1.5, %v1693_v56 }
 0x654   : > { %v1685_v59 = vpop.xlane.xlu2 %1684 }
 0x655   : > { %v1695_v61 = vmul.f32 %v3823_v53, %v1694_v58  ;;  %v1687_v62 = vmul.f32 %v1685_v59, %v4959_v11 }
 0x657   : > { %v1699_v0 = vsel %vm1698_vm7, %v3823_v53, %v1695_v61  ;;  %v1689_v1 = vadd.f32 1e-05, %v1687_v62 }
 0x658   : > { %v1710_v49 = vmul.f32 %v1699_v0, %v4962_v16 }
 0x659   : > { %3824 = vrsqrt.f32 %v1689_v1  ;;  %vm1706_vm9 = vweird.f32 %v1689_v1 }
 0x65a   : > { %v1713_v4 = vmul.f32 %v3776_v63, %v1710_v49 }
 0x65c   : > { %v4997_v6 = vadd.f32 %v3777_v3, %v1713_v4 }
 0x65e   : > { %3419 = vmatmul.msk.f32.vlgmr.msrb.gmra.mxu1 %vm1144_vm0, %v4997_v6 }
 0x65f   : > { %v3825_v8 = vpop.eup %3824 }
 0x660   : > { %v1701_v9 = vmul.f32 %v3825_v8, %v1689_v1  ;;  %vm1707_vm8 = vweird.f32 %v3825_v8 }
 0x661   : > { %vm1708_vm10 = vmor %vm1706_vm9, %vm1707_vm8 }
 0x662   : > { %v1702_v13 = vmul.f32 %v3825_v8, %v1701_v9 }
 0x664   : > { %v1703_v12 = vmul.f32 0.5, %v1702_v13 }
 0x666   : > { %v1704_v16 = vsub.f32 1.5, %v1703_v12  ;;  %v1906_v33 = vpop.permute.xlu2 %1905 }
 0x667   : > { %3435 = vmatpush.xpose.msk.msra.mxu1 %vm1243_vm1, %v1906_v33 }
 0x668   : > { %v1705_v17 = vmul.f32 %v3825_v8, %v1704_v16 }
 0x66a   : > { %v1709_v18 = vsel %vm1708_vm10, %v3825_v8, %v1705_v17 }
 0x66b   : > { %v1711_v19 = vmul.f32 %v1709_v18, %v4973_v26  ;;  %v1861_v26 = vpop.f32.mrf.mxu3 }
 0x66c   : > { %v5095_v52 = vadd.f32 %v3780_v41, %v1861_v26 }
 0x66d   : > { %v1714_v22 = vmul.f32 %v3776_v63, %v1711_v19  ;;  %v1902_v28 = vpop.permute.xlu1 %1901 }
 0x66e   : > { %v1912_v37 = vpop.permute.xlu2 %1911 }
 0x66f   : > { %v5014_v24 = vadd.f32 %v3777_v3, %v1714_v22 }
 0x671   : > { %3420 = vmatmul.msk.f32.gmra.mxu1 %vm1144_vm0, %v5014_v24 }
 0x673   : > { %v1864_v32 = vpop.f32.mrf.mxu3 }
 0x674   : > { %v5090_v50 = vadd.f32 %v3780_v41, %v1864_v32 }
 0x675   : > { %v1904_v29 = vpop.permute.xlu0 %1903 }
 0x676   : > { %3436 = vmatpush.xpose.msk.msra.mxu1 %vm1243_vm1, %v1904_v29  ;;  %v3690_v46 = vpack.i.bf16 %v1904_v29, %v1906_v33 }
 0x67a   : > { %3437 = vmatpush.xpose.msk.msra.mxu1 %vm1243_vm1, %v1902_v28 }
 0x67b   : > { %v1867_v36 = vpop.f32.mrf.mxu3 }
 0x67c   : > { %v5084_v47 = vadd.f32 %v3780_v41, %v1867_v36 }
 0x67d   : > { %v1914_v34 = vpop.permute.xlu1 %1913  ;;  %v1900_v35 = vpop.permute.xlu0 %1899 }
 0x67e   : > { %3441 = vmatpush.xpose.msk.msra.mxu0 %vm1243_vm1, %v1914_v34  ;;  %3438 = vmatpush.xpose.msk.msra.mxu1 %vm1243_vm1, %v1900_v35  ;;  %v3695_v48 = vpack.i.bf16 %v1900_v35, %v1902_v28  ;;  %v1873_v28 = vld [vmem:[%s5138_s18] sm:$0xff] }
 0x682   : > { %3442 = vmatpush.xpose.msk.msra.mxu0 %vm1243_vm1, %v1912_v37 }
 0x683   : > { %v1870_v43 = vpop.f32.mrf.mxu3 }
 0x684   : > { %v5075_v44 = vadd.f32 %v3780_v41, %v1870_v43  ;;  %v1875_v41 = vld [vmem:[%s5138_s18 + $0x10] sm:$0xff] }
 0x685   : > { %v1922_v39 = vpop.permute.xlu0 %1921  ;;  %v1920_v42 = vpop.permute.xlu1 %1919 }
 0x686   : > { %3447 = vmatpush.xpose.msk.msrb.mxu1 %vm1243_vm1, %v1922_v39  ;;  %v3700_v51 = vpack.i.bf16 %v1922_v39, %v1914_v34  ;;  %v3705_v53 = vpack.i.bf16 %v1920_v42, %v1912_v37 }
 0x68a   : > { %3448 = vmatpush.xpose.msk.msrb.mxu1 %vm1243_vm1, %v1920_v42 }
 0x68d   : > { %v1918_v45 = vpop.permute.xlu1 %1917  ;;  %v1908_v57 = vpop.permute.xlu0 %1907 }
 0x68e   : > { %3449 = vmatpush.xpose.msk.msrb.mxu1 %vm1243_vm1, %v1918_v45 }
 0x6db   : > { %v1753_v30 = vpop.f32.mrf.mxu1 }
 0x6dc   : > { %v5044_v31 = vadd.f32 %v3779_v27, %v1753_v30 }
 0x6de   : > { %1883 = vrot.lane.b32.xlu2 %v5044_v31, %s4398_s9  ;;  %1887 = vrot.lane.b32.xlu1 %v5044_v31, %s4397_s20 }
 0x6df   : > { %3433 = vmatmul.msk.f32.vlgmr.msrb.gmra.mxu0 %vm1243_vm1, %v5044_v31 }
 0x6e6   : > { %1909 = vrot.lane.b32.xlu2 %v4999_v10, %s4397_s20 }
 0x6ee   : > { %v1756_v38 = vpop.f32.mrf.mxu1  ;;  %1915 = vrot.lane.b32.xlu2 %v5010_v20, %s4399_s4 }
 0x6ef   : > { %v5062_v40 = vadd.f32 %v3779_v27, %v1756_v38 }
 0x6f1   : > { %1893 = vrot.lane.b32.xlu1 %v5062_v40, %s4399_s4  ;;  %1885 = vrot.lane.b32.xlu0 %v5062_v40, %s4398_s9 }
 0x6f2   : > { %3434 = vmatmul.msk.f32.gmra.mxu0 %vm1243_vm1, %v5062_v40 }
 0x6f6   : > { %1889 = vrot.lane.b32.xlu2 %v5062_v40, %s4397_s20 }
 0x6f9   : > { %1891 = vrot.lane.b32.xlu0 %v5044_v31, %s4399_s4  ;;  %2363 = vrot.lane.b32.xlu1 %v5075_v44, %s4398_s9 }
 0x6fe   : > { %3691 = vrot.lane.b32.xlu2 %v3690_v46, %s4400_s26 }
 0x701   : > { %3696 = vrot.lane.b32.xlu0 %v3695_v48, %s4400_s26  ;;  %2361 = vrot.lane.b32.xlu1 %v5084_v47, %s4398_s9 }
 0x709   : > { %2359 = vrot.lane.b32.xlu0 %v5090_v50, %s4398_s9  ;;  %3701 = vrot.lane.b32.xlu1 %v3700_v51, %s4400_s26 }
 0x711   : > { %2357 = vrot.lane.b32.xlu0 %v5095_v52, %s4398_s9  ;;  %3706 = vrot.lane.b32.xlu1 %v3705_v53, %s4400_s26 }
 0x719   : > { %2371 = vrot.lane.b32.xlu0 %v5075_v44, %s4397_s20 }
 0x721   : > { %2377 = vrot.lane.b32.xlu0 %v5084_v47, %s4399_s4 }
 0x738   : > { %v1884_v54 = vpop.permute.xlu2 %1883 }
 0x739   : > { %3439 = vmatmul.msk.f32.vlgmr.msra.gmra.mxu1 %vm1243_vm1, %v1884_v54  ;;  %2420 = vrot.lane.b32.xlu0 %v1884_v54, %s4400_s26 }
 0x740   : > { %v1910_v55 = vpop.permute.xlu2 %1909 }
 0x741   : > { %v3710_v56 = vpack.i.bf16 %v1918_v45, %v1910_v55  ;;  %3443 = vmatpush.xpose.msk.msra.mxu0 %vm1243_vm1, %v1910_v55 }
 0x743   : > { %3711 = vrot.lane.b32.xlu1 %v3710_v56, %s4400_s26 }
 0x745   : > { %3444 = vmatpush.xpose.msk.msra.mxu0 %vm1243_vm1, %v1908_v57 }
 0x748   : > { %v1916_v58 = vpop.permute.xlu2 %1915 }
 0x749   : > { %v3715_v59 = vpack.i.bf16 %v1916_v58, %v1908_v57  ;;  %3450 = vmatpush.xpose.msk.msrb.mxu1 %vm1243_vm1, %v1916_v58  ;;  %v1877_v58 = vld [vmem:[%s5138_s18 + $0x20] sm:$0xff] }
 0x74b   : > { %3716 = vrot.lane.b32.xlu2 %v3715_v59, %s4400_s26 }
 0x750   : > { %v5111_v60 = vpop.permute.xlu1 %1887  ;;  %v5117_v61 = vpop.permute.xlu2 %1889 }
 0x751   : > { %3445 = vmatmul.msk.f32.vlgmr.msra.gmra.mxu0 %vm1243_vm1, %v5111_v60 }
 0x753   : > { %2379 = vrot.lane.b32.xlu2 %v5075_v44, %s4399_s4 }
 0x758   : > { %v3692_v0 = vpop.permute.xlu2 %3691 }
 0x759   : > { %3446 = vmatmul.msk.f32.gmra.mxu0 %vm1243_vm1, %v5117_v61  ;;  %v3693_v1 = vunpack.i.l.bf16 %v3692_v0  ;;  %v3694_v49 = vunpack.i.h.bf16 %v3692_v0 }
 0x75b   : > { %2369 = vrot.lane.b32.xlu2 %v5084_v47, %s4397_s20  ;;  %2222 = vmatpush.msra.mxu3 %v3693_v1  ;;  %v1876_v1 = vld [vmem:[%s5138_s18 + $0x18] sm:$0xff] }
 0x75c   : > { %v1952_v2 = vpop.f32.mrf.mxu0 }
 0x75d   : > { %2223 = vmatpush.msra.mxu3 %v3694_v49  ;;  %v5168_v33 = vadd.f32 %v1952_v2, %v1873_v28 }
 0x75f   : > { %v2063_v34 = vsel %vm1610_vm2, %v5168_v33, -inf }
 0x763   : > { %v5123_v62 = vpop.permute.xlu1 %1893  ;;  %2367 = vrot.lane.b32.xlu2 %v5090_v50, %s4397_s20  ;;  %v1886_v63 = vpop.permute.xlu0 %1885 }
 0x764   : > { %3440 = vmatmul.msk.f32.gmra.mxu1 %vm1243_vm1, %v1886_v63  ;;  %2422 = vrot.lane.b32.xlu1 %v1886_v63, %s4400_s26 }
 0x76b   : > { %v5129_v3 = vpop.permute.xlu0 %1891  ;;  %v5131_v4 = vpop.permute.xlu1 %2363 }
 0x76c   : > { %3451 = vmatmul.msk.f32.vlgmr.msrb.gmra.mxu1 %vm1243_vm1, %v5129_v3 }
 0x76f   : > { %v1955_v7 = vpop.f32.mrf.mxu0 }
 0x770   : > { %v5143_v8 = vadd.f32 %v1955_v7, %v1874_v5  ;;  %v1879_v7 = vld [vmem:[%s5138_s18 + $0x30] sm:$0xff] }
 0x772   : > { %v2066_v9 = vsel %vm1610_vm2, %v5143_v8, -inf }
 0x773   : > { %2067 = vmax.xlane.f32.xlu0 %v2066_v9  ;;  %v3697_v13 = vpop.permute.xlu0 %3696  ;;  %v5147_v12 = vpop.permute.xlu1 %2361 }
 0x774   : > { %3452 = vmatmul.msk.f32.gmra.mxu1 %vm1243_vm1, %v5123_v62  ;;  %v3699_v14 = vunpack.i.h.bf16 %v3697_v13  ;;  %v3698_v16 = vunpack.i.l.bf16 %v3697_v13  ;;  %v3730_v17 = vpack.i.bf16 %v5147_v12, %v5131_v4 }
 0x776   : > { %2224 = vmatpush.msra.mxu3 %v3698_v16  ;;  %v1880_v16 = vld [vmem:[%s5138_s18 + $0x38] sm:$0xff] }
 0x778   : > { %2225 = vmatpush.msra.mxu3 %v3699_v14 }
 0x77a   : > { %3467 = vmatpush.xpose.msk.msrb.mxu3 %vm1243_vm1, %v5131_v4 }
 0x77b   : > { %v5155_v18 = vpop.permute.xlu0 %2359  ;;  %v3702_v19 = vpop.permute.xlu1 %3701 }
 0x77c   : > { %v3704_v21 = vunpack.i.h.bf16 %v3702_v19  ;;  %v3703_v22 = vunpack.i.l.bf16 %v3702_v19  ;;  %v1878_v19 = vld [vmem:[%s5138_s18 + $0x28] sm:$0xff] }
 0x77e   : > { %3468 = vmatpush.xpose.msk.msrb.mxu3 %vm1243_vm1, %v5147_v12  ;;  %2263 = vmatpush.msrb.mxu0 %v3703_v22 }
 0x77f   : > { %2304 = vmatpush.msra.mxu1 %v3704_v21 }
 0x782   : > { %3469 = vmatpush.xpose.msk.msrb.mxu3 %vm1243_vm1, %v5155_v18 }
 0x783   : > { %v5161_v26 = vpop.permute.xlu0 %2357  ;;  %v3707_v27 = vpop.permute.xlu1 %3706 }
 0x784   : > { %v3735_v29 = vpack.i.bf16 %v5161_v26, %v5155_v18  ;;  %v3709_v30 = vunpack.i.h.bf16 %v3707_v27  ;;  %v3708_v32 = vunpack.i.l.bf16 %v3707_v27 }
 0x786   : > { %3470 = vmatpush.xpose.msk.msrb.mxu3 %vm1243_vm1, %v5161_v26  ;;  %2264 = vmatpush.msrb.mxu0 %v3708_v32 }
 0x787   : > { %2305 = vmatpush.msra.mxu1 %v3709_v30 }
 0x78b   : > { %v5172_v36 = vpop.permute.xlu0 %2371 }
 0x78c   : > { %2064 = vmax.xlane.f32.xlu2 %v2063_v34 }
 0x793   : > { %v5178_v39 = vpop.permute.xlu0 %2377 }
 0x7a5   : > { %v3717_v35 = vpop.permute.xlu2 %3716 }
 0x7a6   : > { %v3719_v54 = vunpack.i.h.bf16 %v3717_v35  ;;  %v3718_v55 = vunpack.i.l.bf16 %v3717_v35 }
 0x7ab   : > { %v5210_v34 = vpop.permute.xlu0 %2420 }
 0x7ad   : > { %v5174_v37 = vpop.permute.xlu2 %2379 }
 0x7ae   : > { %v3740_v38 = vpack.i.bf16 %v5174_v37, %v5172_v36 }
 0x7b5   : > { %v3712_v42 = vpop.permute.xlu1 %3711  ;;  %v5181_v43 = vpop.permute.xlu2 %2369 }
 0x7b6   : > { %v3714_v45 = vunpack.i.h.bf16 %v3712_v42  ;;  %v3713_v46 = vunpack.i.l.bf16 %v3712_v42  ;;  %v1987_v48 = vpop.f32.mrf.mxu1  ;;  %v3745_v51 = vpack.i.bf16 %v5178_v39, %v5181_v43 }
 0x7b7   : > { %v1988_v53 = vadd.f32 %v1987_v48, %v1875_v41 }
 0x7b8   : > { %2265 = vmatpush.msrb.mxu0 %v3713_v46  ;;  %2306 = vmatpush.msra.mxu1 %v3714_v45 }
 0x7b9   : > { %v2069_v56 = vsel %vm1610_vm2, %v1988_v53, -inf }
 0x7ba   : > { %2266 = vmatpush.msrb.mxu0 %v3718_v55  ;;  %2307 = vmatpush.msra.mxu1 %v3719_v54 }
 0x7bb   : > { %2070 = vmax.xlane.f32.xlu0 %v2069_v56 }
 0x7bc   : > { %3473 = vmatpush.xpose.msk.msra.mxu0 %vm1243_vm1, %v5172_v36  ;;  %3479 = vmatpush.xpose.msk.msrb.mxu1 %vm1243_vm1, %v5174_v37 }
 0x7bd   : > { %v5192_v57 = vpop.permute.xlu2 %2367 }
 0x7c0   : > { %3474 = vmatpush.xpose.msk.msra.mxu0 %vm1243_vm1, %v5181_v43  ;;  %3480 = vmatpush.xpose.msk.msrb.mxu1 %vm1243_vm1, %v5178_v39 }
 0x7c4   : > { %3475 = vmatpush.xpose.msk.msra.mxu0 %vm1243_vm1, %v5192_v57 }
 0x7ce   : > { %v2022_v59 = vpop.f32.mrf.mxu0 }
 0x7cf   : > { %v2023_v63 = vadd.f32 %v2022_v59, %v1877_v58  ;;  %2375 = vrot.lane.b32.xlu0 %v5090_v50, %s4399_s4 }
 0x7d1   : > { %v2075_v0 = vsel %vm1610_vm2, %v2023_v63, -inf }
 0x7d2   : > { %2076 = vmax.xlane.f32.xlu1 %v2075_v0 }
 0x7d6   : > { %v2025_v21 = vpop.f32.mrf.mxu0  ;;  %v5213_v54 = vpop.permute.xlu1 %2422 }
 0x7d7   : > { %v2026_v28 = vadd.f32 %v2025_v21, %v1878_v19 }
 0x7d9   : > { %v2078_v32 = vsel %vm1610_vm2, %v2026_v28, -inf }
 0x7e1   : > { %v1990_v2 = vpop.f32.mrf.mxu1 }
 0x7e2   : > { %v1991_v49 = vadd.f32 %v1990_v2, %v1876_v1 }
 0x7e4   : > { %v2072_v5 = vsel %vm1610_vm2, %v1991_v49, -inf }
 0x7e5   : > { %2073 = vmax.xlane.f32.xlu2 %v2072_v5 }
 0x7e6   : > { %v2068_v35 = vpop.xlane.xlu0 %2067 }
 0x7e9   : > { %v2057_v9 = vpop.f32.mrf.mxu1 }
 0x7ea   : > { %v2058_v13 = vadd.f32 %v2057_v9, %v1879_v7 }
 0x7ec   : > { %v2081_v14 = vsel %vm1610_vm2, %v2058_v13, -inf }
 0x7ed   : > { %2082 = vmax.xlane.f32.xlu2 %v2081_v14 }
 0x7f1   : > { %v2060_v22 = vpop.f32.mrf.mxu1 }
 0x7f2   : > { %v2061_v27 = vadd.f32 %v2060_v22, %v1880_v16 }
 0x7f4   : > { %v2084_v30 = vsel %vm1610_vm2, %v2061_v27, -inf }
 0x7f5   : > { %2085 = vmax.xlane.f32.xlu1 %v2084_v30 }
 0x7f9   : > { %2079 = vmax.xlane.f32.xlu0 %v2078_v32 }
 0x82e   : > { %v2071_v41 = vpop.xlane.xlu0 %2070 }
 0x82f   : > { %v2089_v42 = vsub.f32 %v1988_v53, %v2071_v41  ;;  %v2065_v53 = vpop.xlane.xlu2 %2064 }
 0x830   : > { %v2087_v15 = vsub.f32 %v5168_v33, %v2065_v53 }
 0x831   : > { %v2099_v45 = vmul.f32 1.442695, %v2089_v42 }
 0x833   : > { %3826 = vpow2.f32 %v2099_v45 }
 0x839   : > { %v3827_v46 = vpop.eup %3826 }
 0x83a   : > { %v2117_v48 = vsel %vm1610_vm2, %v3827_v46, 0.0 }
 0x83b   : > { %2118 = vadd.xlane.f32.xlu1 %v2117_v48 }
 0x841   : > { %v5215_v55 = vpop.permute.xlu0 %2375 }
 0x842   : > { %3481 = vmatpush.xpose.msk.msrb.mxu1 %vm1243_vm1, %v5215_v55 }
 0x845   : > { %v2077_v56 = vpop.xlane.xlu1 %2076 }
 0x846   : > { %v2091_v58 = vsub.f32 %v2023_v63, %v2077_v56 }
 0x848   : > { %v2103_v59 = vmul.f32 1.442695, %v2091_v58 }
 0x84a   : > { %3828 = vpow2.f32 %v2103_v59 }
 0x850   : > { %v5219_v0 = vpop.eup %3828 }
 0x851   : > { %v2123_v1 = vsel %vm1610_vm2, %v5219_v0, 0.0 }
 0x852   : > { %2124 = vadd.xlane.f32.xlu0 %v2123_v1 }
 0x858   : > { %v2074_v2 = vpop.xlane.xlu2 %2073 }
 0x859   : > { %v2090_v5 = vsub.f32 %v1991_v49, %v2074_v2 }
 0x85b   : > { %v2101_v7 = vmul.f32 1.442695, %v2090_v5 }
 0x85d   : > { %3830 = vpow2.f32 %v2101_v7 }
 0x860   : > { %v2083_v21 = vpop.xlane.xlu2 %2082 }
 0x861   : > { %v2093_v49 = vsub.f32 %v2058_v13, %v2083_v21 }
 0x863   : > { %v5223_v9 = vpop.eup %3830  ;;  %v2107_v42 = vmul.f32 1.442695, %v2093_v49 }
 0x864   : > { %v2120_v14 = vsel %vm1610_vm2, %v5223_v9, 0.0 }
 0x865   : > { %2121 = vadd.xlane.f32.xlu1 %v2120_v14 }
 0x866   : > { %2373 = vrot.lane.b32.xlu0 %v5095_v52, %s4399_s4  ;;  %s5754_s4 = sld [smem:[#allocation53_spill]] }
 0x868   : > { %v2086_v63 = vpop.xlane.xlu1 %2085 }
 0x869   : > { %v2094_v16 = vsub.f32 %v2061_v27, %v2086_v63 }
 0x86b   : > { %v2109_v19 = vmul.f32 1.442695, %v2094_v16 }
 0x86c   : > { %v2080_v22 = vpop.xlane.xlu0 %2079 }
 0x86d   : > { %3832 = vpow2.f32 %v2109_v19  ;;  %v2092_v30 = vsub.f32 %v2026_v28, %v2080_v22 }
 0x86e   : > { %2459 = vrot.lane.b32.xlu0 %v5111_v60, %s4400_s26  ;;  %v3725_v60 = vpack.i.bf16 %v5010_v20, %v4999_v10  ;;  %v2088_v10 = vsub.f32 %v5143_v8, %v2068_v35 }
 0x86f   : > { %v2105_v32 = vmul.f32 1.442695, %v2092_v30 }
 0x870   : > { %v2097_v20 = vmul.f32 1.442695, %v2088_v10 }
 0x871   : > { %3834 = vpow2.f32 %v2105_v32 }
 0x872   : > { %3836 = vpow2.f32 %v2107_v42 }
 0x873   : > { %v5231_v41 = vpop.eup %3832  ;;  %3838 = vpow2.f32 %v2097_v20 }
 0x874   : > { %v2132_v45 = vsel %vm1610_vm2, %v5231_v41, 0.0 }
 0x875   : > { %2133 = vadd.xlane.f32.xlu1 %v2132_v45 }
 0x876   : > { %2498 = vrot.lane.b32.xlu0 %v5129_v3, %s4400_s26 }
 0x877   : > { %v3835_v27 = vpop.eup %3834 }
 0x878   : > { %v2126_v28 = vsel %vm1610_vm2, %v3835_v27, 0.0  ;;  %v3837_v13 = vpop.eup %3836 }
 0x879   : > { %2127 = vadd.xlane.f32.xlu2 %v2126_v28  ;;  %v2129_v48 = vsel %vm1610_vm2, %v3837_v13, 0.0  ;;  %v5260_v23 = vpop.eup %3838 }
 0x87a   : > { %v2114_v3 = vsel %vm1610_vm2, %v5260_v23, 0.0 }
 0x87e   : > { %3726 = vrot.lane.b32.xlu0 %v3725_v60, %s4400_s26 }
 0x881   : > { %2130 = vadd.xlane.f32.xlu2 %v2129_v48 }
 0x886   : > { %2461 = vrot.lane.b32.xlu0 %v5117_v61, %s4400_s26 }
 0x88e   : > { %2500 = vrot.lane.b32.xlu0 %v5123_v62, %s4400_s26  ;;  %3721 = vrot.lane.b32.xlu1 %v3720_v25, %s4400_s26  ;;  %v2095_v25 = vmul.f32 1.442695, %v2087_v15 }
 0x896   : > { %2383 = vrot.lane.b32.xlu0 %v5062_v40, %s4400_s26 }
 0x899   : > { %2365 = vrot.lane.b32.xlu2 %v5095_v52, %s4397_s20  ;;  %s3506_s20 = sshll.u32 %s4561_s8, 4  ;;  %s3069_s8 = scalar_lea.sflag [#allocation4], %s4771_s0 }
 0x89e   : > { %3736 = vrot.lane.b32.xlu0 %v3735_v29, %s4400_s26 }
 0x8ae   : > { %v2119_v61 = vpop.xlane.xlu1 %2118 }
 0x8af   : > { %3840 = vrcp.f32 %v2119_v61 }
 0x8b0   : > { %3842 = vpow2.f32 %v2095_v25 }
 0x8b5   : > { %v3841_v40 = vpop.eup %3840 }
 0x8b6   : > { %v2145_v62 = vmul.f32 %v3841_v40, %v3827_v46  ;;  %v5265_v18 = vpop.eup %3842 }
 0x8b7   : > { %v2111_v8 = vsel %vm1610_vm2, %v5265_v18, 0.0 }
 0x8b8   : > { %3455 = vmatmul.msk.f32.vlgmr.msra.gmra.mxu3 %vm1610_vm2, %v2145_v62  ;;  %2115 = vadd.xlane.f32.xlu1 %v2114_v3  ;;  %v2348_v3 = vld [vmem:[%s4792_s6 + $0x18] sm:$0xff] }
 0x8c2   : > { %2112 = vadd.xlane.f32.xlu2 %v2111_v8 }
 0x8c5   : > { %v2125_v26 = vpop.xlane.xlu0 %2124 }
 0x8c6   : > { %3844 = vrcp.f32 %v2125_v26 }
 0x8cc   : > { %v3845_v29 = vpop.eup %3844 }
 0x8cd   : > { %v2147_v33 = vmul.f32 %v3845_v29, %v5219_v0  ;;  %v3750_v29 = vpack.i.bf16 %v5215_v55, %v5192_v57  ;;  %v2346_v55 = vld [vmem:[%s4792_s6 + $0x8] sm:$0xff] }
 0x8cf   : > { %3457 = vmatmul.msk.f32.vlgmr.msrb.gmra.mxu0 %vm1610_vm2, %v2147_v33 }
 0x8d1   : > { %3731 = vrot.lane.b32.xlu1 %v3730_v17, %s4400_s26 }
 0x8d8   : > { %v5275_v35 = vpop.permute.xlu0 %2373  ;;  %v2122_v46 = vpop.xlane.xlu1 %2121 }
 0x8d9   : > { %3846 = vrcp.f32 %v2122_v46  ;;  %3482 = vmatpush.xpose.msk.msrb.mxu1 %vm1243_vm1, %v5275_v35 }
 0x8da   : > { %2381 = vrot.lane.b32.xlu2 %v5044_v31, %s4400_s26 }
 0x8df   : > { %v3847_v56 = vpop.eup %3846 }
 0x8e0   : > { %v2146_v58 = vmul.f32 %v3847_v56, %v5223_v9  ;;  %v2460_v59 = vpop.permute.xlu0 %2459 }
 0x8e2   : > { %3456 = vmatmul.msk.f32.gmra.mxu3 %vm1610_vm2, %v2146_v58  ;;  %v2345_v58 = vld [vmem:[%s4792_s6] sm:$0xff] }
 0x8e8   : > { %v2499_v17 = vpop.permute.xlu0 %2498  ;;  %v2134_v31 = vpop.xlane.xlu1 %2133 }
 0x8ea   : > { %3471 = vmatmul.msk.f32.vlgmr.msrb.gmra.mxu3 %vm1243_vm1, %v5210_v34 }
 0x8ec   : > { %v2128_v4 = vpop.xlane.xlu2 %2127 }
 0x8ed   : > { %3848 = vrcp.f32 %v2128_v4 }
 0x8f0   : > { %v3727_v7 = vpop.permute.xlu0 %3726 }
 0x8f1   : > { %v3728_v19 = vunpack.i.l.bf16 %v3727_v7  ;;  %v3729_v21 = vunpack.i.h.bf16 %v3727_v7 }
 0x8f2   : > { %3472 = vmatmul.msk.f32.gmra.mxu3 %vm1243_vm1, %v5213_v54 }
 0x8f3   : > { %v3849_v12 = vpop.eup %3848 }
 0x8f4   : > { %v2131_v0 = vpop.xlane.xlu2 %2130  ;;  %v2148_v53 = vmul.f32 %v3849_v12, %v3835_v27 }
 0x8f5   : > { %3850 = vrcp.f32 %v2131_v0  ;;  %v2347_v0 = vld [vmem:[%s4792_s6 + $0x10] sm:$0xff] }
 0x8f6   : > { %3458 = vmatmul.msk.f32.gmra.mxu0 %vm1610_vm2, %v2148_v53  ;;  %3852 = vrcp.f32 %v2134_v31 }
 0x8f8   : > { %v2462_v22 = vpop.permute.xlu0 %2461 }
 0x8fb   : > { %v3851_v1 = vpop.eup %3850 }
 0x8fc   : > { %v2149_v2 = vmul.f32 %v3851_v1, %v3837_v13  ;;  %v5288_v5 = vpop.permute.xlu2 %2365  ;;  %v3853_v9 = vpop.eup %3852 }
 0x8fd   : > { %v3755_v34 = vpack.i.bf16 %v5275_v35, %v5288_v5  ;;  %3476 = vmatpush.xpose.msk.msra.mxu0 %vm1243_vm1, %v5288_v5  ;;  %v2150_v16 = vmul.f32 %v3853_v9, %v5231_v41  ;;  %v2349_v9 = vld [vmem:[%s4792_s6 + $0x20] sm:$0xff] }
 0x8fe   : > { %3459 = vmatmul.msk.f32.vlgmr.msra.gmra.mxu1 %vm1610_vm2, %v2149_v2 }
 0x900   : > { %3477 = vmatmul.msk.f32.vlgmr.msra.gmra.mxu0 %vm1243_vm1, %v2460_v59  ;;  %v3722_v54 = vpop.permute.xlu1 %3721  ;;  %v2501_v30 = vpop.permute.xlu0 %2500 }
 0x901   : > { %v3723_v14 = vunpack.i.l.bf16 %v3722_v54  ;;  %v3724_v63 = vunpack.i.h.bf16 %v3722_v54 }
 0x903   : > { %2181 = vmatpush.msra.mxu2 %v3723_v14 }
 0x905   : > { %2182 = vmatpush.msra.mxu2 %v3724_v63 }
 0x906   : > { %3460 = vmatmul.msk.f32.gmra.mxu1 %vm1610_vm2, %v2150_v16 }
 0x907   : > { %2183 = vmatpush.msra.mxu2 %v3728_v19  ;;  %v2350_v19 = vld [vmem:[%s4792_s6 + $0x28] sm:$0xff] }
 0x908   : > { %3478 = vmatmul.msk.f32.gmra.mxu0 %vm1243_vm1, %v2462_v22  ;;  %v2384_v41 = vpop.permute.xlu0 %2383 }
 0x909   : > { %2184 = vmatpush.msra.mxu2 %v3729_v21 }
 0x90b   : > { %3461 = vmatpush.xpose.msk.msrb.mxu2 %vm1243_vm1, %v5075_v44 }
 0x90e   : > { %3483 = vmatmul.msk.f32.vlgmr.msrb.gmra.mxu1 %vm1243_vm1, %v2499_v17 }
 0x90f   : > { %3462 = vmatpush.xpose.msk.msrb.mxu2 %vm1243_vm1, %v5084_v47 }
 0x910   : > { %v3737_v13 = vpop.permute.xlu0 %3736 }
 0x911   : > { %v3738_v20 = vunpack.i.l.bf16 %v3737_v13  ;;  %v3739_v61 = vunpack.i.h.bf16 %v3737_v13 }
 0x913   : > { %3463 = vmatpush.xpose.msk.msrb.mxu2 %vm1243_vm1, %v5090_v50 }
 0x916   : > { %3484 = vmatmul.msk.f32.gmra.mxu1 %vm1243_vm1, %v2501_v30 }
 0x917   : > { %3464 = vmatpush.xpose.msk.msrb.mxu2 %vm1243_vm1, %v5095_v52 }
 0x92b   : > { %v2116_v32 = vpop.xlane.xlu1 %2115 }
 0x935   : > { %v2113_v49 = vpop.xlane.xlu2 %2112 }
 0x936   : > { %3854 = vrcp.f32 %v2113_v49 }
 0x937   : > { %3856 = vrcp.f32 %v2116_v32  ;;  %v2351_v32 = vld [vmem:[%s4792_s6 + $0x30] sm:$0xff] }
 0x93b   : > { %v5315_v25 = vpop.f32.mrf.mxu3 }
 0x93c   : > { %v3855_v42 = vpop.eup %3854 }
 0x93d   : > { %v2143_v45 = vmul.f32 %v3855_v42, %v5265_v18  ;;  %v3857_v27 = vpop.eup %3856  ;;  %v2382_v15 = vpop.permute.xlu2 %2381 }
 0x93e   : > { %v2144_v48 = vmul.f32 %v3857_v27, %v5260_v23 }
 0x93f   : > { %3453 = vmatmul.msk.f32.vlgmr.msra.gmra.mxu2 %vm1610_vm2, %v2143_v45  ;;  %v2352_v45 = vld [vmem:[%s4792_s6 + $0x38] sm:$0xff] }
 0x943   : > { %v3732_v28 = vpop.permute.xlu1 %3731 }
 0x944   : > { %v3733_v60 = vunpack.i.l.bf16 %v3732_v28  ;;  %v3734_v10 = vunpack.i.h.bf16 %v3732_v28 }
 0x946   : > { %2696 = vmatpush.msra.mxu3 %v3733_v60 }
 0x947   : > { %3454 = vmatmul.msk.f32.gmra.mxu2 %vm1610_vm2, %v2144_v48 }
 0x948   : > { %2697 = vmatpush.msra.mxu3 %v3734_v10 }
 0x94a   : > { %2698 = vmatpush.msra.mxu3 %v3738_v20 }
 0x94c   : > { %2699 = vmatpush.msra.mxu3 %v3739_v61  ;;  %v5330_v56 = vpop.f32.mrf.mxu0 }
 0x94f   : > { %3465 = vmatmul.msk.f32.vlgmr.msrb.gmra.mxu2 %vm1243_vm1, %v2382_v15 }
 0x957   : > { %3466 = vmatmul.msk.f32.gmra.mxu2 %vm1243_vm1, %v2384_v41 }
 0x965   : > { %v5317_v40 = vpop.f32.mrf.mxu3 }
 0x966   : > { %v3770_v23 = vpack.i.bf16 %v5317_v40, %v5315_v25  ;;  %v2841_v40 = vld [vmem:[%s5754_s4 + $0x60] sm:$0xff] }
 0x96d   : > { %v2453_v62 = vpop.f32.mrf.mxu3 }
 0x96e   : > { %v2454_v53 = vadd.f32 %v2453_v62, %v2347_v0 }
 0x970   : > { %v2543_v54 = vsel %vm1610_vm2, %v2454_v53, -inf }
 0x973   : > { %v5335_v12 = vpop.f32.mrf.mxu0 }
 0x975   : > { %v2456_v18 = vpop.f32.mrf.mxu3 }
 0x976   : > { %v2457_v8 = vadd.f32 %v2456_v18, %v2348_v3 }
 0x978   : > { %v2546_v26 = vsel %vm1610_vm2, %v2457_v8, -inf }
 0x979   : > { %2547 = vmax.xlane.f32.xlu2 %v2546_v26 }
 0x97b   : > { %v5340_v57 = vpop.f32.mrf.mxu1 }
 0x97d   : > { %v2492_v2 = vpop.f32.mrf.mxu0 }
 0x97e   : > { %v2493_v14 = vadd.f32 %v2492_v2, %v2349_v9 }
 0x980   : > { %v2549_v16 = vsel %vm1610_vm2, %v2493_v14, -inf }
 0x983   : > { %v5349_v63 = vpop.f32.mrf.mxu1 }
 0x985   : > { %v2495_v21 = vpop.f32.mrf.mxu0 }
 0x986   : > { %v2496_v22 = vadd.f32 %v2495_v21, %v2350_v19  ;;  %v3760_v21 = vpack.i.bf16 %v5084_v47, %v5075_v44  ;;  %v3765_v44 = vpack.i.bf16 %v5095_v52, %v5090_v50 }
 0x988   : > { %v2552_v49 = vsel %vm1610_vm2, %v2496_v22, -inf }
 0x98b   : > { %v2531_v30 = vpop.f32.mrf.mxu1 }
 0x98c   : > { %v2532_v41 = vadd.f32 %v2531_v30, %v2351_v32 }
 0x98e   : > { %v2555_v42 = vsel %vm1610_vm2, %v2532_v41, -inf }
 0x991   : > { %3751 = vrot.lane.b32.xlu2 %v3750_v29, %s4400_s26 }
 0x993   : > { %v2534_v27 = vpop.f32.mrf.mxu1 }
 0x994   : > { %v2535_v28 = vadd.f32 %v2534_v27, %v2352_v45 }
 0x996   : > { %v2558_v60 = vsel %vm1610_vm2, %v2535_v28, -inf }
 0x9c2   : > { %v5326_v33 = vpop.f32.mrf.mxu2 }
 0x9ca   : > { %v5328_v46 = vpop.f32.mrf.mxu2 }
 0x9d2   : > { %v2414_v59 = vpop.f32.mrf.mxu2 }
 0x9d3   : > { %v5333_v4 = vadd.f32 %v2414_v59, %v2345_v58 }
 0x9d5   : > { %v2537_v17 = vsel %vm1610_vm2, %v5333_v4, -inf }
 0x9d6   : > { %2538 = vmax.xlane.f32.xlu0 %v2537_v17 }
 0x9da   : > { %v2417_v31 = vpop.f32.mrf.mxu2 }
 0x9db   : > { %v5343_v1 = vadd.f32 %v2417_v31, %v2346_v55 }
 0x9dd   : > { %v2540_v7 = vsel %vm1610_vm2, %v5343_v1, -inf }
 0x9de   : > { %2541 = vmax.xlane.f32.xlu1 %v2540_v7  ;;  %2544 = vmax.xlane.f32.xlu0 %v2543_v54 }
 0x9e6   : > { %2550 = vmax.xlane.f32.xlu1 %v2549_v16 }
 0x9ec   : > { %v2548_v10 = vpop.xlane.xlu2 %2547 }
 0x9ed   : > { %v2564_v15 = vsub.f32 %v2457_v8, %v2548_v10 }
 0x9ee   : > { %2553 = vmax.xlane.f32.xlu1 %v2552_v49 }
 0x9ef   : > { %v2575_v37 = vmul.f32 1.442695, %v2564_v15 }
 0x9f2   : > { %3746 = vrot.lane.b32.xlu0 %v3745_v51, %s4400_s26 }
 0x9f6   : > { %2556 = vmax.xlane.f32.xlu1 %v2555_v42 }
 0x9fe   : > { %2559 = vmax.xlane.f32.xlu1 %v2558_v60 }
 0xa17   : > { %3741 = vrot.lane.b32.xlu1 %v3740_v38, %s4400_s26 }
 0xa49   : > { %v5366_v13 = vpop.xlane.xlu0 %2538 }
 0xa4a   : > { %v2561_v47 = vsub.f32 %v5333_v4, %v5366_v13 }
 0xa4c   : > { %v2569_v60 = vmul.f32 1.442695, %v2561_v47  ;;  %v2840_v47 = vld [vmem:[%s5754_s4 + $0x58] sm:$0xff] }
 0xa51   : > { %v5368_v48 = vpop.xlane.xlu1 %2541  ;;  %v2545_v39 = vpop.xlane.xlu0 %2544 }
 0xa52   : > { %v2563_v43 = vsub.f32 %v2454_v53, %v2545_v39  ;;  %v2562_v39 = vsub.f32 %v5343_v1, %v5368_v48 }
 0xa54   : > { %v2573_v51 = vmul.f32 1.442695, %v2563_v43  ;;  %v2571_v43 = vmul.f32 1.442695, %v2562_v39  ;;  %v2838_v39 = vld [vmem:[%s5754_s4 + $0x48] sm:$0xff] }
 0xa56   : > { %3858 = vpow2.f32 %v2573_v51 }
 0xa59   : > { %v2551_v20 = vpop.xlane.xlu1 %2550 }
 0xa5a   : > { %v2565_v61 = vsub.f32 %v2493_v14, %v2551_v20 }
 0xa5c   : > { %v2577_v62 = vmul.f32 1.442695, %v2565_v61  ;;  %v5370_v3 = vpop.eup %3858 }
 0xa5d   : > { %v2591_v36 = vsel %vm1610_vm2, %v5370_v3, 0.0 }
 0xa5e   : > { %3860 = vpow2.f32 %v2577_v62  ;;  %2592 = vadd.xlane.f32.xlu0 %v2591_v36 }
 0xa5f   : > { %3862 = vpow2.f32 %v2575_v37 }
 0xa61   : > { %v2554_v38 = vpop.xlane.xlu1 %2553 }
 0xa62   : > { %v2566_v18 = vsub.f32 %v2496_v22, %v2554_v38 }
 0xa64   : > { %v5374_v26 = vpop.eup %3860  ;;  %v2579_v29 = vmul.f32 1.442695, %v2566_v18  ;;  %v3747_v22 = vpop.permute.xlu0 %3746 }
 0xa65   : > { %v2597_v58 = vsel %vm1610_vm2, %v5374_v26, 0.0  ;;  %v5378_v59 = vpop.eup %3862  ;;  %v3749_v42 = vunpack.i.h.bf16 %v3747_v22  ;;  %v3748_v45 = vunpack.i.l.bf16 %v3747_v22 }
 0xa66   : > { %3864 = vpow2.f32 %v2579_v29  ;;  %2598 = vadd.xlane.f32.xlu2 %v2597_v58  ;;  %v2594_v31 = vsel %vm1610_vm2, %v5378_v59, 0.0 }
 0xa69   : > { %v2557_v8 = vpop.xlane.xlu1 %2556 }
 0xa6a   : > { %v2567_v17 = vsub.f32 %v2532_v41, %v2557_v8  ;;  %v3752_v41 = vpop.permute.xlu2 %3751 }
 0xa6b   : > { %v3754_v27 = vunpack.i.h.bf16 %v3752_v41 }
 0xa6c   : > { %v5380_v0 = vpop.eup %3864  ;;  %v2581_v55 = vmul.f32 1.442695, %v2567_v17 }
 0xa6d   : > { %v2600_v53 = vsel %vm1610_vm2, %v5380_v0, 0.0 }
 0xa6e   : > { %3866 = vpow2.f32 %v2581_v55  ;;  %2601 = vadd.xlane.f32.xlu1 %v2600_v53  ;;  %2595 = vadd.xlane.f32.xlu2 %v2594_v31 }
 0xa71   : > { %v2560_v2 = vpop.xlane.xlu1 %2559 }
 0xa72   : > { %v2568_v7 = vsub.f32 %v2535_v28, %v2560_v2  ;;  %v3753_v28 = vunpack.i.l.bf16 %v3752_v41 }
 0xa74   : > { %v5386_v54 = vpop.eup %3866  ;;  %v2583_v9 = vmul.f32 1.442695, %v2568_v7 }
 0xa75   : > { %v2603_v14 = vsel %vm1610_vm2, %v5386_v54, 0.0 }
 0xa76   : > { %3868 = vpow2.f32 %v2583_v9  ;;  %2604 = vadd.xlane.f32.xlu2 %v2603_v14 }
 0xa77   : > { %3870 = vpow2.f32 %v2569_v60  ;;  %v2839_v60 = vld [vmem:[%s5754_s4 + $0x50] sm:$0xff] }
 0xa78   : > { %3872 = vpow2.f32 %v2571_v43  ;;  %v2837_v43 = vld [vmem:[%s5754_s4 + $0x40] sm:$0xff] }
 0xa7c   : > { %v5390_v16 = vpop.eup %3868 }
 0xa7d   : > { %v2606_v19 = vsel %vm1610_vm2, %v5390_v16, 0.0  ;;  %v3871_v51 = vpop.eup %3870 }
 0xa7e   : > { %2607 = vadd.xlane.f32.xlu0 %v2606_v19  ;;  %v2585_v35 = vsel %vm1610_vm2, %v3871_v51, 0.0  ;;  %v3873_v5 = vpop.eup %3872 }
 0xa87   : > { %3761 = vrot.lane.b32.xlu1 %v3760_v21, %s4400_s26 }
 0xa89   : > { %v3742_v30 = vpop.permute.xlu1 %3741 }
 0xa8a   : > { %v3744_v49 = vunpack.i.h.bf16 %v3742_v30  ;;  %v3743_v32 = vunpack.i.l.bf16 %v3742_v30 }
 0xa8c   : > { %2737 = vmatpush.msrb.mxu0 %v3743_v32  ;;  %2778 = vmatpush.msra.mxu1 %v3744_v49 }
 0xa8e   : > { %2738 = vmatpush.msrb.mxu0 %v3748_v45  ;;  %2779 = vmatpush.msra.mxu1 %v3749_v42  ;;  %v2844_v42 = vld [vmem:[%s5754_s4 + $0x78] sm:$0xff]  ;;  %v2843_v45 = vld [vmem:[%s5754_s4 + $0x70] sm:$0xff] }
 0xa8f   : > { %3756 = vrot.lane.b32.xlu2 %v3755_v34, %s4400_s26  ;;  %v2588_v34 = vsel %vm1610_vm2, %v3873_v5, 0.0 }
 0xa90   : > { %2739 = vmatpush.msrb.mxu0 %v3753_v28  ;;  %2780 = vmatpush.msra.mxu1 %v3754_v27 }
 0xa92   : > { %3766 = vrot.lane.b32.xlu0 %v3765_v44, %s4400_s26 }
 0xab8   : > { %2586 = vadd.xlane.f32.xlu2 %v2585_v35  ;;  %v2836_v35 = vld [vmem:[%s5754_s4 + $0x38] sm:$0xff] }
 0xabc   : > { %2589 = vadd.xlane.f32.xlu0 %v2588_v34  ;;  %v2834_v34 = vld [vmem:[%s5754_s4 + $0x28] sm:$0xff] }
 0xad0   : > { %2333 = vrot.lane.b32.xlu0 %v5340_v57, %s4403_s7 }
 0xad1   : > { %v2593_v50 = vpop.xlane.xlu0 %2592 }
 0xad2   : > { %3874 = vrcp.f32 %v2593_v50 }
 0xad8   : > { %v3875_v52 = vpop.eup %3874 }
 0xad9   : > { %v2599_v4 = vpop.xlane.xlu2 %2598  ;;  %v2619_v1 = vmul.f32 %v3875_v52, %v5370_v3  ;;  %v2833_v52 = vld [vmem:[%s5754_s4 + $0x20] sm:$0xff] }
 0xadb   : > { %3487 = vmatmul.msk.f32.vlgmr.msra.gmra.mxu3 %vm1610_vm2, %v2619_v1 }
 0xae1   : > { %v2596_v13 = vpop.xlane.xlu2 %2595  ;;  %v2602_v61 = vpop.xlane.xlu1 %2601 }
 0xae2   : > { %3876 = vrcp.f32 %v2596_v13 }
 0xae3   : > { %3878 = vrcp.f32 %v2599_v4 }
 0xae8   : > { %v3877_v48 = vpop.eup %3876 }
 0xae9   : > { %v2605_v10 = vpop.xlane.xlu2 %2604  ;;  %v2620_v20 = vmul.f32 %v3877_v48, %v5378_v59  ;;  %v3879_v57 = vpop.eup %3878 }
 0xaea   : > { %3880 = vrcp.f32 %v2605_v10  ;;  %v2621_v38 = vmul.f32 %v3879_v57, %v5374_v26  ;;  %v2832_v10 = vld [vmem:[%s5754_s4 + $0x18] sm:$0xff]  ;;  %v2829_v57 = vld [vmem:[%s5754_s4] sm:$0xff] }
 0xaeb   : > { %3488 = vmatmul.msk.f32.gmra.mxu3 %vm1610_vm2, %v2620_v20  ;;  %3882 = vrcp.f32 %v2602_v61  ;;  %v2831_v20 = vld [vmem:[%s5754_s4 + $0x10] sm:$0xff]  ;;  %v2830_v61 = vld [vmem:[%s5754_s4 + $0x8] sm:$0xff] }
 0xaf0   : > { %v3881_v15 = vpop.eup %3880 }
 0xaf1   : > { %v2608_v62 = vpop.xlane.xlu0 %2607  ;;  %v3757_v36 = vpop.permute.xlu2 %3756  ;;  %v2623_v18 = vmul.f32 %v3881_v15, %v5386_v54 }
 0xaf2   : > { %3884 = vrcp.f32 %v2608_v62  ;;  %v3759_v3 = vunpack.i.h.bf16 %v3757_v36  ;;  %v3758_v37 = vunpack.i.l.bf16 %v3757_v36  ;;  %v3883_v29 = vpop.eup %3882 }
 0xaf3   : > { %v2622_v17 = vmul.f32 %v3883_v29, %v5380_v0 }
 0xaf4   : > { %2740 = vmatpush.msrb.mxu0 %v3758_v37  ;;  %2781 = vmatpush.msra.mxu1 %v3759_v3 }
 0xaf5   : > { %3489 = vmatmul.msk.f32.vlgmr.msrb.gmra.mxu0 %vm1610_vm2, %v2621_v38  ;;  %3491 = vmatmul.msk.f32.vlgmr.msra.gmra.mxu1 %vm1610_vm2, %v2623_v18 }
 0xaf8   : > { %v3885_v58 = vpop.eup %3884 }
 0xaf9   : > { %v3762_v8 = vpop.permute.xlu1 %3761  ;;  %v2624_v55 = vmul.f32 %v3885_v58, %v5390_v16 }
 0xafa   : > { %v3763_v59 = vunpack.i.l.bf16 %v3762_v8  ;;  %v3764_v53 = vunpack.i.h.bf16 %v3762_v8 }
 0xafc   : > { %2655 = vmatpush.msra.mxu2 %v3763_v59 }
 0xafd   : > { %3490 = vmatmul.msk.f32.gmra.mxu0 %vm1610_vm2, %v2622_v17  ;;  %3492 = vmatmul.msk.f32.gmra.mxu1 %vm1610_vm2, %v2624_v55 }
 0xafe   : > { %2656 = vmatpush.msra.mxu2 %v3764_v53 }
 0xb04   : > { %v3767_v26 = vpop.permute.xlu0 %3766 }
 0xb05   : > { %v3768_v31 = vunpack.i.l.bf16 %v3767_v26  ;;  %v3769_v2 = vunpack.i.h.bf16 %v3767_v26 }
 0xb07   : > { %2657 = vmatpush.msra.mxu2 %v3768_v31 }
 0xb09   : > { %2658 = vmatpush.msra.mxu2 %v3769_v2  ;;  %v3781_v2 = vld [vmem:[%s5755_s13] ss:$0 sm:$0xff]  ;;  %s1095_s13 = scalar_lea.vmem [#allocation23], %s4774_s29 }
 0xb0a   : > { %s3081_s1 = sshll.u32 %s1095_s13, 4  ;;  %s3082_s1 = int_to_ptr.vmem [resolvable:$true] %s3081_s1 }
 0xb0b   : > { %2849 = vmatpush.msrb.mxu2 %v2844_v42 }
 0xb0d   : > { %2850 = vmatpush.msrb.mxu2 %v2843_v45 }
 0xb2b   : > { %v2587_v7 = vpop.xlane.xlu2 %2586 }
 0xb2c   : > { %3886 = vrcp.f32 %v2587_v7 }
 0xb2f   : > { %v2590_v54 = vpop.xlane.xlu0 %2589 }
 0xb30   : > { %3888 = vrcp.f32 %v2590_v54 }
 0xb32   : > { %v3887_v9 = vpop.eup %3886 }
 0xb33   : > { %v2617_v0 = vmul.f32 %v3887_v9, %v3871_v51 }
 0xb35   : > { %3485 = vmatmul.msk.f32.vlgmr.msra.gmra.mxu2 %vm1610_vm2, %v2617_v0 }
 0xb36   : > { %v3889_v14 = vpop.eup %3888 }
 0xb37   : > { %v2618_v16 = vmul.f32 %v3889_v14, %v3873_v5  ;;  %v2835_v5 = vld [vmem:[%s5754_s4 + $0x30] sm:$0xff] }
 0xb3d   : > { %3486 = vmatmul.msk.f32.gmra.mxu2 %vm1610_vm2, %v2618_v16 }
 0xb42   : > { %v2334_v38 = vpop.permute.xlu0 %2333 }
 0xb5e   : > { %v2701_v19 = vpop.f32.mrf.mxu3 }
 0xb5f   : > { %2791 = vrot.lane.b32.xlu1 %v2701_v19, %s4402_s21 }
 0xb6e   : > { %v2704_v30 = vpop.f32.mrf.mxu3 }
 0xb72   : > { %v2742_v21 = vpop.f32.mrf.mxu0  ;;  %v2783_v22 = vpop.f32.mrf.mxu1 }
 0xb73   : > { %2807 = vrot.lane.b32.xlu1 %v2783_v22, %s4403_s7  ;;  %2799 = vrot.lane.b32.xlu2 %v2742_v21, %s4401_s27 }
 0xb7a   : > { %v2786_v49 = vpop.f32.mrf.mxu1  ;;  %v2745_v32 = vpop.f32.mrf.mxu0 }
 0xb7b   : > { %2793 = vrot.lane.b32.xlu1 %v2704_v30, %s4402_s21  ;;  %2809 = vrot.lane.b32.xlu2 %v2786_v49, %s4403_s7 }
 0xb83   : > { %2325 = vrot.lane.b32.xlu2 %v5330_v56, %s4401_s27  ;;  %2801 = vrot.lane.b32.xlu1 %v2745_v32, %s4401_s27 }
 0xb8b   : > { %2327 = vrot.lane.b32.xlu2 %v5335_v12, %s4401_s27  ;;  %3771 = vrot.lane.b32.xlu1 %v3770_v23, %s4402_s21  ;;  %v2842_v12 = vld [vmem:[%s5754_s4 + $0x68] sm:$0xff]  ;;  %s5756_s27 = sld [smem:[#allocation57_spill]] }
 0xb8c   : > { %2851 = vmatpush.msrb.mxu2 %v2842_v12  ;;  %v2931_v12 = vld [vmem:[#allocation22 + $0x28] sm:$0xff]  ;;  %s5759_s21 = sld [smem:[#allocation59_spill]] }
 0xb8e   : > { %2852 = vmatpush.msrb.mxu2 %v2841_v40  ;;  %v2929_v40 = vld [vmem:[#allocation22 + $0x18] sm:$0xff] }
 0xb90   : > { %2853 = vmatpush.msrb.mxu2 %v2840_v47 }
 0xb92   : > { %2854 = vmatpush.msrb.mxu2 %v2839_v60  ;;  %s3080_s28 = scalar_lea.hbm %s5759_s21, %s3506_s20 }
 0xb94   : > { %2855 = vmatpush.msrb.mxu2 %v2838_v39 }
 0xb96   : > { %2856 = vmatpush.msrb.mxu2 %v2837_v43  ;;  %v2984_v43 = vld [vmem:[%s5756_s27 + $0x78] sm:$0xff] }
 0xb97   : > { %2989 = vmatpush.msra.mxu0 %v2984_v43 }
 0xb98   : > { %2857 = vmatpush.msrb.mxu2 %v2836_v35  ;;  %v2982_v35 = vld [vmem:[%s5756_s27 + $0x68] sm:$0xff] }
 0xb9a   : > { %2858 = vmatpush.msrb.mxu2 %v2835_v5 }
 0xb9c   : > { %2859 = vmatpush.msrb.mxu2 %v2834_v34 }
 0xb9e   : > { %2860 = vmatpush.msrb.mxu2 %v2833_v52 }
 0xba0   : > { %2861 = vmatpush.msrb.mxu2 %v2832_v10 }
 0xba2   : > { %2862 = vmatpush.msrb.mxu2 %v2831_v20  ;;  %v2978_v20 = vld [vmem:[%s5756_s27 + $0x48] sm:$0xff] }
 0xba4   : > { %2863 = vmatpush.msrb.mxu2 %v2830_v61 }
 0xba6   : > { %2864 = vmatpush.msrb.mxu2 %v2829_v57  ;;  %v2977_v57 = vld [vmem:[%s5756_s27 + $0x40] sm:$0xff] }
 0xbb8   : > { %v2660_v56 = vpop.f32.mrf.mxu2 }
 0xbc0   : > { %v2663_v50 = vpop.f32.mrf.mxu2 }
 0xbcd   : > { %v2800_v25 = vpop.permute.xlu2 %2799 }
 0xbd1   : > { %v2792_v41 = vpop.permute.xlu1 %2791 }
 0xbd2   : > { %v2813_v27 = vsel %vm1243_vm1, %v2660_v56, %v2792_v41  ;;  %v2933_v56 = vld [vmem:[#allocation22 + $0x38] sm:$0xff] }
 0xbd3   : > { %v2815_v28 = vsel %vm1610_vm2, %v2813_v27, %v2800_v25  ;;  %2952 = vmatpush.msrb.mxu3 %v2933_v56  ;;  %v2932_v27 = vld [vmem:[#allocation22 + $0x30] sm:$0xff]  ;;  %v2930_v25 = vld [vmem:[#allocation22 + $0x20] sm:$0xff] }
 0xbd5   : > { %2953 = vmatpush.msrb.mxu3 %v2932_v27 }
 0xbd7   : > { %2954 = vmatpush.msrb.mxu3 %v2931_v12 }
 0xbd9   : > { %2955 = vmatpush.msrb.mxu3 %v2930_v25 }
 0xbdb   : > { %2956 = vmatpush.msrb.mxu3 %v2929_v40 }
 0xbe5   : > { %v2808_v23 = vpop.permute.xlu1 %2807 }
 0xbe6   : > { %v2817_v44 = vsel %vm1613_vm3, %v2815_v28, %v2808_v23  ;;  %v2928_v23 = vld [vmem:[#allocation22 + $0x10] sm:$0xff]  ;;  %v2927_v28 = vld [vmem:[#allocation22 + $0x8] sm:$0xff] }
 0xbe7   : > { %2821 = vrot.lane.b32.xlu1 %v2817_v44, %s4400_s26  ;;  %2957 = vmatpush.msrb.mxu3 %v2928_v23  ;;  %v2926_v44 = vld [vmem:[#allocation22] sm:$0xff] }
 0xbe9   : > { %2958 = vmatpush.msrb.mxu3 %v2927_v28 }
 0xbeb   : > { %2959 = vmatpush.msrb.mxu3 %v2926_v44 }
 0xbed   : > { %v2794_v51 = vpop.permute.xlu1 %2793 }
 0xbee   : > { %v2814_v4 = vsel %vm1243_vm1, %v2663_v50, %v2794_v51  ;;  %v2983_v51 = vld [vmem:[%s5756_s27 + $0x70] sm:$0xff]  ;;  %v2981_v50 = vld [vmem:[%s5756_s27 + $0x60] sm:$0xff] }
 0xbef   : > { %2335 = vrot.lane.b32.xlu1 %v5349_v63, %s4403_s7  ;;  %v2810_v63 = vpop.permute.xlu2 %2809  ;;  %2990 = vmatpush.msra.mxu0 %v2983_v51  ;;  %s3083_s7 = sshll.u32 %s3080_s28, 4  ;;  %s3084_s7 = int_to_ptr.hbm [resolvable:$true] %s3083_s7 }
 0xbf0   : > { %s4302_s29 = sshra.s32 %s3084_s7, 4  ;;  %s4303_s29 = int_to_ptr.hbm [resolvable:$true] %s4302_s29 }
 0xbf1   : > { %2991 = vmatpush.msra.mxu0 %v2982_v35  ;;  %p4309_p12 = scmp.lt.s32.totalorder %s4303_s29, %s5759_s21 }
 0xbf3   : > { %2992 = vmatpush.msra.mxu0 %v2981_v50 }
 0xbf5   : > { %v2802_v1 = vpop.permute.xlu1 %2801 }
 0xbf6   : > { %v2816_v13 = vsel %vm1610_vm2, %v2814_v4, %v2802_v1 }
 0xbf7   : > { %v2818_v48 = vsel %vm1613_vm3, %v2816_v13, %v2810_v63  ;;  %v2326_v36 = vpop.permute.xlu2 %2325  ;;  %v2980_v63 = vld [vmem:[%s5756_s27 + $0x58] sm:$0xff] }
 0xbf8   : > { %2823 = vrot.lane.b32.xlu2 %v2818_v48, %s4400_s26  ;;  %v2979_v48 = vld [vmem:[%s5756_s27 + $0x50] sm:$0xff]  ;;  %2993 = vmatpush.msra.mxu0 %v2980_v63 }
 0xbfa   : > { %2994 = vmatpush.msra.mxu0 %v2979_v48 }
 0xbfc   : > { %2995 = vmatpush.msra.mxu0 %v2978_v20 }
 0xbfd   : > { %v3772_v15 = vpop.permute.xlu1 %3771 }
 0xbfe   : > { %v3773_v62 = vunpack.i.l.bf16 %v3772_v15  ;;  %v3774_v8 = vunpack.i.h.bf16 %v3772_v15  ;;  %2996 = vmatpush.msra.mxu0 %v2977_v57 }
 0xbff   : > { %v2328_v58 = vpop.permute.xlu2 %2327 }
 0xc00   : > { %v2339_v3 = vsel %vm1243_vm1, %v5326_v33, %v3773_v62  ;;  %v2340_v17 = vsel %vm1243_vm1, %v5328_v46, %v3774_v8  ;;  %v3783_v8 = vld [vmem:[%s5667_s24 + $0x1] ss:$0 sm:$0xff] }
 0xc01   : > { %v2341_v37 = vsel %vm1610_vm2, %v2339_v3, %v2326_v36  ;;  %v2342_v53 = vsel %vm1610_vm2, %v2340_v17, %v2328_v58  ;;  %v2976_v36 = vld [vmem:[%s5756_s27 + $0x38] sm:$0xff]  ;;  %v3782_v3 = vld [vmem:[%s5666_s23 + $0x1] ss:$0 sm:$0xff] }
 0xc02   : > { %v2343_v29 = vsel %vm1613_vm3, %v2341_v37, %v2334_v38  ;;  %2997 = vmatpush.msra.mxu0 %v2976_v36 }
 0xc52   : > { %v2824_v26 = vpop.permute.xlu2 %2823 }
 0xc59   : > { %v2822_v18 = vpop.permute.xlu1 %2821 }
 0xc5a   : > { %v2827_v59 = vsel %vm1144_vm0, %v2343_v29, %v2822_v18  ;;  %v2975_v18 = vld [vmem:[%s5756_s27 + $0x30] sm:$0xff] }
 0xc5b   : > { %2865 = vmatmul.f32.vlgmr.msrb.gmra.mxu2 %v2827_v59  ;;  %v2974_v59 = vld [vmem:[%s5756_s27 + $0x28] sm:$0xff]  ;;  %2998 = vmatpush.msra.mxu0 %v2975_v18 }
 0xc5d   : > { %2999 = vmatpush.msra.mxu0 %v2974_v59 }
 0xc61   : > { %v2336_v55 = vpop.permute.xlu1 %2335 }
 0xc62   : > { %v2344_v33 = vsel %vm1613_vm3, %v2342_v53, %v2336_v55  ;;  %v2973_v53 = vld [vmem:[%s5756_s27 + $0x20] sm:$0xff] }
 0xc63   : > { %v2828_v31 = vsel %vm1144_vm0, %v2344_v33, %v2824_v26  ;;  %3000 = vmatpush.msra.mxu0 %v2973_v53 }
 0xc64   : > { %2868 = vmatmul.f32.gmra.mxu2 %v2828_v31  ;;  %v2972_v31 = vld [vmem:[%s5756_s27 + $0x18] sm:$0xff] }
 0xc65   : > { %3001 = vmatpush.msra.mxu0 %v2972_v31 }
 0xcde   : > { %v2866_v7 = vpop.f32.mrf.mxu2 }
 0xcdf   : > { %v2867_v54 = vadd.f32 %v3781_v2, %v2866_v7 }
 0xce1   : > { %v2872_v9 = vadd.f32 %v2867_v54, %v4997_v6 }
 0xce3   : > { %v2876_v0 = vsel %vm1144_vm0, %v2872_v9, 0.0 }
 0xce4   : > { %2877 = vadd.xlane.f32.xlu1 %v2876_v0 }
 0xce7   : > { %v2869_v46 = vpop.f32.mrf.mxu2 }
 0xce8   : > { %v2870_v14 = vadd.f32 %v3781_v2, %v2869_v46  ;;  %v2971_v46 = vld [vmem:[%s5756_s27 + $0x10] sm:$0xff] }
 0xce9   : > { %3002 = vmatpush.msra.mxu0 %v2971_v46 }
 0xcea   : > { %v2873_v16 = vadd.f32 %v2870_v14, %v5014_v24  ;;  %v2970_v14 = vld [vmem:[%s5756_s27 + $0x8] sm:$0xff] }
 0xceb   : > { %3003 = vmatpush.msra.mxu0 %v2970_v14 }
 0xcec   : > { %v2879_v19 = vsel %vm1144_vm0, %v2873_v16, 0.0 }
 0xced   : > { %2880 = vadd.xlane.f32.xlu2 %v2879_v19  ;;  %v3784_v19 = vld [vmem:[%s5757_s14] ss:$0 sm:$0xff]  ;;  %s4304_s14 = scalar_lea.hbm %s4303_s29, 16 }
 0xcee   : > { %p4305_p3 = scmp.ne.s32.totalorder %s4303_s29, %s4304_s14 }
 0xcf0   : > { %p4306_p8 = pnand %p4305_p3, %p4632_p0 }
 0xcf2   : > { %p4307_p9 = pneg %p4306_p8 }
 0xd57   : > { %v2878_v21 = vpop.xlane.xlu1 %2877 }
 0xd58   : > { %v2882_v22 = vmul.f32 %v2878_v21, %v4959_v11 }
 0xd5a   : > { %v5516_v30 = vsub.f32 %v2872_v9, %v2882_v22 }
 0xd5c   : > { %v2886_v49 = vmul.f32 %v5516_v30, %v5516_v30 }
 0xd5e   : > { %v2888_v6 = vsel %vm1144_vm0, %v2886_v49, 0.0 }
 0xd5f   : > { %2889 = vadd.xlane.f32.xlu0 %v2888_v6 }
 0xd60   : > { %v2881_v32 = vpop.xlane.xlu2 %2880 }
 0xd61   : > { %v2883_v41 = vmul.f32 %v2881_v32, %v4959_v11 }
 0xd63   : > { %v5522_v42 = vsub.f32 %v2873_v16, %v2883_v41  ;;  %v2969_v16 = vld [vmem:[%s5756_s27] sm:$0xff] }
 0xd64   : > { %3004 = vmatpush.msra.mxu0 %v2969_v16  ;;  %v3785_v41 = vld [vmem:[%s5758_s12] ss:$0 sm:$0xff]  ;;  %s4308_s12 = scalar_lea.hbm %s5759_s21, 32 }
 0xd65   : > { %v2887_v24 = vmul.f32 %v5522_v42, %v5522_v42  ;;  %p4310_p2 = scmp.lt.s32.totalorder %s4308_s12, %s4304_s14 }
 0xd67   : > { %v2891_v45 = vsel %vm1144_vm0, %v2887_v24, 0.0  ;;  %p4311_p4 = por %p4310_p2, %p4309_p12 }
 0xd68   : > { %2892 = vadd.xlane.f32.xlu1 %v2891_v45 }
 0xd69   : > { %p4312_p13 = pnand %p4311_p4, %p4307_p9 }
 0xdd2   : > { %v2890_v47 = vpop.xlane.xlu0 %2889 }
 0xdd3   : > { %v2894_v60 = vmul.f32 %v2890_v47, %v4959_v11 }
 0xdd5   : > { %v2896_v39 = vadd.f32 1e-05, %v2894_v60 }
 0xdd7   : > { %3890 = vrsqrt.f32 %v2896_v39  ;;  %vm2904_vm12 = vweird.f32 %v2896_v39 }
 0xddb   : > { %v2893_v5 = vpop.xlane.xlu1 %2892 }
 0xddc   : > { %v2895_v34 = vmul.f32 %v2893_v5, %v4959_v11 }
 0xddd   : > { %v3891_v52 = vpop.eup %3890 }
 0xdde   : > { %v2899_v4 = vmul.f32 %v3891_v52, %v2896_v39  ;;  %v2897_v1 = vadd.f32 1e-05, %v2895_v34  ;;  %vm2905_vm11 = vweird.f32 %v3891_v52 }
 0xddf   : > { %vm2906_vm13 = vmor %vm2904_vm12, %vm2905_vm11 }
 0xde0   : > { %v2900_v13 = vmul.f32 %v3891_v52, %v2899_v4  ;;  %3892 = vrsqrt.f32 %v2897_v1  ;;  %vm2914_vm15 = vweird.f32 %v2897_v1 }
 0xde2   : > { %v2901_v10 = vmul.f32 0.5, %v2900_v13 }
 0xde4   : > { %v2902_v61 = vsub.f32 1.5, %v2901_v10 }
 0xde6   : > { %v3893_v15 = vpop.eup %3892  ;;  %v2903_v62 = vmul.f32 %v3891_v52, %v2902_v61 }
 0xde7   : > { %v2909_v37 = vmul.f32 %v3893_v15, %v2897_v1  ;;  %vm2915_vm14 = vweird.f32 %v3893_v15 }
 0xde8   : > { %v2907_v38 = vsel %vm2906_vm13, %v3891_v52, %v2903_v62  ;;  %vm2916_vm1 = vmor %vm2914_vm15, %vm2915_vm14  ;;  %v3786_v62 = vld [vmem:[%s5666_s23 + $0x2] ss:$0 sm:$0xff] }
 0xde9   : > { %v2918_v29 = vmul.f32 %v2907_v38, %v5516_v30  ;;  %v2910_v58 = vmul.f32 %v3893_v15, %v2909_v37 }
 0xdeb   : > { %v2921_v17 = vmul.f32 %v3782_v3, %v2918_v29  ;;  %v2911_v55 = vmul.f32 0.5, %v2910_v58 }
 0xded   : > { %v2912_v26 = vsub.f32 1.5, %v2911_v55  ;;  %v2924_v33 = vadd.f32 %v3783_v8, %v2921_v17 }
 0xdef   : > { %v2913_v2 = vmul.f32 %v3893_v15, %v2912_v26  ;;  %3493 = vmatmul.msk.f32.vlgmr.msrb.gmra.mxu3 %vm1144_vm0, %v2924_v33 }
 0xdf1   : > { %v2917_v7 = vsel %vm2916_vm1, %v3893_v15, %v2913_v2 }
 0xdf2   : > { %v2919_v54 = vmul.f32 %v2917_v7, %v5522_v42 }
 0xdf4   : > { %v2922_v9 = vmul.f32 %v3782_v3, %v2919_v54  ;;  %v3787_v3 = vld [vmem:[%s5667_s24 + $0x2] ss:$0 sm:$0xff] }
 0xdf6   : > { %v2925_v0 = vadd.f32 %v3783_v8, %v2922_v9 }
 0xdf8   : > { %3494 = vmatmul.msk.f32.gmra.mxu3 %vm1144_vm0, %v2925_v0 }
 0xe72   : > { %v2961_v21 = vpop.f32.mrf.mxu3 }
 0xe73   : > { %v2962_v22 = vadd.f32 %v3784_v19, %v2961_v21 }
 0xe75   : > { %v2967_v30 = vmax.f32 %v2962_v22, 0.0 }
 0xe77   : > { %3005 = vmatmul.f32.vlgmr.msra.gmra.mxu0 %v2967_v30 }
 0xe7b   : > { %v2964_v49 = vpop.f32.mrf.mxu3 }
 0xe7c   : > { %v2965_v6 = vadd.f32 %v3784_v19, %v2964_v49 }
 0xe7e   : > { %v2968_v32 = vmax.f32 %v2965_v6, 0.0 }
 0xe80   : > { %3008 = vmatmul.f32.gmra.mxu0 %v2968_v32 }
 0xef4   : > { %v3006_v42 = vpop.f32.mrf.mxu0 }
 0xef5   : > { %v3007_v24 = vadd.f32 %v3785_v41, %v3006_v42 }
 0xef7   : > { %v3012_v45 = vadd.f32 %v3007_v24, %v2924_v33 }
 0xef9   : > { %v3016_v56 = vsel %vm1144_vm0, %v3012_v45, 0.0 }
 0xefa   : > { %3017 = vadd.xlane.f32.xlu2 %v3016_v56 }
 0xefd   : > { %v3009_v27 = vpop.f32.mrf.mxu0 }
 0xefe   : > { %v3010_v12 = vadd.f32 %v3785_v41, %v3009_v27 }
 0xf00   : > { %v3013_v25 = vadd.f32 %v3010_v12, %v2925_v0 }
 0xf02   : > { %v3019_v40 = vsel %vm1144_vm0, %v3013_v25, 0.0 }
 0xf03   : > { %3020 = vadd.xlane.f32.xlu0 %v3019_v40 }
 0xf6d   : > { %v3018_v23 = vpop.xlane.xlu2 %3017 }
 0xf6e   : > { %v3022_v28 = vmul.f32 %v3018_v23, %v4959_v11 }
 0xf70   : > { %v3024_v44 = vsub.f32 %v3012_v45, %v3022_v28 }
 0xf72   : > { %v3026_v47 = vmul.f32 %v3024_v44, %v3024_v44 }
 0xf74   : > { %v3028_v60 = vsel %vm1144_vm0, %v3026_v47, 0.0 }
 0xf75   : > { %3029 = vadd.xlane.f32.xlu1 %v3028_v60 }
 0xf76   : > { %v3021_v39 = vpop.xlane.xlu0 %3020 }
 0xf77   : > { %v3023_v43 = vmul.f32 %v3021_v39, %v4959_v11 }
 0xf79   : > { %v3025_v51 = vsub.f32 %v3013_v25, %v3023_v43 }
 0xf7b   : > { %v3027_v35 = vmul.f32 %v3025_v51, %v3025_v51 }
 0xf7d   : > { %v3031_v5 = vsel %vm1144_vm0, %v3027_v35, 0.0 }
 0xf7e   : > { %3032 = vadd.xlane.f32.xlu2 %v3031_v5 }
 0xfe8   : > { %v3030_v34 = vpop.xlane.xlu1 %3029 }
 0xfe9   : > { %v3034_v50 = vmul.f32 %v3030_v34, %v4959_v11 }
 0xfeb   : > { %v3036_v52 = vadd.f32 1e-05, %v3034_v50 }
 0xfed   : > { %3894 = vrsqrt.f32 %v3036_v52  ;;  %vm3044_vm3 = vweird.f32 %v3036_v52 }
 0xff1   : > { %v3033_v4 = vpop.xlane.xlu2 %3032 }
 0xff2   : > { %v3035_v1 = vmul.f32 %v3033_v4, %v4959_v11 }
 0xff3   : > { %v3895_v63 = vpop.eup %3894 }
 0xff4   : > { %v3039_v13 = vmul.f32 %v3895_v63, %v3036_v52  ;;  %v3037_v48 = vadd.f32 1e-05, %v3035_v1  ;;  %vm3045_vm2 = vweird.f32 %v3895_v63 }
 0xff5   : > { %vm3046_vm4 = vmor %vm3044_vm3, %vm3045_vm2 }
 0xff6   : > { %v3040_v10 = vmul.f32 %v3895_v63, %v3039_v13  ;;  %3896 = vrsqrt.f32 %v3037_v48  ;;  %vm3054_vm6 = vweird.f32 %v3037_v48 }
 0xff8   : > { %v3041_v20 = vmul.f32 0.5, %v3040_v10 }
 0xffa   : > { %v3042_v61 = vsub.f32 1.5, %v3041_v20 }
 0xffc   : > { %v3897_v57 = vpop.eup %3896  ;;  %v3043_v15 = vmul.f32 %v3895_v63, %v3042_v61 }
 0xffd   : > { %v3049_v36 = vmul.f32 %v3897_v57, %v3037_v48  ;;  %vm3055_vm5 = vweird.f32 %v3897_v57 }
 0xffe   : > { %v3047_v11 = vsel %vm3046_vm4, %v3895_v63, %v3043_v15  ;;  %vm3056_vm7 = vmor %vm3054_vm6, %vm3055_vm5 }
 0xfff   : > { %v3058_v37 = vmul.f32 %v3047_v11, %v3024_v44  ;;  %v3050_v38 = vmul.f32 %v3897_v57, %v3049_v36 }
0x1001   : > { %v3061_v18 = vmul.f32 %v3786_v62, %v3058_v37  ;;  %v3051_v29 = vmul.f32 0.5, %v3050_v38 }
0x1003   : > { %v3064_v58 = vadd.f32 %v3787_v3, %v3061_v18  ;;  %v3052_v8 = vsub.f32 1.5, %v3051_v29 }
0x1005   : > { %v3053_v59 = vmul.f32 %v3897_v57, %v3052_v8  ;;  %3066 = vst.msk [vmem:[%s1095_s13] sm:$0xff] %vm1144_vm0, %v3064_v58 }
0x1007   : > { %v3057_v17 = vsel %vm3056_vm7, %v3897_v57, %v3053_v59 }
0x1008   : > { %v3059_v55 = vmul.f32 %v3057_v17, %v3025_v51 }
0x100a   : > { %v3062_v53 = vmul.f32 %v3786_v62, %v3059_v55 }
0x100c   : > { %v3065_v26 = vadd.f32 %v3787_v3, %v3062_v53 }
0x100e   : > { %3067 = vst.msk [vmem:[%s1095_s13 + $0x8] sm:$0xff] %vm1144_vm0, %v3065_v26 }
0x100f   : > { %4315 = shalt.err (!%p4312_p13)
}
0x1010   : > { %s4405_s0 = smov 128   ;;  %s4406_s6 = smov 8  }
0x1011   : > { %3553 = dma.vmem_to_hbm [thread:$0]  (%p4632_p0), %s3082_s1, 256, %s3084_s7, %s3069_s8, %s4405_s0, %s4405_s0, %s4406_s6  }
0x1012 PF: > { %s5760_s26 = sld [smem:[#allocation33_spill]]  ;;  %p5762_p1 = scmp.ge.s32.totalorder %s4382_s30, 2 }
0x1014   : > { %p3597_p6 = pnand %p5762_p1, %p4640_p5 }
0x1016   : > { %p3598_p7 = pneg %p3597_p6 }
0x1018   : > { %s3098_s13 = sand.u32 1, %s5760_s26  }
0x1019   : > { %s3099_s3 = scalar_lea.sflag [#allocation4], %s3098_s13 }
0x101a   : > { %4365 = dma.done.wait (%p3598_p7), %s3099_s3, 256  }
0x101b   : > { %4367 = vsyncadd (%p3598_p7), %s3099_s3, 4294967040  ;;  %s5763_s30 = sld [smem:[#allocation35_spill]]  ;;  %s5766_s29 = smov %s4374_s2 }
0x101c   : > { %s5764_s19 = sld [smem:[#allocation34_spill]] }
0x101d   : > { %s5765_s6 = sld [smem:[#allocation36_spill]] }
0x1021   : > { %p48_p10 = scmp.ge.s32.totalorder %s5763_s30, 4  }
0x1022   : > { %s5767_s2 = smov %s5764_s19 }
0x1023   :  { %50 = sbr.rel (!%p48_p10) target bundleno = 36 (0x24), region = 247 }
0x1028   :  { %3105 = vsyncpa [#allocation3], 1 }
0x1029   :  { %3107 = vsyncpa [#allocation3 + $0x1], 1 }
0x102a   :  { %3108 = vsyncpa [#allocation6], 1 }
0x102b   :  { %3110 = vsyncpa [#allocation6 + $0x1], 1 }
0x102c   :  { %3111 = vsyncpa [#allocation9], 1 }
0x102d   :  { %3113 = vsyncpa [#allocation9 + $0x1], 1 }
0x102e   :  { %3114 = vsyncpa [#allocation12], 1 }
0x102f   :  { %3115 = vsyncpa [#allocation15], 1 }
0x1030   :  { %3116 = vsyncpa [#allocation18], 1 }
0x1031   :  { %3117 = vsyncpa [#allocation21], 1 }
0x1032   :  { %3118 = vsyncpa [#allocation4], 1 }
0x1033   :  { %3120 = vsyncpa [#allocation4 + $0x1], 1 }

</bundles_post_ra>
